<compile_context>
chip_gen: v7x
topology: tpu7x:2x2x1
jax: 0.10.0
libtpu: 0.0.40
codegen_flags: <defaults>
</compile_context>

<pallas_src>
import functools
import math

import jax
import jax.numpy as jnp
from jax.experimental import pallas as pl
from jax.experimental.pallas import tpu as pltpu

NEG_INF = -1e30                 # large-negative instead of -inf keeps softmax NaN-free
VMEM_LIMIT = 32 * 1024 * 1024   # safe scoped-VMEM cap on v5e / v6e / v7x


# ----------------------------------------------------------------------------
# Fused decoder layer: one batch per grid step, all intermediates in VMEM.
# ----------------------------------------------------------------------------
def _decoder_layer_kernel(
        x_ref, mem_ref, sa_bias_ref, ca_bias_ref,
        w_qkv_ref, b_qkv_ref, w_o1_ref, b_o1_ref, g1_ref, be1_ref,
        w_q2_ref, b_q2_ref, w_kv2_ref, b_kv2_ref, w_o2_ref, b_o2_ref,
        g2_ref, be2_ref,
        w_f1_ref, b_f1_ref, w_f2_ref, b_f2_ref, g3_ref, be3_ref,
        o_ref, *, nheads, eps):
    H = x_ref.shape[2]
    dh = H // nheads
    scale = 1.0 / math.sqrt(dh)

    def layernorm(y, g, b):
        mean = jnp.mean(y, axis=-1, keepdims=True)
        c = y - mean
        var = jnp.mean(c * c, axis=-1, keepdims=True)
        return c * jax.lax.rsqrt(var + eps) * g + b

    def mha(q, k, v, bias):
        # nheads is small; loop unrolls at trace time.  Everything stays in vregs/VMEM.
        outs = []
        for h in range(nheads):
            qh = q[:, h * dh:(h + 1) * dh]
            kh = k[:, h * dh:(h + 1) * dh]
            vh = v[:, h * dh:(h + 1) * dh]
            s = jax.lax.dot_general(qh, kh, (((1,), (1,)), ((), ())),
                                    preferred_element_type=jnp.float32)
            s = s * scale + bias
            s = s - jnp.max(s, axis=-1, keepdims=True)
            p = jnp.exp(s)
            p = p * pl.reciprocal(jnp.sum(p, axis=-1, keepdims=True), approx=True)
            outs.append(jnp.dot(p.astype(jnp.bfloat16), vh,
                                preferred_element_type=jnp.float32))
        return jnp.concatenate(outs, axis=-1)           # (Tq, H) f32

    x = x_ref[0]                                        # (T, H) f32
    mem = mem_ref[0]                                    # (S, H) f32
    sa_bias = sa_bias_ref[0]                            # (T, T) causal + key-pad
    ca_bias = ca_bias_ref[0]                            # (1, S) key-pad

    # ---- self-attention block -------------------------------------------
    qkv = jnp.dot(x.astype(jnp.bfloat16), w_qkv_ref[...],
                  preferred_element_type=jnp.float32) + b_qkv_ref[...]
    q = qkv[:, :H].astype(jnp.bfloat16)
    k = qkv[:, H:2 * H].astype(jnp.bfloat16)
    v = qkv[:, 2 * H:].astype(jnp.bfloat16)
    sa = mha(q, k, v, sa_bias)
    y = jnp.dot(sa.astype(jnp.bfloat16), w_o1_ref[...],
                preferred_element_type=jnp.float32) + b_o1_ref[...]
    x = layernorm(x + y, g1_ref[...], be1_ref[...])

    # ---- cross-attention block ------------------------------------------
    q2 = (jnp.dot(x.astype(jnp.bfloat16), w_q2_ref[...],
                  preferred_element_type=jnp.float32)
          + b_q2_ref[...]).astype(jnp.bfloat16)
    kv2 = jnp.dot(mem.astype(jnp.bfloat16), w_kv2_ref[...],
                  preferred_element_type=jnp.float32) + b_kv2_ref[...]
    k2 = kv2[:, :H].astype(jnp.bfloat16)
    v2 = kv2[:, H:].astype(jnp.bfloat16)
    ca = mha(q2, k2, v2, ca_bias)
    y = jnp.dot(ca.astype(jnp.bfloat16), w_o2_ref[...],
                preferred_element_type=jnp.float32) + b_o2_ref[...]
    x = layernorm(x + y, g2_ref[...], be2_ref[...])

    # ---- feed-forward block ---------------------------------------------
    hmid = jnp.dot(x.astype(jnp.bfloat16), w_f1_ref[...],
                   preferred_element_type=jnp.float32) + b_f1_ref[...]
    hmid = jnp.maximum(hmid, 0.0).astype(jnp.bfloat16)
    y = jnp.dot(hmid, w_f2_ref[...],
                preferred_element_type=jnp.float32) + b_f2_ref[...]
    x = layernorm(x + y, g3_ref[...], be3_ref[...])

    o_ref[0] = x.astype(o_ref.dtype)


def pallas_decoder_layer(x, memory, sa_bias, ca_bias, lp, *, nheads, eps=1e-5):
    """x: (B, T, H) f32; memory: (B, S, H) f32; sa_bias: (B, T, T); ca_bias: (B, 1, S)."""
    B, T, H = x.shape
    S = memory.shape[1]
    FF = lp["ff1_w"].shape[1]
    kern = functools.partial(_decoder_layer_kernel, nheads=nheads, eps=eps)

    def const(shape):                       # weight / bias: constant block index -> stays resident
        return pl.BlockSpec(shape, lambda b: (0, 0))

    in_specs = [
        pl.BlockSpec((1, T, H), lambda b: (b, 0, 0)),     # x
        pl.BlockSpec((1, S, H), lambda b: (b, 0, 0)),     # memory
        pl.BlockSpec((1, T, T), lambda b: (b, 0, 0)),     # self-attn bias
        pl.BlockSpec((1, 1, S), lambda b: (b, 0, 0)),     # cross-attn bias
        const((H, 3 * H)), const((1, 3 * H)),             # w_qkv, b_qkv
        const((H, H)), const((1, H)),                     # sa_w_o, sa_b_o
        const((1, H)), const((1, H)),                     # norm1
        const((H, H)), const((1, H)),                     # ca_w_q, ca_b_q
        const((H, 2 * H)), const((1, 2 * H)),             # ca_w_kv, ca_b_kv
        const((H, H)), const((1, H)),                     # ca_w_o, ca_b_o
        const((1, H)), const((1, H)),                     # norm2
        const((H, FF)), const((1, FF)),                   # ff1
        const((FF, H)), const((1, H)),                    # ff2
        const((1, H)), const((1, H)),                     # norm3
    ]
    return pl.pallas_call(
        kern,
        out_shape=jax.ShapeDtypeStruct((B, T, H), jnp.float32),
        grid=(B,),
        in_specs=in_specs,
        out_specs=pl.BlockSpec((1, T, H), lambda b: (b, 0, 0)),
        compiler_params=pltpu.CompilerParams(
            dimension_semantics=("parallel",),
            vmem_limit_bytes=VMEM_LIMIT),
    )(x, memory, sa_bias, ca_bias,
      lp["w_qkv"], lp["b_qkv"], lp["sa_w_o"], lp["sa_b_o"], lp["n1_g"], lp["n1_b"],
      lp["ca_w_q"], lp["ca_b_q"], lp["ca_w_kv"], lp["ca_b_kv"],
      lp["ca_w_o"], lp["ca_b_o"], lp["n2_g"], lp["n2_b"],
      lp["ff1_w"], lp["ff1_b"], lp["ff2_w"], lp["ff2_b"], lp["n3_g"], lp["n3_b"])


# ----------------------------------------------------------------------------
# Lane-dense N-tiled vocab projection:  y = x @ w + b
# (vocab padded to a multiple of 128, >=2 parallel N blocks for megacore)
# ----------------------------------------------------------------------------
def _linear_kernel(x_ref, w_ref, b_ref, o_ref):
    o_ref[...] = jnp.dot(x_ref[...], w_ref[...],
                         preferred_element_type=jnp.float32) + b_ref[...]


def pallas_linear(x, w, b):
    """x: (M, K); w: (K, N) bf16; b: (1, N) f32  ->  (M, N) f32."""
    M, K = x.shape
    N = w.shape[1]
    Mp = -(-M // 8) * 8
    Np = -(-N // 128) * 128          # never fall back to a full-dim (huge) block
    if Mp != M:
        x = jnp.pad(x, ((0, Mp - M), (0, 0)))
    if Np != N:
        w = jnp.pad(w, ((0, 0), (0, Np - N)))
        b = jnp.pad(b, ((0, 0), (0, Np - N)))
    tm = min(Mp, 256)
    while Mp % tm:
        tm -= 8
    tn = min(Np, 512)
    while tn > 128 and (Np % tn != 0 or Np // tn < 2):
        tn -= 128
    out = pl.pallas_call(
        _linear_kernel,
        out_shape=jax.ShapeDtypeStruct((Mp, Np), jnp.float32),
        grid=(Mp // tm, Np // tn),
        in_specs=[
            pl.BlockSpec((tm, K), lambda i, j: (i, 0)),
            pl.BlockSpec((K, tn), lambda i, j: (0, j)),
            pl.BlockSpec((1, tn), lambda i, j: (0, j)),
        ],
        out_specs=pl.BlockSpec((tm, tn), lambda i, j: (i, j)),
        compiler_params=pltpu.CompilerParams(
            dimension_semantics=("parallel", "parallel"),
            vmem_limit_bytes=VMEM_LIMIT),
    )(x.astype(jnp.bfloat16), w.astype(jnp.bfloat16), b.astype(jnp.float32))
    return out[:M, :N]


# ----------------------------------------------------------------------------
# Model glue (plain JAX orchestrating the fused Pallas kernels)
# ----------------------------------------------------------------------------
def sinusoidal_pe(max_len, d_model):
    pos = jnp.arange(max_len, dtype=jnp.float32)[:, None]
    div = jnp.exp(jnp.arange(0, d_model, 2, dtype=jnp.float32)
                  * (-math.log(10000.0) / d_model))
    pe = jnp.zeros((max_len, d_model), jnp.float32)
    pe = pe.at[:, 0::2].set(jnp.sin(pos * div))
    pe = pe.at[:, 1::2].set(jnp.cos(pos * div))
    return pe


def encoder_transformer_forward(params, input_ids, attention_mask,
                                text_embedding, image_embedding,
                                answer_tokenized, *, nheads, pad_id):
    """Teacher-forcing branch of Encoder_Transformer.forward."""
    del attention_mask  # only consumed by the external (frozen) text encoder

    # encoder_output = concat(text, image) along sequence; kept batch-first for kernels
    memory = jnp.concatenate([text_embedding, image_embedding], axis=1).astype(jnp.float32)
    B, S_mem, H = memory.shape
    S_txt = input_ids.shape[1]
    mem_pad = jnp.pad(input_ids == pad_id, ((0, 0), (0, S_mem - S_txt)),
                      constant_values=False)                               # (B, S_mem)
    ca_bias = jnp.where(mem_pad, NEG_INF, 0.0).astype(jnp.float32)[:, None, :]

    answer = answer_tokenized[:-1, :]                                      # (T, B)
    T = answer.shape[0]
    T_pad = -(-T // 16) * 16                 # bf16 sublane packing: multiple of 16
    answer_p = jnp.pad(answer, ((0, T_pad - T), (0, 0)), constant_values=pad_id)

    x = jnp.take(params["emb"], answer_p, axis=0)                          # (T_pad, B, H)
    x = x + params["pe"][:T_pad][:, None, :]                               # PositionalEncoder
    x = jnp.transpose(x, (1, 0, 2)).astype(jnp.float32)                    # (B, T_pad, H)

    # self-attn bias = causal mask + target key-padding, built once for all layers
    tgt_pad = (answer_p.T == pad_id)                                       # (B, T_pad)
    kp_bias = jnp.where(tgt_pad, NEG_INF, 0.0)[:, None, :]                 # (B, 1, T_pad)
    rows = jnp.arange(T_pad)
    causal = jnp.where(rows[:, None] >= rows[None, :], 0.0, NEG_INF)       # (T_pad, T_pad)
    sa_bias = (causal[None, :, :] + kp_bias).astype(jnp.float32)           # (B, T_pad, T_pad)

    for lp in params["layers"]:
        x = pallas_decoder_layer(x, memory, sa_bias, ca_bias, lp, nheads=nheads)

    xs = jnp.transpose(x, (1, 0, 2)).reshape(T_pad * B, H)                 # (T_pad*B, H)
    logits = pallas_linear(xs, params["out_w"], params["out_b"])
    return logits.reshape(T_pad, B, -1)[:T]                                # (T, B, vocab)


# ----------------------------------------------------------------------------
# Deterministic parameter initialization (weights pre-cast to bf16 once)
# ----------------------------------------------------------------------------
def init_params(key, *, vocab, hidden, layers, ff, max_len=200):
    def lin(k, fan_in, fan_out):
        kw, kb = jax.random.split(k)
        lim = 1.0 / math.sqrt(fan_in)
        w = jax.random.uniform(kw, (fan_in, fan_out), jnp.float32, -lim, lim)
        b = jax.random.uniform(kb, (1, fan_out), jnp.float32, -lim, lim)
        return w, b

    keys = jax.random.split(key, 2 + layers)
    params = {
        "emb": 0.02 * jax.random.normal(keys[0], (vocab, hidden), jnp.float32),
        "pe": sinusoidal_pe(max_len, hidden),
    }
    ow, ob = lin(keys[1], hidden, vocab)
    params["out_w"] = ow.astype(jnp.bfloat16)
    params["out_b"] = ob

    ones = jnp.ones((1, hidden), jnp.float32)
    zeros = jnp.zeros((1, hidden), jnp.float32)
    layer_params = []
    for li in range(layers):
        lk = jax.random.split(keys[2 + li], 10)
        wq, bq = lin(lk[0], hidden, hidden)
        wk, bk = lin(lk[1], hidden, hidden)
        wv, bv = lin(lk[2], hidden, hidden)
        wo1, bo1 = lin(lk[3], hidden, hidden)
        cwq, cbq = lin(lk[4], hidden, hidden)
        cwk, cbk = lin(lk[5], hidden, hidden)
        cwv, cbv = lin(lk[6], hidden, hidden)
        cwo, cbo = lin(lk[7], hidden, hidden)
        f1w, f1b = lin(lk[8], hidden, ff)
        f2w, f2b = lin(lk[9], ff, hidden)
        layer_params.append(dict(
            w_qkv=jnp.concatenate([wq, wk, wv], axis=1).astype(jnp.bfloat16),
            b_qkv=jnp.concatenate([bq, bk, bv], axis=1),
            sa_w_o=wo1.astype(jnp.bfloat16), sa_b_o=bo1,
            n1_g=ones, n1_b=zeros,
            ca_w_q=cwq.astype(jnp.bfloat16), ca_b_q=cbq,
            ca_w_kv=jnp.concatenate([cwk, cwv], axis=1).astype(jnp.bfloat16),
            ca_b_kv=jnp.concatenate([cbk, cbv], axis=1),
            ca_w_o=cwo.astype(jnp.bfloat16), ca_b_o=cbo,
            n2_g=ones, n2_b=zeros,
            ff1_w=f1w.astype(jnp.bfloat16), ff1_b=f1b,
            ff2_w=f2w.astype(jnp.bfloat16), ff2_b=f2b,
            n3_g=ones, n3_b=zeros,
        ))
    params["layers"] = layer_params
    return params


# ----------------------------------------------------------------------------
if __name__ == "__main__":
    B, HIDDEN, NHEADS, LAYERS = 2, 32, 4, 2
    FF = 2048                      # nn.TransformerDecoderLayer default dim_feedforward
    VOCAB = 512                    # stands in for tokenizer.vocab_size
    PAD, BOS, EOS = 1, 0, 2        # RoBERTa-style special tokens
    S_TXT, S_IMG, T_ANS = 6, 10, 8

    key = jax.random.PRNGKey(0)
    kparam, kids, kans, ktxt, kimg = jax.random.split(key, 5)

    params = init_params(kparam, vocab=VOCAB, hidden=HIDDEN, layers=LAYERS, ff=FF)

    input_ids = jax.random.randint(kids, (B, S_TXT), 3, VOCAB)
    input_ids = input_ids.at[:, -2:].set(PAD)                 # trailing padding
    attention_mask = (input_ids != PAD).astype(jnp.int32)

    # Frozen-encoder outputs, stand-ins for CLIP-fa last_hidden_state
    text_embedding = 0.02 * jax.random.normal(ktxt, (B, S_TXT, HIDDEN), jnp.float32)
    image_embedding = 0.02 * jax.random.normal(kimg, (B, S_IMG, HIDDEN), jnp.float32)

    answer_tokenized = jax.random.randint(kans, (T_ANS, B), 3, VOCAB)
    answer_tokenized = answer_tokenized.at[0, :].set(BOS).at[-1, :].set(EOS)

    fwd = jax.jit(functools.partial(encoder_transformer_forward,
                                    nheads=NHEADS, pad_id=PAD))
    out = fwd(params, input_ids, attention_mask,
              text_embedding, image_embedding, answer_tokenized)
    out = jax.block_until_ready(out)

    assert out.shape == (T_ANS - 1, B, VOCAB), out.shape
    assert bool(jnp.all(jnp.isfinite(out)))
    print("KERNEL_OK")
</pallas_src>

<mosaic_0001>
module attributes {stable_mosaic.version = 11 : i64} {
  func.func @_decoder_layer_kernel(%arg0: i32, %arg1: memref<1x16x32xf32, #tpu.memory_space<vmem>>, %arg2: memref<1x16x32xf32, #tpu.memory_space<vmem>>, %arg3: memref<1x16x16xf32, #tpu.memory_space<vmem>>, %arg4: memref<1x1x16xf32, #tpu.memory_space<vmem>>, %arg5: memref<32x96xbf16, #tpu.memory_space<vmem>>, %arg6: memref<1x96xf32, #tpu.memory_space<vmem>>, %arg7: memref<32x32xbf16, #tpu.memory_space<vmem>>, %arg8: memref<1x32xf32, #tpu.memory_space<vmem>>, %arg9: memref<1x32xf32, #tpu.memory_space<vmem>>, %arg10: memref<1x32xf32, #tpu.memory_space<vmem>>, %arg11: memref<32x32xbf16, #tpu.memory_space<vmem>>, %arg12: memref<1x32xf32, #tpu.memory_space<vmem>>, %arg13: memref<32x64xbf16, #tpu.memory_space<vmem>>, %arg14: memref<1x64xf32, #tpu.memory_space<vmem>>, %arg15: memref<32x32xbf16, #tpu.memory_space<vmem>>, %arg16: memref<1x32xf32, #tpu.memory_space<vmem>>, %arg17: memref<1x32xf32, #tpu.memory_space<vmem>>, %arg18: memref<1x32xf32, #tpu.memory_space<vmem>>, %arg19: memref<32x2048xbf16, #tpu.memory_space<vmem>>, %arg20: memref<1x2048xf32, #tpu.memory_space<vmem>>, %arg21: memref<2048x32xbf16, #tpu.memory_space<vmem>>, %arg22: memref<1x32xf32, #tpu.memory_space<vmem>>, %arg23: memref<1x32xf32, #tpu.memory_space<vmem>>, %arg24: memref<1x32xf32, #tpu.memory_space<vmem>>, %arg25: memref<1x16x32xf32, #tpu.memory_space<vmem>>) attributes {dimension_semantics = [#tpu.dimension_semantics<parallel>], iteration_bounds = array<i64: 2>, scalar_prefetch = 0 : i64, scratch_operands = 0 : i64, tpu.core_type = #tpu.core_type<tc>, window_params = [{transform_indices = @transform_0, window_bounds = array<i64: 1, 16, 32>}, {transform_indices = @transform_1, window_bounds = array<i64: 1, 16, 32>}, {transform_indices = @transform_2, window_bounds = array<i64: 1, 16, 16>}, {transform_indices = @transform_3, window_bounds = array<i64: 1, 1, 16>}, {pipeline_mode = #tpu.pipeline_mode<synchronous>, transform_indices = @transform_4, window_bounds = array<i64: 32, 96>}, {pipeline_mode = #tpu.pipeline_mode<synchronous>, transform_indices = @transform_5, window_bounds = array<i64: 1, 96>}, {pipeline_mode = #tpu.pipeline_mode<synchronous>, transform_indices = @transform_6, window_bounds = array<i64: 32, 32>}, {pipeline_mode = #tpu.pipeline_mode<synchronous>, transform_indices = @transform_7, window_bounds = array<i64: 1, 32>}, {pipeline_mode = #tpu.pipeline_mode<synchronous>, transform_indices = @transform_8, window_bounds = array<i64: 1, 32>}, {pipeline_mode = #tpu.pipeline_mode<synchronous>, transform_indices = @transform_9, window_bounds = array<i64: 1, 32>}, {pipeline_mode = #tpu.pipeline_mode<synchronous>, transform_indices = @transform_10, window_bounds = array<i64: 32, 32>}, {pipeline_mode = #tpu.pipeline_mode<synchronous>, transform_indices = @transform_11, window_bounds = array<i64: 1, 32>}, {pipeline_mode = #tpu.pipeline_mode<synchronous>, transform_indices = @transform_12, window_bounds = array<i64: 32, 64>}, {pipeline_mode = #tpu.pipeline_mode<synchronous>, transform_indices = @transform_13, window_bounds = array<i64: 1, 64>}, {pipeline_mode = #tpu.pipeline_mode<synchronous>, transform_indices = @transform_14, window_bounds = array<i64: 32, 32>}, {pipeline_mode = #tpu.pipeline_mode<synchronous>, transform_indices = @transform_15, window_bounds = array<i64: 1, 32>}, {pipeline_mode = #tpu.pipeline_mode<synchronous>, transform_indices = @transform_16, window_bounds = array<i64: 1, 32>}, {pipeline_mode = #tpu.pipeline_mode<synchronous>, transform_indices = @transform_17, window_bounds = array<i64: 1, 32>}, {pipeline_mode = #tpu.pipeline_mode<synchronous>, transform_indices = @transform_18, window_bounds = array<i64: 32, 2048>}, {pipeline_mode = #tpu.pipeline_mode<synchronous>, transform_indices = @transform_19, window_bounds = array<i64: 1, 2048>}, {pipeline_mode = #tpu.pipeline_mode<synchronous>, transform_indices = @transform_20, window_bounds = array<i64: 2048, 32>}, {pipeline_mode = #tpu.pipeline_mode<synchronous>, transform_indices = @transform_21, window_bounds = array<i64: 1, 32>}, {pipeline_mode = #tpu.pipeline_mode<synchronous>, transform_indices = @transform_22, window_bounds = array<i64: 1, 32>}, {pipeline_mode = #tpu.pipeline_mode<synchronous>, transform_indices = @transform_23, window_bounds = array<i64: 1, 32>}, {transform_indices = @transform_24, window_bounds = array<i64: 1, 16, 32>}]} {
    %c0 = arith.constant 0 : index
    %c0_0 = arith.constant 0 : index
    %c0_1 = arith.constant 0 : index
    %0 = vector.load %arg1[%c0, %c0_0, %c0_1] : memref<1x16x32xf32, #tpu.memory_space<vmem>>, vector<1x16x32xf32>
    %1 = vector.shape_cast %0 : vector<1x16x32xf32> to vector<16x32xf32>
    %c0_2 = arith.constant 0 : index
    %c0_3 = arith.constant 0 : index
    %c0_4 = arith.constant 0 : index
    %2 = vector.load %arg2[%c0_2, %c0_3, %c0_4] : memref<1x16x32xf32, #tpu.memory_space<vmem>>, vector<1x16x32xf32>
    %3 = vector.shape_cast %2 : vector<1x16x32xf32> to vector<16x32xf32>
    %c0_5 = arith.constant 0 : index
    %c0_6 = arith.constant 0 : index
    %c0_7 = arith.constant 0 : index
    %4 = vector.load %arg3[%c0_5, %c0_6, %c0_7] : memref<1x16x16xf32, #tpu.memory_space<vmem>>, vector<1x16x16xf32>
    %5 = vector.shape_cast %4 : vector<1x16x16xf32> to vector<16x16xf32>
    %c0_8 = arith.constant 0 : index
    %c0_9 = arith.constant 0 : index
    %c0_10 = arith.constant 0 : index
    %6 = vector.load %arg4[%c0_8, %c0_9, %c0_10] : memref<1x1x16xf32, #tpu.memory_space<vmem>>, vector<1x1x16xf32>
    %7 = vector.shape_cast %6 : vector<1x1x16xf32> to vector<1x16xf32>
    %8 = arith.truncf %1 : vector<16x32xf32> to vector<16x32xbf16>
    %c0_11 = arith.constant 0 : index
    %c0_12 = arith.constant 0 : index
    %9 = vector.load %arg5[%c0_11, %c0_12] : memref<32x96xbf16, #tpu.memory_space<vmem>>, vector<32x96xbf16>
    %cst = arith.constant dense<0.000000e+00> : vector<16x96xf32>
    %10 = tpu.matmul %8, %9, %cst {dimension_numbers = #tpu.dot_dimension_numbers<[1], [0], [0], [1], [0, 0, 1, 1], [], []>} : vector<16x32xbf16>, vector<32x96xbf16>, vector<16x96xf32> -> vector<16x96xf32>
    %c0_13 = arith.constant 0 : index
    %c0_14 = arith.constant 0 : index
    %11 = vector.load %arg6[%c0_13, %c0_14] : memref<1x96xf32, #tpu.memory_space<vmem>>, vector<1x96xf32>
    %12 = vector.broadcast %11 : vector<1x96xf32> to vector<16x96xf32>
    %13 = arith.addf %10, %12 : vector<16x96xf32>
    %14 = vector.extract_strided_slice %13 {offsets = [0, 0], sizes = [16, 32], strides = [1, 1]} : vector<16x96xf32> to vector<16x32xf32>
    %15 = arith.truncf %14 : vector<16x32xf32> to vector<16x32xbf16>
    %16 = vector.extract_strided_slice %13 {offsets = [0, 32], sizes = [16, 32], strides = [1, 1]} : vector<16x96xf32> to vector<16x32xf32>
    %17 = arith.truncf %16 : vector<16x32xf32> to vector<16x32xbf16>
    %18 = vector.extract_strided_slice %13 {offsets = [0, 64], sizes = [16, 32], strides = [1, 1]} : vector<16x96xf32> to vector<16x32xf32>
    %19 = arith.truncf %18 : vector<16x32xf32> to vector<16x32xbf16>
    %20 = vector.extract_strided_slice %15 {offsets = [0, 0], sizes = [16, 8], strides = [1, 1]} : vector<16x32xbf16> to vector<16x8xbf16>
    %21 = vector.extract_strided_slice %17 {offsets = [0, 0], sizes = [16, 8], strides = [1, 1]} : vector<16x32xbf16> to vector<16x8xbf16>
    %22 = vector.extract_strided_slice %19 {offsets = [0, 0], sizes = [16, 8], strides = [1, 1]} : vector<16x32xbf16> to vector<16x8xbf16>
    %cst_15 = arith.constant dense<0.000000e+00> : vector<16x16xf32>
    %23 = tpu.matmul %20, %21, %cst_15 {dimension_numbers = #tpu.dot_dimension_numbers<[1], [1], [0], [0], [0, 0, 1, 0], [], []>} : vector<16x8xbf16>, vector<16x8xbf16>, vector<16x16xf32> -> vector<16x16xf32>
    %cst_16 = arith.constant 0.353553385 : f32
    %24 = vector.broadcast %cst_16 : f32 to vector<16x16xf32>
    %25 = arith.mulf %23, %24 : vector<16x16xf32>
    %26 = arith.addf %25, %5 : vector<16x16xf32>
    %cst_17 = arith.constant dense<0xFF800000> : vector<16xf32>
    %27 = vector.multi_reduction <maximumf>, %26, %cst_17 [1] : vector<16x16xf32> to vector<16xf32>
    %28 = vector.shape_cast %27 : vector<16xf32> to vector<16x1xf32>
    %29 = vector.broadcast %28 : vector<16x1xf32> to vector<16x16xf32>
    %30 = arith.subf %26, %29 : vector<16x16xf32>
    %31 = math.exp %30 : vector<16x16xf32>
    %cst_18 = arith.constant dense<0.000000e+00> : vector<16xf32>
    %32 = vector.multi_reduction <add>, %31, %cst_18 [1] : vector<16x16xf32> to vector<16xf32>
    %33 = vector.shape_cast %32 : vector<16xf32> to vector<16x1xf32>
    %34 = tpu.reciprocal %33 {approx = true} : vector<16x1xf32> -> vector<16x1xf32>
    %35 = vector.broadcast %34 : vector<16x1xf32> to vector<16x16xf32>
    %36 = arith.mulf %31, %35 : vector<16x16xf32>
    %37 = arith.truncf %36 : vector<16x16xf32> to vector<16x16xbf16>
    %cst_19 = arith.constant dense<0.000000e+00> : vector<16x8xf32>
    %38 = tpu.matmul %37, %22, %cst_19 {dimension_numbers = #tpu.dot_dimension_numbers<[1], [0], [0], [1], [0, 0, 1, 1], [], []>} : vector<16x16xbf16>, vector<16x8xbf16>, vector<16x8xf32> -> vector<16x8xf32>
    %39 = vector.extract_strided_slice %15 {offsets = [0, 8], sizes = [16, 8], strides = [1, 1]} : vector<16x32xbf16> to vector<16x8xbf16>
    %40 = vector.extract_strided_slice %17 {offsets = [0, 8], sizes = [16, 8], strides = [1, 1]} : vector<16x32xbf16> to vector<16x8xbf16>
    %41 = vector.extract_strided_slice %19 {offsets = [0, 8], sizes = [16, 8], strides = [1, 1]} : vector<16x32xbf16> to vector<16x8xbf16>
    %cst_20 = arith.constant dense<0.000000e+00> : vector<16x16xf32>
    %42 = tpu.matmul %39, %40, %cst_20 {dimension_numbers = #tpu.dot_dimension_numbers<[1], [1], [0], [0], [0, 0, 1, 0], [], []>} : vector<16x8xbf16>, vector<16x8xbf16>, vector<16x16xf32> -> vector<16x16xf32>
    %cst_21 = arith.constant 0.353553385 : f32
    %43 = vector.broadcast %cst_21 : f32 to vector<16x16xf32>
    %44 = arith.mulf %42, %43 : vector<16x16xf32>
    %45 = arith.addf %44, %5 : vector<16x16xf32>
    %cst_22 = arith.constant dense<0xFF800000> : vector<16xf32>
    %46 = vector.multi_reduction <maximumf>, %45, %cst_22 [1] : vector<16x16xf32> to vector<16xf32>
    %47 = vector.shape_cast %46 : vector<16xf32> to vector<16x1xf32>
    %48 = vector.broadcast %47 : vector<16x1xf32> to vector<16x16xf32>
    %49 = arith.subf %45, %48 : vector<16x16xf32>
    %50 = math.exp %49 : vector<16x16xf32>
    %cst_23 = arith.constant dense<0.000000e+00> : vector<16xf32>
    %51 = vector.multi_reduction <add>, %50, %cst_23 [1] : vector<16x16xf32> to vector<16xf32>
    %52 = vector.shape_cast %51 : vector<16xf32> to vector<16x1xf32>
    %53 = tpu.reciprocal %52 {approx = true} : vector<16x1xf32> -> vector<16x1xf32>
    %54 = vector.broadcast %53 : vector<16x1xf32> to vector<16x16xf32>
    %55 = arith.mulf %50, %54 : vector<16x16xf32>
    %56 = arith.truncf %55 : vector<16x16xf32> to vector<16x16xbf16>
    %cst_24 = arith.constant dense<0.000000e+00> : vector<16x8xf32>
    %57 = tpu.matmul %56, %41, %cst_24 {dimension_numbers = #tpu.dot_dimension_numbers<[1], [0], [0], [1], [0, 0, 1, 1], [], []>} : vector<16x16xbf16>, vector<16x8xbf16>, vector<16x8xf32> -> vector<16x8xf32>
    %58 = vector.extract_strided_slice %15 {offsets = [0, 16], sizes = [16, 8], strides = [1, 1]} : vector<16x32xbf16> to vector<16x8xbf16>
    %59 = vector.extract_strided_slice %17 {offsets = [0, 16], sizes = [16, 8], strides = [1, 1]} : vector<16x32xbf16> to vector<16x8xbf16>
    %60 = vector.extract_strided_slice %19 {offsets = [0, 16], sizes = [16, 8], strides = [1, 1]} : vector<16x32xbf16> to vector<16x8xbf16>
    %cst_25 = arith.constant dense<0.000000e+00> : vector<16x16xf32>
    %61 = tpu.matmul %58, %59, %cst_25 {dimension_numbers = #tpu.dot_dimension_numbers<[1], [1], [0], [0], [0, 0, 1, 0], [], []>} : vector<16x8xbf16>, vector<16x8xbf16>, vector<16x16xf32> -> vector<16x16xf32>
    %cst_26 = arith.constant 0.353553385 : f32
    %62 = vector.broadcast %cst_26 : f32 to vector<16x16xf32>
    %63 = arith.mulf %61, %62 : vector<16x16xf32>
    %64 = arith.addf %63, %5 : vector<16x16xf32>
    %cst_27 = arith.constant dense<0xFF800000> : vector<16xf32>
    %65 = vector.multi_reduction <maximumf>, %64, %cst_27 [1] : vector<16x16xf32> to vector<16xf32>
    %66 = vector.shape_cast %65 : vector<16xf32> to vector<16x1xf32>
    %67 = vector.broadcast %66 : vector<16x1xf32> to vector<16x16xf32>
    %68 = arith.subf %64, %67 : vector<16x16xf32>
    %69 = math.exp %68 : vector<16x16xf32>
    %cst_28 = arith.constant dense<0.000000e+00> : vector<16xf32>
    %70 = vector.multi_reduction <add>, %69, %cst_28 [1] : vector<16x16xf32> to vector<16xf32>
    %71 = vector.shape_cast %70 : vector<16xf32> to vector<16x1xf32>
    %72 = tpu.reciprocal %71 {approx = true} : vector<16x1xf32> -> vector<16x1xf32>
    %73 = vector.broadcast %72 : vector<16x1xf32> to vector<16x16xf32>
    %74 = arith.mulf %69, %73 : vector<16x16xf32>
    %75 = arith.truncf %74 : vector<16x16xf32> to vector<16x16xbf16>
    %cst_29 = arith.constant dense<0.000000e+00> : vector<16x8xf32>
    %76 = tpu.matmul %75, %60, %cst_29 {dimension_numbers = #tpu.dot_dimension_numbers<[1], [0], [0], [1], [0, 0, 1, 1], [], []>} : vector<16x16xbf16>, vector<16x8xbf16>, vector<16x8xf32> -> vector<16x8xf32>
    %77 = vector.extract_strided_slice %15 {offsets = [0, 24], sizes = [16, 8], strides = [1, 1]} : vector<16x32xbf16> to vector<16x8xbf16>
    %78 = vector.extract_strided_slice %17 {offsets = [0, 24], sizes = [16, 8], strides = [1, 1]} : vector<16x32xbf16> to vector<16x8xbf16>
    %79 = vector.extract_strided_slice %19 {offsets = [0, 24], sizes = [16, 8], strides = [1, 1]} : vector<16x32xbf16> to vector<16x8xbf16>
    %cst_30 = arith.constant dense<0.000000e+00> : vector<16x16xf32>
    %80 = tpu.matmul %77, %78, %cst_30 {dimension_numbers = #tpu.dot_dimension_numbers<[1], [1], [0], [0], [0, 0, 1, 0], [], []>} : vector<16x8xbf16>, vector<16x8xbf16>, vector<16x16xf32> -> vector<16x16xf32>
    %cst_31 = arith.constant 0.353553385 : f32
    %81 = vector.broadcast %cst_31 : f32 to vector<16x16xf32>
    %82 = arith.mulf %80, %81 : vector<16x16xf32>
    %83 = arith.addf %82, %5 : vector<16x16xf32>
    %cst_32 = arith.constant dense<0xFF800000> : vector<16xf32>
    %84 = vector.multi_reduction <maximumf>, %83, %cst_32 [1] : vector<16x16xf32> to vector<16xf32>
    %85 = vector.shape_cast %84 : vector<16xf32> to vector<16x1xf32>
    %86 = vector.broadcast %85 : vector<16x1xf32> to vector<16x16xf32>
    %87 = arith.subf %83, %86 : vector<16x16xf32>
    %88 = math.exp %87 : vector<16x16xf32>
    %cst_33 = arith.constant dense<0.000000e+00> : vector<16xf32>
    %89 = vector.multi_reduction <add>, %88, %cst_33 [1] : vector<16x16xf32> to vector<16xf32>
    %90 = vector.shape_cast %89 : vector<16xf32> to vector<16x1xf32>
    %91 = tpu.reciprocal %90 {approx = true} : vector<16x1xf32> -> vector<16x1xf32>
    %92 = vector.broadcast %91 : vector<16x1xf32> to vector<16x16xf32>
    %93 = arith.mulf %88, %92 : vector<16x16xf32>
    %94 = arith.truncf %93 : vector<16x16xf32> to vector<16x16xbf16>
    %cst_34 = arith.constant dense<0.000000e+00> : vector<16x8xf32>
    %95 = tpu.matmul %94, %79, %cst_34 {dimension_numbers = #tpu.dot_dimension_numbers<[1], [0], [0], [1], [0, 0, 1, 1], [], []>} : vector<16x16xbf16>, vector<16x8xbf16>, vector<16x8xf32> -> vector<16x8xf32>
    %96 = tpu.concatenate %38, %57, %76, %95 in 1 : vector<16x8xf32>, vector<16x8xf32>, vector<16x8xf32>, vector<16x8xf32> -> vector<16x32xf32>
    %97 = arith.truncf %96 : vector<16x32xf32> to vector<16x32xbf16>
    %c0_35 = arith.constant 0 : index
    %c0_36 = arith.constant 0 : index
    %98 = vector.load %arg7[%c0_35, %c0_36] : memref<32x32xbf16, #tpu.memory_space<vmem>>, vector<32x32xbf16>
    %cst_37 = arith.constant dense<0.000000e+00> : vector<16x32xf32>
    %99 = tpu.matmul %97, %98, %cst_37 {dimension_numbers = #tpu.dot_dimension_numbers<[1], [0], [0], [1], [0, 0, 1, 1], [], []>} : vector<16x32xbf16>, vector<32x32xbf16>, vector<16x32xf32> -> vector<16x32xf32>
    %c0_38 = arith.constant 0 : index
    %c0_39 = arith.constant 0 : index
    %100 = vector.load %arg8[%c0_38, %c0_39] : memref<1x32xf32, #tpu.memory_space<vmem>>, vector<1x32xf32>
    %101 = vector.broadcast %100 : vector<1x32xf32> to vector<16x32xf32>
    %102 = arith.addf %99, %101 : vector<16x32xf32>
    %103 = arith.addf %1, %102 : vector<16x32xf32>
    %c0_40 = arith.constant 0 : index
    %c0_41 = arith.constant 0 : index
    %104 = vector.load %arg9[%c0_40, %c0_41] : memref<1x32xf32, #tpu.memory_space<vmem>>, vector<1x32xf32>
    %c0_42 = arith.constant 0 : index
    %c0_43 = arith.constant 0 : index
    %105 = vector.load %arg10[%c0_42, %c0_43] : memref<1x32xf32, #tpu.memory_space<vmem>>, vector<1x32xf32>
    %cst_44 = arith.constant dense<0.000000e+00> : vector<16xf32>
    %106 = vector.multi_reduction <add>, %103, %cst_44 [1] : vector<16x32xf32> to vector<16xf32>
    %107 = vector.shape_cast %106 : vector<16xf32> to vector<16x1xf32>
    %cst_45 = arith.constant 3.200000e+01 : f32
    %108 = vector.broadcast %cst_45 : f32 to vector<16x1xf32>
    %109 = arith.divf %107, %108 : vector<16x1xf32>
    %110 = vector.broadcast %109 : vector<16x1xf32> to vector<16x32xf32>
    %111 = arith.subf %103, %110 : vector<16x32xf32>
    %112 = arith.mulf %111, %111 : vector<16x32xf32>
    %cst_46 = arith.constant dense<0.000000e+00> : vector<16xf32>
    %113 = vector.multi_reduction <add>, %112, %cst_46 [1] : vector<16x32xf32> to vector<16xf32>
    %114 = vector.shape_cast %113 : vector<16xf32> to vector<16x1xf32>
    %cst_47 = arith.constant 3.200000e+01 : f32
    %115 = vector.broadcast %cst_47 : f32 to vector<16x1xf32>
    %116 = arith.divf %114, %115 : vector<16x1xf32>
    %cst_48 = arith.constant 9.99999974E-6 : f32
    %117 = vector.broadcast %cst_48 : f32 to vector<16x1xf32>
    %118 = arith.addf %116, %117 : vector<16x1xf32>
    %119 = math.rsqrt %118 : vector<16x1xf32>
    %120 = vector.broadcast %119 : vector<16x1xf32> to vector<16x32xf32>
    %121 = arith.mulf %111, %120 : vector<16x32xf32>
    %122 = vector.broadcast %104 : vector<1x32xf32> to vector<16x32xf32>
    %123 = arith.mulf %121, %122 : vector<16x32xf32>
    %124 = vector.broadcast %105 : vector<1x32xf32> to vector<16x32xf32>
    %125 = arith.addf %123, %124 : vector<16x32xf32>
    %126 = arith.truncf %125 : vector<16x32xf32> to vector<16x32xbf16>
    %c0_49 = arith.constant 0 : index
    %c0_50 = arith.constant 0 : index
    %127 = vector.load %arg11[%c0_49, %c0_50] : memref<32x32xbf16, #tpu.memory_space<vmem>>, vector<32x32xbf16>
    %cst_51 = arith.constant dense<0.000000e+00> : vector<16x32xf32>
    %128 = tpu.matmul %126, %127, %cst_51 {dimension_numbers = #tpu.dot_dimension_numbers<[1], [0], [0], [1], [0, 0, 1, 1], [], []>} : vector<16x32xbf16>, vector<32x32xbf16>, vector<16x32xf32> -> vector<16x32xf32>
    %c0_52 = arith.constant 0 : index
    %c0_53 = arith.constant 0 : index
    %129 = vector.load %arg12[%c0_52, %c0_53] : memref<1x32xf32, #tpu.memory_space<vmem>>, vector<1x32xf32>
    %130 = vector.broadcast %129 : vector<1x32xf32> to vector<16x32xf32>
    %131 = arith.addf %128, %130 : vector<16x32xf32>
    %132 = arith.truncf %131 : vector<16x32xf32> to vector<16x32xbf16>
    %133 = arith.truncf %3 : vector<16x32xf32> to vector<16x32xbf16>
    %c0_54 = arith.constant 0 : index
    %c0_55 = arith.constant 0 : index
    %134 = vector.load %arg13[%c0_54, %c0_55] : memref<32x64xbf16, #tpu.memory_space<vmem>>, vector<32x64xbf16>
    %cst_56 = arith.constant dense<0.000000e+00> : vector<16x64xf32>
    %135 = tpu.matmul %133, %134, %cst_56 {dimension_numbers = #tpu.dot_dimension_numbers<[1], [0], [0], [1], [0, 0, 1, 1], [], []>} : vector<16x32xbf16>, vector<32x64xbf16>, vector<16x64xf32> -> vector<16x64xf32>
    %c0_57 = arith.constant 0 : index
    %c0_58 = arith.constant 0 : index
    %136 = vector.load %arg14[%c0_57, %c0_58] : memref<1x64xf32, #tpu.memory_space<vmem>>, vector<1x64xf32>
    %137 = vector.broadcast %136 : vector<1x64xf32> to vector<16x64xf32>
    %138 = arith.addf %135, %137 : vector<16x64xf32>
    %139 = vector.extract_strided_slice %138 {offsets = [0, 0], sizes = [16, 32], strides = [1, 1]} : vector<16x64xf32> to vector<16x32xf32>
    %140 = arith.truncf %139 : vector<16x32xf32> to vector<16x32xbf16>
    %141 = vector.extract_strided_slice %138 {offsets = [0, 32], sizes = [16, 32], strides = [1, 1]} : vector<16x64xf32> to vector<16x32xf32>
    %142 = arith.truncf %141 : vector<16x32xf32> to vector<16x32xbf16>
    %143 = vector.extract_strided_slice %132 {offsets = [0, 0], sizes = [16, 8], strides = [1, 1]} : vector<16x32xbf16> to vector<16x8xbf16>
    %144 = vector.extract_strided_slice %140 {offsets = [0, 0], sizes = [16, 8], strides = [1, 1]} : vector<16x32xbf16> to vector<16x8xbf16>
    %145 = vector.extract_strided_slice %142 {offsets = [0, 0], sizes = [16, 8], strides = [1, 1]} : vector<16x32xbf16> to vector<16x8xbf16>
    %cst_59 = arith.constant dense<0.000000e+00> : vector<16x16xf32>
    %146 = tpu.matmul %143, %144, %cst_59 {dimension_numbers = #tpu.dot_dimension_numbers<[1], [1], [0], [0], [0, 0, 1, 0], [], []>} : vector<16x8xbf16>, vector<16x8xbf16>, vector<16x16xf32> -> vector<16x16xf32>
    %cst_60 = arith.constant 0.353553385 : f32
    %147 = vector.broadcast %cst_60 : f32 to vector<16x16xf32>
    %148 = arith.mulf %146, %147 : vector<16x16xf32>
    %149 = vector.broadcast %7 : vector<1x16xf32> to vector<16x16xf32>
    %150 = arith.addf %148, %149 : vector<16x16xf32>
    %cst_61 = arith.constant dense<0xFF800000> : vector<16xf32>
    %151 = vector.multi_reduction <maximumf>, %150, %cst_61 [1] : vector<16x16xf32> to vector<16xf32>
    %152 = vector.shape_cast %151 : vector<16xf32> to vector<16x1xf32>
    %153 = vector.broadcast %152 : vector<16x1xf32> to vector<16x16xf32>
    %154 = arith.subf %150, %153 : vector<16x16xf32>
    %155 = math.exp %154 : vector<16x16xf32>
    %cst_62 = arith.constant dense<0.000000e+00> : vector<16xf32>
    %156 = vector.multi_reduction <add>, %155, %cst_62 [1] : vector<16x16xf32> to vector<16xf32>
    %157 = vector.shape_cast %156 : vector<16xf32> to vector<16x1xf32>
    %158 = tpu.reciprocal %157 {approx = true} : vector<16x1xf32> -> vector<16x1xf32>
    %159 = vector.broadcast %158 : vector<16x1xf32> to vector<16x16xf32>
    %160 = arith.mulf %155, %159 : vector<16x16xf32>
    %161 = arith.truncf %160 : vector<16x16xf32> to vector<16x16xbf16>
    %cst_63 = arith.constant dense<0.000000e+00> : vector<16x8xf32>
    %162 = tpu.matmul %161, %145, %cst_63 {dimension_numbers = #tpu.dot_dimension_numbers<[1], [0], [0], [1], [0, 0, 1, 1], [], []>} : vector<16x16xbf16>, vector<16x8xbf16>, vector<16x8xf32> -> vector<16x8xf32>
    %163 = vector.extract_strided_slice %132 {offsets = [0, 8], sizes = [16, 8], strides = [1, 1]} : vector<16x32xbf16> to vector<16x8xbf16>
    %164 = vector.extract_strided_slice %140 {offsets = [0, 8], sizes = [16, 8], strides = [1, 1]} : vector<16x32xbf16> to vector<16x8xbf16>
    %165 = vector.extract_strided_slice %142 {offsets = [0, 8], sizes = [16, 8], strides = [1, 1]} : vector<16x32xbf16> to vector<16x8xbf16>
    %cst_64 = arith.constant dense<0.000000e+00> : vector<16x16xf32>
    %166 = tpu.matmul %163, %164, %cst_64 {dimension_numbers = #tpu.dot_dimension_numbers<[1], [1], [0], [0], [0, 0, 1, 0], [], []>} : vector<16x8xbf16>, vector<16x8xbf16>, vector<16x16xf32> -> vector<16x16xf32>
    %cst_65 = arith.constant 0.353553385 : f32
    %167 = vector.broadcast %cst_65 : f32 to vector<16x16xf32>
    %168 = arith.mulf %166, %167 : vector<16x16xf32>
    %169 = vector.broadcast %7 : vector<1x16xf32> to vector<16x16xf32>
    %170 = arith.addf %168, %169 : vector<16x16xf32>
    %cst_66 = arith.constant dense<0xFF800000> : vector<16xf32>
    %171 = vector.multi_reduction <maximumf>, %170, %cst_66 [1] : vector<16x16xf32> to vector<16xf32>
    %172 = vector.shape_cast %171 : vector<16xf32> to vector<16x1xf32>
    %173 = vector.broadcast %172 : vector<16x1xf32> to vector<16x16xf32>
    %174 = arith.subf %170, %173 : vector<16x16xf32>
    %175 = math.exp %174 : vector<16x16xf32>
    %cst_67 = arith.constant dense<0.000000e+00> : vector<16xf32>
    %176 = vector.multi_reduction <add>, %175, %cst_67 [1] : vector<16x16xf32> to vector<16xf32>
    %177 = vector.shape_cast %176 : vector<16xf32> to vector<16x1xf32>
    %178 = tpu.reciprocal %177 {approx = true} : vector<16x1xf32> -> vector<16x1xf32>
    %179 = vector.broadcast %178 : vector<16x1xf32> to vector<16x16xf32>
    %180 = arith.mulf %175, %179 : vector<16x16xf32>
    %181 = arith.truncf %180 : vector<16x16xf32> to vector<16x16xbf16>
    %cst_68 = arith.constant dense<0.000000e+00> : vector<16x8xf32>
    %182 = tpu.matmul %181, %165, %cst_68 {dimension_numbers = #tpu.dot_dimension_numbers<[1], [0], [0], [1], [0, 0, 1, 1], [], []>} : vector<16x16xbf16>, vector<16x8xbf16>, vector<16x8xf32> -> vector<16x8xf32>
    %183 = vector.extract_strided_slice %132 {offsets = [0, 16], sizes = [16, 8], strides = [1, 1]} : vector<16x32xbf16> to vector<16x8xbf16>
    %184 = vector.extract_strided_slice %140 {offsets = [0, 16], sizes = [16, 8], strides = [1, 1]} : vector<16x32xbf16> to vector<16x8xbf16>
    %185 = vector.extract_strided_slice %142 {offsets = [0, 16], sizes = [16, 8], strides = [1, 1]} : vector<16x32xbf16> to vector<16x8xbf16>
    %cst_69 = arith.constant dense<0.000000e+00> : vector<16x16xf32>
    %186 = tpu.matmul %183, %184, %cst_69 {dimension_numbers = #tpu.dot_dimension_numbers<[1], [1], [0], [0], [0, 0, 1, 0], [], []>} : vector<16x8xbf16>, vector<16x8xbf16>, vector<16x16xf32> -> vector<16x16xf32>
    %cst_70 = arith.constant 0.353553385 : f32
    %187 = vector.broadcast %cst_70 : f32 to vector<16x16xf32>
    %188 = arith.mulf %186, %187 : vector<16x16xf32>
    %189 = vector.broadcast %7 : vector<1x16xf32> to vector<16x16xf32>
    %190 = arith.addf %188, %189 : vector<16x16xf32>
    %cst_71 = arith.constant dense<0xFF800000> : vector<16xf32>
    %191 = vector.multi_reduction <maximumf>, %190, %cst_71 [1] : vector<16x16xf32> to vector<16xf32>
    %192 = vector.shape_cast %191 : vector<16xf32> to vector<16x1xf32>
    %193 = vector.broadcast %192 : vector<16x1xf32> to vector<16x16xf32>
    %194 = arith.subf %190, %193 : vector<16x16xf32>
    %195 = math.exp %194 : vector<16x16xf32>
    %cst_72 = arith.constant dense<0.000000e+00> : vector<16xf32>
    %196 = vector.multi_reduction <add>, %195, %cst_72 [1] : vector<16x16xf32> to vector<16xf32>
    %197 = vector.shape_cast %196 : vector<16xf32> to vector<16x1xf32>
    %198 = tpu.reciprocal %197 {approx = true} : vector<16x1xf32> -> vector<16x1xf32>
    %199 = vector.broadcast %198 : vector<16x1xf32> to vector<16x16xf32>
    %200 = arith.mulf %195, %199 : vector<16x16xf32>
    %201 = arith.truncf %200 : vector<16x16xf32> to vector<16x16xbf16>
    %cst_73 = arith.constant dense<0.000000e+00> : vector<16x8xf32>
    %202 = tpu.matmul %201, %185, %cst_73 {dimension_numbers = #tpu.dot_dimension_numbers<[1], [0], [0], [1], [0, 0, 1, 1], [], []>} : vector<16x16xbf16>, vector<16x8xbf16>, vector<16x8xf32> -> vector<16x8xf32>
    %203 = vector.extract_strided_slice %132 {offsets = [0, 24], sizes = [16, 8], strides = [1, 1]} : vector<16x32xbf16> to vector<16x8xbf16>
    %204 = vector.extract_strided_slice %140 {offsets = [0, 24], sizes = [16, 8], strides = [1, 1]} : vector<16x32xbf16> to vector<16x8xbf16>
    %205 = vector.extract_strided_slice %142 {offsets = [0, 24], sizes = [16, 8], strides = [1, 1]} : vector<16x32xbf16> to vector<16x8xbf16>
    %cst_74 = arith.constant dense<0.000000e+00> : vector<16x16xf32>
    %206 = tpu.matmul %203, %204, %cst_74 {dimension_numbers = #tpu.dot_dimension_numbers<[1], [1], [0], [0], [0, 0, 1, 0], [], []>} : vector<16x8xbf16>, vector<16x8xbf16>, vector<16x16xf32> -> vector<16x16xf32>
    %cst_75 = arith.constant 0.353553385 : f32
    %207 = vector.broadcast %cst_75 : f32 to vector<16x16xf32>
    %208 = arith.mulf %206, %207 : vector<16x16xf32>
    %209 = vector.broadcast %7 : vector<1x16xf32> to vector<16x16xf32>
    %210 = arith.addf %208, %209 : vector<16x16xf32>
    %cst_76 = arith.constant dense<0xFF800000> : vector<16xf32>
    %211 = vector.multi_reduction <maximumf>, %210, %cst_76 [1] : vector<16x16xf32> to vector<16xf32>
    %212 = vector.shape_cast %211 : vector<16xf32> to vector<16x1xf32>
    %213 = vector.broadcast %212 : vector<16x1xf32> to vector<16x16xf32>
    %214 = arith.subf %210, %213 : vector<16x16xf32>
    %215 = math.exp %214 : vector<16x16xf32>
    %cst_77 = arith.constant dense<0.000000e+00> : vector<16xf32>
    %216 = vector.multi_reduction <add>, %215, %cst_77 [1] : vector<16x16xf32> to vector<16xf32>
    %217 = vector.shape_cast %216 : vector<16xf32> to vector<16x1xf32>
    %218 = tpu.reciprocal %217 {approx = true} : vector<16x1xf32> -> vector<16x1xf32>
    %219 = vector.broadcast %218 : vector<16x1xf32> to vector<16x16xf32>
    %220 = arith.mulf %215, %219 : vector<16x16xf32>
    %221 = arith.truncf %220 : vector<16x16xf32> to vector<16x16xbf16>
    %cst_78 = arith.constant dense<0.000000e+00> : vector<16x8xf32>
    %222 = tpu.matmul %221, %205, %cst_78 {dimension_numbers = #tpu.dot_dimension_numbers<[1], [0], [0], [1], [0, 0, 1, 1], [], []>} : vector<16x16xbf16>, vector<16x8xbf16>, vector<16x8xf32> -> vector<16x8xf32>
    %223 = tpu.concatenate %162, %182, %202, %222 in 1 : vector<16x8xf32>, vector<16x8xf32>, vector<16x8xf32>, vector<16x8xf32> -> vector<16x32xf32>
    %224 = arith.truncf %223 : vector<16x32xf32> to vector<16x32xbf16>
    %c0_79 = arith.constant 0 : index
    %c0_80 = arith.constant 0 : index
    %225 = vector.load %arg15[%c0_79, %c0_80] : memref<32x32xbf16, #tpu.memory_space<vmem>>, vector<32x32xbf16>
    %cst_81 = arith.constant dense<0.000000e+00> : vector<16x32xf32>
    %226 = tpu.matmul %224, %225, %cst_81 {dimension_numbers = #tpu.dot_dimension_numbers<[1], [0], [0], [1], [0, 0, 1, 1], [], []>} : vector<16x32xbf16>, vector<32x32xbf16>, vector<16x32xf32> -> vector<16x32xf32>
    %c0_82 = arith.constant 0 : index
    %c0_83 = arith.constant 0 : index
    %227 = vector.load %arg16[%c0_82, %c0_83] : memref<1x32xf32, #tpu.memory_space<vmem>>, vector<1x32xf32>
    %228 = vector.broadcast %227 : vector<1x32xf32> to vector<16x32xf32>
    %229 = arith.addf %226, %228 : vector<16x32xf32>
    %230 = arith.addf %125, %229 : vector<16x32xf32>
    %c0_84 = arith.constant 0 : index
    %c0_85 = arith.constant 0 : index
    %231 = vector.load %arg17[%c0_84, %c0_85] : memref<1x32xf32, #tpu.memory_space<vmem>>, vector<1x32xf32>
    %c0_86 = arith.constant 0 : index
    %c0_87 = arith.constant 0 : index
    %232 = vector.load %arg18[%c0_86, %c0_87] : memref<1x32xf32, #tpu.memory_space<vmem>>, vector<1x32xf32>
    %cst_88 = arith.constant dense<0.000000e+00> : vector<16xf32>
    %233 = vector.multi_reduction <add>, %230, %cst_88 [1] : vector<16x32xf32> to vector<16xf32>
    %234 = vector.shape_cast %233 : vector<16xf32> to vector<16x1xf32>
    %cst_89 = arith.constant 3.200000e+01 : f32
    %235 = vector.broadcast %cst_89 : f32 to vector<16x1xf32>
    %236 = arith.divf %234, %235 : vector<16x1xf32>
    %237 = vector.broadcast %236 : vector<16x1xf32> to vector<16x32xf32>
    %238 = arith.subf %230, %237 : vector<16x32xf32>
    %239 = arith.mulf %238, %238 : vector<16x32xf32>
    %cst_90 = arith.constant dense<0.000000e+00> : vector<16xf32>
    %240 = vector.multi_reduction <add>, %239, %cst_90 [1] : vector<16x32xf32> to vector<16xf32>
    %241 = vector.shape_cast %240 : vector<16xf32> to vector<16x1xf32>
    %cst_91 = arith.constant 3.200000e+01 : f32
    %242 = vector.broadcast %cst_91 : f32 to vector<16x1xf32>
    %243 = arith.divf %241, %242 : vector<16x1xf32>
    %cst_92 = arith.constant 9.99999974E-6 : f32
    %244 = vector.broadcast %cst_92 : f32 to vector<16x1xf32>
    %245 = arith.addf %243, %244 : vector<16x1xf32>
    %246 = math.rsqrt %245 : vector<16x1xf32>
    %247 = vector.broadcast %246 : vector<16x1xf32> to vector<16x32xf32>
    %248 = arith.mulf %238, %247 : vector<16x32xf32>
    %249 = vector.broadcast %231 : vector<1x32xf32> to vector<16x32xf32>
    %250 = arith.mulf %248, %249 : vector<16x32xf32>
    %251 = vector.broadcast %232 : vector<1x32xf32> to vector<16x32xf32>
    %252 = arith.addf %250, %251 : vector<16x32xf32>
    %253 = arith.truncf %252 : vector<16x32xf32> to vector<16x32xbf16>
    %c0_93 = arith.constant 0 : index
    %c0_94 = arith.constant 0 : index
    %254 = vector.load %arg19[%c0_93, %c0_94] : memref<32x2048xbf16, #tpu.memory_space<vmem>>, vector<32x2048xbf16>
    %cst_95 = arith.constant dense<0.000000e+00> : vector<16x2048xf32>
    %255 = tpu.matmul %253, %254, %cst_95 {dimension_numbers = #tpu.dot_dimension_numbers<[1], [0], [0], [1], [0, 0, 1, 1], [], []>} : vector<16x32xbf16>, vector<32x2048xbf16>, vector<16x2048xf32> -> vector<16x2048xf32>
    %c0_96 = arith.constant 0 : index
    %c0_97 = arith.constant 0 : index
    %256 = vector.load %arg20[%c0_96, %c0_97] : memref<1x2048xf32, #tpu.memory_space<vmem>>, vector<1x2048xf32>
    %257 = vector.broadcast %256 : vector<1x2048xf32> to vector<16x2048xf32>
    %258 = arith.addf %255, %257 : vector<16x2048xf32>
    %cst_98 = arith.constant 0.000000e+00 : f32
    %259 = vector.broadcast %cst_98 : f32 to vector<16x2048xf32>
    %260 = arith.maximumf %258, %259 : vector<16x2048xf32>
    %261 = arith.truncf %260 : vector<16x2048xf32> to vector<16x2048xbf16>
    %c0_99 = arith.constant 0 : index
    %c0_100 = arith.constant 0 : index
    %262 = vector.load %arg21[%c0_99, %c0_100] : memref<2048x32xbf16, #tpu.memory_space<vmem>>, vector<2048x32xbf16>
    %cst_101 = arith.constant dense<0.000000e+00> : vector<16x32xf32>
    %263 = tpu.matmul %261, %262, %cst_101 {dimension_numbers = #tpu.dot_dimension_numbers<[1], [0], [0], [1], [0, 0, 1, 1], [], []>} : vector<16x2048xbf16>, vector<2048x32xbf16>, vector<16x32xf32> -> vector<16x32xf32>
    %c0_102 = arith.constant 0 : index
    %c0_103 = arith.constant 0 : index
    %264 = vector.load %arg22[%c0_102, %c0_103] : memref<1x32xf32, #tpu.memory_space<vmem>>, vector<1x32xf32>
    %265 = vector.broadcast %264 : vector<1x32xf32> to vector<16x32xf32>
    %266 = arith.addf %263, %265 : vector<16x32xf32>
    %267 = arith.addf %252, %266 : vector<16x32xf32>
    %c0_104 = arith.constant 0 : index
    %c0_105 = arith.constant 0 : index
    %268 = vector.load %arg23[%c0_104, %c0_105] : memref<1x32xf32, #tpu.memory_space<vmem>>, vector<1x32xf32>
    %c0_106 = arith.constant 0 : index
    %c0_107 = arith.constant 0 : index
    %269 = vector.load %arg24[%c0_106, %c0_107] : memref<1x32xf32, #tpu.memory_space<vmem>>, vector<1x32xf32>
    %cst_108 = arith.constant dense<0.000000e+00> : vector<16xf32>
    %270 = vector.multi_reduction <add>, %267, %cst_108 [1] : vector<16x32xf32> to vector<16xf32>
    %271 = vector.shape_cast %270 : vector<16xf32> to vector<16x1xf32>
    %cst_109 = arith.constant 3.200000e+01 : f32
    %272 = vector.broadcast %cst_109 : f32 to vector<16x1xf32>
    %273 = arith.divf %271, %272 : vector<16x1xf32>
    %274 = vector.broadcast %273 : vector<16x1xf32> to vector<16x32xf32>
    %275 = arith.subf %267, %274 : vector<16x32xf32>
    %276 = arith.mulf %275, %275 : vector<16x32xf32>
    %cst_110 = arith.constant dense<0.000000e+00> : vector<16xf32>
    %277 = vector.multi_reduction <add>, %276, %cst_110 [1] : vector<16x32xf32> to vector<16xf32>
    %278 = vector.shape_cast %277 : vector<16xf32> to vector<16x1xf32>
    %cst_111 = arith.constant 3.200000e+01 : f32
    %279 = vector.broadcast %cst_111 : f32 to vector<16x1xf32>
    %280 = arith.divf %278, %279 : vector<16x1xf32>
    %cst_112 = arith.constant 9.99999974E-6 : f32
    %281 = vector.broadcast %cst_112 : f32 to vector<16x1xf32>
    %282 = arith.addf %280, %281 : vector<16x1xf32>
    %283 = math.rsqrt %282 : vector<16x1xf32>
    %284 = vector.broadcast %283 : vector<16x1xf32> to vector<16x32xf32>
    %285 = arith.mulf %275, %284 : vector<16x32xf32>
    %286 = vector.broadcast %268 : vector<1x32xf32> to vector<16x32xf32>
    %287 = arith.mulf %285, %286 : vector<16x32xf32>
    %288 = vector.broadcast %269 : vector<1x32xf32> to vector<16x32xf32>
    %289 = arith.addf %287, %288 : vector<16x32xf32>
    %c0_113 = arith.constant 0 : index
    %c0_114 = arith.constant 0 : index
    %c0_115 = arith.constant 0 : index
    %290 = vector.load %arg25[%c0_113, %c0_114, %c0_115] : memref<1x16x32xf32, #tpu.memory_space<vmem>>, vector<1x16x32xf32>
    %291 = vector.shape_cast %290 : vector<1x16x32xf32> to vector<16x32xf32>
    %292 = vector.shape_cast %289 : vector<16x32xf32> to vector<1x16x32xf32>
    tpu.vector_store %arg25[%c0_113, %c0_114, %c0_115], %292 {strides = array<i32>} : memref<1x16x32xf32, #tpu.memory_space<vmem>>, vector<1x16x32xf32>,
    return
  }
  func.func @transform_0(%arg0: i32) -> (i32, i32, i32) {
    %c0_i32 = arith.constant 0 : i32
    %c0_i32_0 = arith.constant 0 : i32
    %c0_i32_1 = arith.constant 0 : i32
    return %arg0, %c0_i32, %c0_i32_0 : i32, i32, i32
  }
  func.func @transform_1(%arg0: i32) -> (i32, i32, i32) {
    %c0_i32 = arith.constant 0 : i32
    %c0_i32_0 = arith.constant 0 : i32
    %c0_i32_1 = arith.constant 0 : i32
    return %arg0, %c0_i32, %c0_i32_0 : i32, i32, i32
  }
  func.func @transform_2(%arg0: i32) -> (i32, i32, i32) {
    %c0_i32 = arith.constant 0 : i32
    %c0_i32_0 = arith.constant 0 : i32
    %c0_i32_1 = arith.constant 0 : i32
    return %arg0, %c0_i32, %c0_i32_0 : i32, i32, i32
  }
  func.func @transform_3(%arg0: i32) -> (i32, i32, i32) {
    %c0_i32 = arith.constant 0 : i32
    %c0_i32_0 = arith.constant 0 : i32
    %c0_i32_1 = arith.constant 0 : i32
    return %arg0, %c0_i32, %c0_i32_0 : i32, i32, i32
  }
  func.func @transform_4(%arg0: i32) -> (i32, i32) {
    %c0_i32 = arith.constant 0 : i32
    %c0_i32_0 = arith.constant 0 : i32
    %c0_i32_1 = arith.constant 0 : i32
    return %c0_i32, %c0_i32_0 : i32, i32
  }
  func.func @transform_5(%arg0: i32) -> (i32, i32) {
    %c0_i32 = arith.constant 0 : i32
    %c0_i32_0 = arith.constant 0 : i32
    %c0_i32_1 = arith.constant 0 : i32
    return %c0_i32, %c0_i32_0 : i32, i32
  }
  func.func @transform_6(%arg0: i32) -> (i32, i32) {
    %c0_i32 = arith.constant 0 : i32
    %c0_i32_0 = arith.constant 0 : i32
    %c0_i32_1 = arith.constant 0 : i32
    return %c0_i32, %c0_i32_0 : i32, i32
  }
  func.func @transform_7(%arg0: i32) -> (i32, i32) {
    %c0_i32 = arith.constant 0 : i32
    %c0_i32_0 = arith.constant 0 : i32
    %c0_i32_1 = arith.constant 0 : i32
    return %c0_i32, %c0_i32_0 : i32, i32
  }
  func.func @transform_8(%arg0: i32) -> (i32, i32) {
    %c0_i32 = arith.constant 0 : i32
    %c0_i32_0 = arith.constant 0 : i32
    %c0_i32_1 = arith.constant 0 : i32
    return %c0_i32, %c0_i32_0 : i32, i32
  }
  func.func @transform_9(%arg0: i32) -> (i32, i32) {
    %c0_i32 = arith.constant 0 : i32
    %c0_i32_0 = arith.constant 0 : i32
    %c0_i32_1 = arith.constant 0 : i32
    return %c0_i32, %c0_i32_0 : i32, i32
  }
  func.func @transform_10(%arg0: i32) -> (i32, i32) {
    %c0_i32 = arith.constant 0 : i32
    %c0_i32_0 = arith.constant 0 : i32
    %c0_i32_1 = arith.constant 0 : i32
    return %c0_i32, %c0_i32_0 : i32, i32
  }
  func.func @transform_11(%arg0: i32) -> (i32, i32) {
    %c0_i32 = arith.constant 0 : i32
    %c0_i32_0 = arith.constant 0 : i32
    %c0_i32_1 = arith.constant 0 : i32
    return %c0_i32, %c0_i32_0 : i32, i32
  }
  func.func @transform_12(%arg0: i32) -> (i32, i32) {
    %c0_i32 = arith.constant 0 : i32
    %c0_i32_0 = arith.constant 0 : i32
    %c0_i32_1 = arith.constant 0 : i32
    return %c0_i32, %c0_i32_0 : i32, i32
  }
  func.func @transform_13(%arg0: i32) -> (i32, i32) {
    %c0_i32 = arith.constant 0 : i32
    %c0_i32_0 = arith.constant 0 : i32
    %c0_i32_1 = arith.constant 0 : i32
    return %c0_i32, %c0_i32_0 : i32, i32
  }
  func.func @transform_14(%arg0: i32) -> (i32, i32) {
    %c0_i32 = arith.constant 0 : i32
    %c0_i32_0 = arith.constant 0 : i32
    %c0_i32_1 = arith.constant 0 : i32
    return %c0_i32, %c0_i32_0 : i32, i32
  }
  func.func @transform_15(%arg0: i32) -> (i32, i32) {
    %c0_i32 = arith.constant 0 : i32
    %c0_i32_0 = arith.constant 0 : i32
    %c0_i32_1 = arith.constant 0 : i32
    return %c0_i32, %c0_i32_0 : i32, i32
  }
  func.func @transform_16(%arg0: i32) -> (i32, i32) {
    %c0_i32 = arith.constant 0 : i32
    %c0_i32_0 = arith.constant 0 : i32
    %c0_i32_1 = arith.constant 0 : i32
    return %c0_i32, %c0_i32_0 : i32, i32
  }
  func.func @transform_17(%arg0: i32) -> (i32, i32) {
    %c0_i32 = arith.constant 0 : i32
    %c0_i32_0 = arith.constant 0 : i32
    %c0_i32_1 = arith.constant 0 : i32
    return %c0_i32, %c0_i32_0 : i32, i32
  }
  func.func @transform_18(%arg0: i32) -> (i32, i32) {
    %c0_i32 = arith.constant 0 : i32
    %c0_i32_0 = arith.constant 0 : i32
    %c0_i32_1 = arith.constant 0 : i32
    return %c0_i32, %c0_i32_0 : i32, i32
  }
  func.func @transform_19(%arg0: i32) -> (i32, i32) {
    %c0_i32 = arith.constant 0 : i32
    %c0_i32_0 = arith.constant 0 : i32
    %c0_i32_1 = arith.constant 0 : i32
    return %c0_i32, %c0_i32_0 : i32, i32
  }
  func.func @transform_20(%arg0: i32) -> (i32, i32) {
    %c0_i32 = arith.constant 0 : i32
    %c0_i32_0 = arith.constant 0 : i32
    %c0_i32_1 = arith.constant 0 : i32
    return %c0_i32, %c0_i32_0 : i32, i32
  }
  func.func @transform_21(%arg0: i32) -> (i32, i32) {
    %c0_i32 = arith.constant 0 : i32
    %c0_i32_0 = arith.constant 0 : i32
    %c0_i32_1 = arith.constant 0 : i32
    return %c0_i32, %c0_i32_0 : i32, i32
  }
  func.func @transform_22(%arg0: i32) -> (i32, i32) {
    %c0_i32 = arith.constant 0 : i32
    %c0_i32_0 = arith.constant 0 : i32
    %c0_i32_1 = arith.constant 0 : i32
    return %c0_i32, %c0_i32_0 : i32, i32
  }
  func.func @transform_23(%arg0: i32) -> (i32, i32) {
    %c0_i32 = arith.constant 0 : i32
    %c0_i32_0 = arith.constant 0 : i32
    %c0_i32_1 = arith.constant 0 : i32
    return %c0_i32, %c0_i32_0 : i32, i32
  }
  func.func @transform_24(%arg0: i32) -> (i32, i32, i32) {
    %c0_i32 = arith.constant 0 : i32
    %c0_i32_0 = arith.constant 0 : i32
    %c0_i32_1 = arith.constant 0 : i32
    return %arg0, %c0_i32, %c0_i32_0 : i32, i32, i32
  }
}

module attributes {stable_mosaic.version = 11 : i64} {
  func.func @_linear_kernel(%arg0: i32, %arg1: i32, %arg2: memref<32x32xbf16, #tpu.memory_space<vmem>>, %arg3: memref<32x256xbf16, #tpu.memory_space<vmem>>, %arg4: memref<1x256xf32, #tpu.memory_space<vmem>>, %arg5: memref<32x256xf32, #tpu.memory_space<vmem>>) attributes {dimension_semantics = [#tpu.dimension_semantics<parallel>, #tpu.dimension_semantics<parallel>], iteration_bounds = array<i64: 1, 2>, scalar_prefetch = 0 : i64, scratch_operands = 0 : i64, tpu.core_type = #tpu.core_type<tc>, window_params = [{transform_indices = @transform_0, window_bounds = array<i64: 32, 32>}, {transform_indices = @transform_1, window_bounds = array<i64: 32, 256>}, {transform_indices = @transform_2, window_bounds = array<i64: 1, 256>}, {transform_indices = @transform_3, window_bounds = array<i64: 32, 256>}]} {
    %c0 = arith.constant 0 : index
    %c0_0 = arith.constant 0 : index
    %0 = vector.load %arg2[%c0, %c0_0] : memref<32x32xbf16, #tpu.memory_space<vmem>>, vector<32x32xbf16>
    %c0_1 = arith.constant 0 : index
    %c0_2 = arith.constant 0 : index
    %1 = vector.load %arg3[%c0_1, %c0_2] : memref<32x256xbf16, #tpu.memory_space<vmem>>, vector<32x256xbf16>
    %cst = arith.constant dense<0.000000e+00> : vector<32x256xf32>
    %2 = tpu.matmul %0, %1, %cst {dimension_numbers = #tpu.dot_dimension_numbers<[1], [0], [0], [1], [0, 0, 1, 1], [], []>} : vector<32x32xbf16>, vector<32x256xbf16>, vector<32x256xf32> -> vector<32x256xf32>
    %c0_3 = arith.constant 0 : index
    %c0_4 = arith.constant 0 : index
    %3 = vector.load %arg4[%c0_3, %c0_4] : memref<1x256xf32, #tpu.memory_space<vmem>>, vector<1x256xf32>
    %4 = vector.broadcast %3 : vector<1x256xf32> to vector<32x256xf32>
    %5 = arith.addf %2, %4 : vector<32x256xf32>
    %c0_5 = arith.constant 0 : index
    %c0_6 = arith.constant 0 : index
    %6 = vector.load %arg5[%c0_5, %c0_6] : memref<32x256xf32, #tpu.memory_space<vmem>>, vector<32x256xf32>
    tpu.vector_store %arg5[%c0_5, %c0_6], %5 {strides = array<i32>} : memref<32x256xf32, #tpu.memory_space<vmem>>, vector<32x256xf32>,
    return
  }
  func.func @transform_0(%arg0: i32, %arg1: i32) -> (i32, i32) {
    %c0_i32 = arith.constant 0 : i32
    %c0_i32_0 = arith.constant 0 : i32
    return %arg0, %c0_i32 : i32, i32
  }
  func.func @transform_1(%arg0: i32, %arg1: i32) -> (i32, i32) {
    %c0_i32 = arith.constant 0 : i32
    %c0_i32_0 = arith.constant 0 : i32
    return %c0_i32, %arg1 : i32, i32
  }
  func.func @transform_2(%arg0: i32, %arg1: i32) -> (i32, i32) {
    %c0_i32 = arith.constant 0 : i32
    %c0_i32_0 = arith.constant 0 : i32
    return %c0_i32, %arg1 : i32, i32
  }
  func.func @transform_3(%arg0: i32, %arg1: i32) -> (i32, i32) {
    %c0_i32 = arith.constant 0 : i32
    return %arg0, %arg1 : i32, i32
  }
}

</mosaic_0001>

<bundles_post_ra>
// kernel: encoder_transformer_forward.5
= control target key start
LH: loop header
LB: loop body
LE: loop exit
PB: predicated region body
PF: predicated region fallthrough
CT: control target
= control target key end

     0   :  { %s666_s12 = smov 0   ;;  %s668_s13 = smov 0   ;;  %s770_s0 = inlined_call_operand.vmem [shape: bf16[32,32], index: 0, kind: input, shape index: {}]   ;;  %s771_s1 = inlined_call_operand.vmem [shape: bf16[32,512], index: 1, kind: input, shape index: {}]   ;;  %s772_s2 = inlined_call_operand.vmem [shape: f32[1,512], index: 2, kind: input, shape index: {}]   ;;  %s773_s3 = inlined_call_operand.vmem [shape: f32[32,512], index: 3, kind: output, shape index: {}]  }
   0x1   :  { %s670_s14 = smov 0   ;;  %s672_s15 = smov 0  }
   0x2   :  { %s674_s16 = smov 0  }
   0x3 LB: > { %s22_s17 = sadd.s32 1, %s639_s15  ;;  %s525_s18 = sadd.s32 4294967295, %s643_s16   ;;  %s643_s16 = sphi %s674_s16, %s13_s16   ;;  %s639_s15 = sphi %s672_s15, %s778_s15   ;;  %s635_s14 = sphi %s670_s14, %s777_s14   ;;  %s631_s13 = sphi %s668_s13, %s776_s13   ;;  %s627_s12 = sphi %s666_s12, %s775_s12  }
   0x4   : > { %p23_p0 = scmp.ge.s32.totalorder %s22_s17, 2  ;;  %p65_p1 = scmp.ne.s32.totalorder %s631_s13, %s627_s12 }
   0x5   : > { %p66_p2 = scmp.eq.s32.totalorder %s643_s16, 0  ;;  %p123_p4 = scmp.eq.s32.totalorder %s525_s18, 1 }
   0x6   : > { %s780_s17 = smov (%p23_p0, %s22_s17), 0  ;;  %s58_s20 = sadd.s32 1, %s631_s13 }
   0x7   : > { %p67_p3 = por %p66_p2, %p65_p1  ;;  %s55_s19 = ssub.s32 %s639_s15, %s780_s17 }
   0x8   : > { %p56_p5 = scmp.eq.s32.totalorder %s55_s19, 0  ;;  %p701_p6 = por %p123_p4, %p65_p1 }
   0x9   : > { %p529_p7 = scmp.ge.s32.totalorder %s643_s16, 2 }
   0xa   : > { %s706_s22 = scalar_select %p56_p5, %s631_s13, %s58_s20  }
   0xb   : > { %154 = sbr.rel (%p529_p7) target bundleno = 25 (0x19), region = 20 }
  0x12   : > { %157 = sbr.rel (!%p67_p3) target bundleno = 25 (0x19), region = 24  ;;  %s159_s23 = sand.u32 (%p67_p3), 1, %s631_s13  }
  0x13   : > { %s550_s24 = sshll.u32 (%p67_p3), %s639_s15, 3  ;;  %s530_s25 = sshll.u32 (%p67_p3), %s159_s23, 5 }
  0x14   : > { %s164_s28 = scalar_lea.vmem (%p67_p3), %s771_s1, %s550_s24  ;;  %s161_s29 = scalar_lea.vmem (%p67_p3), [#allocation2], %s530_s25 }
  0x15   : > { %v198_v0 = vld [vmem:[%s164_s28] sm:$0xff] (%p67_p3)  ;;  %v200_v1 = vld [vmem:[%s164_s28 + $0x10] sm:$0xff] (%p67_p3) }
  0x16   : > { %v202_v2 = vld [vmem:[%s164_s28 + $0x20] sm:$0xff] (%p67_p3)  ;;  %199 = vst [vmem:[%s161_s29] sm:$0xff] (%p67_p3), %v198_v0  ;;  %201 = vst [vmem:[%s161_s29 + $0x8] sm:$0xff] (%p67_p3), %v200_v1  ;;  %v204_v3 = vld [vmem:[%s164_s28 + $0x30] sm:$0xff] (%p67_p3) }
  0x17   : > { %203 = vst [vmem:[%s161_s29 + $0x10] sm:$0xff] (%p67_p3), %v202_v2  ;;  %205 = vst [vmem:[%s161_s29 + $0x18] sm:$0xff] (%p67_p3), %v204_v3 }
  0x19 PF: > { %p533_p8 = scmp.ge.s32.totalorder %s643_s16, 1  ;;  %p218_p9 = scmp.lt.s32.totalorder %s643_s16, 3 }
  0x1b   : > { %p219_p10 = pnand %p533_p8, %p218_p9 }
  0x1c   : > { %s225_s30 = sand.u32 (!%p219_p10), 1, %s627_s12   ;;  %v645_v4 = vmov (!%p219_p10), 0   ;;  %v603_v9 = vld [vmem:[%s770_s0] sm:$0xff] (!%p219_p10)   ;;  %v604_v10 = vld [vmem:[%s770_s0 + $0x8] sm:$0xff] (!%p219_p10)   ;;  %vm321_vm0 = vcmask (!%p219_p10), 261120   ;;  %s536_s10 = sshll.u32 (!%p219_p10), %s635_s14, 1  ;;  %v281_v11 = vlaneseq (!%p219_p10) }
  0x1d   : > { %222 = sbr.rel (%p219_p10) target bundleno = 267 (0x10b), region = 66  ;;  %s534_s4 = sshll.u32 (!%p219_p10), %s225_s30, 5  ;;  %360 = vmatprep.mubr.bf16.mxu0 (!%p219_p10), %v645_v4  ;;  %370 = vmatprep.mubr.bf16.mxu1 (!%p219_p10), %v645_v4 }
  0x1e   : > { %s227_s5 = scalar_lea.vmem (!%p219_p10), [#allocation2], %s534_s4  ;;  %p264_p11 = scmp.lt.s32.totalorder (!%p219_p10), %s536_s10, 3  ;;  %v282_v12 = vshrl.u32 (!%p219_p10), %v281_v11, 7 }
  0x1f   : > { %v597_v5 = vld [vmem:[%s227_s5 + $0x4] ss:$8 sps:$4 sm:$0xff] (!%p219_p10)   ;;  %v599_v6 = vld [vmem:[%s227_s5] ss:$8 sps:$4 sm:$0xff] (!%p219_p10)   ;;  %v600_v7 = vld [vmem:[%s227_s5 + $0x14] ss:$8 sps:$4 sm:$0xff] (!%p219_p10)  }
  0x20   : > { %328 = vmatprep.subr.bf16.mxu0 (!%p219_p10), %v597_v5  ;;  %552 = vmatprep.subr.bf16.mxu1 (!%p219_p10), %v597_v5  ;;  %v602_v8 = vld [vmem:[%s227_s5 + $0x10] ss:$8 sps:$4 sm:$0xff] (!%p219_p10)   ;;  %v283_v13 = vsub.s32 (!%p219_p10), 0, %v282_v12  ;;  %v287_v15 = vsub.s32 (!%p219_p10), 1, %v282_v12  ;;  %s535_s20 = sshll.u32 (!%p219_p10), %s225_s30, 6 }
  0x21   : > { %329 = vmatpush1.bf16.msra.mxu0 (!%p219_p10), %v599_v6  ;;  %554 = vmatpush1.bf16.msra.mxu1 (!%p219_p10), %v599_v6  ;;  %s731_s23 = scalar_lea.vmem (!%p219_p10), [#allocation3], %s535_s20 }
  0x22   : > { %330 = vmatprep.subr.bf16.mxu0 (!%p219_p10), %v600_v7  ;;  %553 = vmatprep.subr.bf16.mxu1 (!%p219_p10), %v600_v7 }
  0x24   : > { %s782_s10 = smov (!%p264_p11, %s536_s10), 3  ;;  %s551_s12 = sshll.u32 (%p701_p6), %s635_s14, 4 }
  0x25   : > { %331 = vmatpush1.bf16.msra.mxu0 %v602_v8  ;;  %555 = vmatpush1.bf16.msra.mxu1 %v602_v8  ;;  %s266_s19 = scalar_lea.vmem %s772_s2, %s782_s10  ;;  %s401_s26 = scalar_lea.vmem (%p701_p6), %s773_s3, %s551_s12 }
  0x26   : > { %v279_v14 = vld [vmem:[%s266_s19] sm:$0x3] }
  0x27   : > { %v284_v16 = vrot.slane %v279_v14, %v283_v13  ;;  %v288_v17 = vrot.slane %v279_v14, %v287_v15 }
  0x28   : > { %543 = vmatmul.mubr.msk.bf16.vlgmr.msra.gmra.mrb[0].mxu0 %vm321_vm0, %v603_v9  ;;  %544 = vmatmul.mubr.msk.bf16.vlgmr.msra.gmra.mrb[0].mxu1 %vm321_vm0, %v604_v10 }
  0xfb   : > { %v362_v18 = vpop.f32.mrb[0].mxu0  ;;  %v372_v19 = vpop.f32.mrb[0].mxu1  ;;  %395 = sbr.rel (!%p701_p6) target bundleno = 267 (0x10b), region = 74 }
  0xfc   : > { %v363_v20 = vadd.f32 %v362_v18, %v284_v16  ;;  %v373_v21 = vadd.f32 %v372_v19, %v284_v16  ;;  %v364_v22 = vpop.f32.mrb[1].mxu0  ;;  %v374_v23 = vpop.f32.mrb[1].mxu1 }
  0xfd   : > { %v365_v24 = vadd.f32 %v364_v22, %v288_v17  ;;  %v375_v25 = vadd.f32 %v374_v23, %v288_v17  ;;  %v366_v26 = vpop.f32.mrb[2].mxu0  ;;  %v376_v27 = vpop.f32.mrb[2].mxu1 }
  0xfe   : > { %381 = vst [vmem:[%s731_s23] sm:$0xff] %v363_v20  ;;  %385 = vst [vmem:[%s731_s23 + $0x20] sm:$0xff] %v373_v21  ;;  %v367_v28 = vadd.f32 %v366_v26, %v284_v16  ;;  %v377_v29 = vadd.f32 %v376_v27, %v284_v16  ;;  %v368_v30 = vpop.f32.mrb[3].mxu0  ;;  %v378_v31 = vpop.f32.mrb[3].mxu1 }
  0xff   : > { %382 = vst [vmem:[%s731_s23 + $0x8] sm:$0xff] %v365_v24  ;;  %386 = vst [vmem:[%s731_s23 + $0x28] sm:$0xff] %v375_v25  ;;  %v369_v32 = vadd.f32 %v368_v30, %v288_v17  ;;  %v379_v33 = vadd.f32 %v378_v31, %v288_v17 }
 0x100   : > { %383 = vst [vmem:[%s731_s23 + $0x10] sm:$0xff] %v367_v28  ;;  %387 = vst [vmem:[%s731_s23 + $0x30] sm:$0xff] %v377_v29 }
 0x101   : > { %384 = vst [vmem:[%s731_s23 + $0x18] sm:$0xff] %v369_v32  ;;  %388 = vst [vmem:[%s731_s23 + $0x38] sm:$0xff] %v379_v33 }
 0x105   : > { %v414_v34 = vld [vmem:[%s731_s23] sm:$0xff] }
 0x106   : > { %v416_v35 = vld [vmem:[%s731_s23 + $0x8] sm:$0xff]  ;;  %v422_v38 = vld [vmem:[%s731_s23 + $0x20] sm:$0xff]  ;;  %415 = vst [vmem:[%s401_s26] sm:$0xff] %v414_v34 }
 0x107   : > { %v418_v36 = vld [vmem:[%s731_s23 + $0x10] sm:$0xff]  ;;  %v424_v39 = vld [vmem:[%s731_s23 + $0x28] sm:$0xff]  ;;  %417 = vst [vmem:[%s401_s26 + $0x8] sm:$0xff] %v416_v35  ;;  %423 = vst [vmem:[%s401_s26 + $0x40] sm:$0xff] %v422_v38 }
 0x108   : > { %v420_v37 = vld [vmem:[%s731_s23 + $0x18] sm:$0xff]  ;;  %419 = vst [vmem:[%s401_s26 + $0x20] sm:$0xff] %v418_v36  ;;  %425 = vst [vmem:[%s401_s26 + $0x48] sm:$0xff] %v424_v39  ;;  %v426_v40 = vld [vmem:[%s731_s23 + $0x30] sm:$0xff] }
 0x109   : > { %421 = vst [vmem:[%s401_s26 + $0x28] sm:$0xff] %v420_v37  ;;  %v428_v41 = vld [vmem:[%s731_s23 + $0x38] sm:$0xff]  ;;  %427 = vst [vmem:[%s401_s26 + $0x60] sm:$0xff] %v426_v40 }
 0x10a   : > { %429 = vst [vmem:[%s401_s26 + $0x68] sm:$0xff] %v428_v41 }
 0x10b PF: > { %s13_s16 = sadd.s32 1, %s643_s16   ;;  %s775_s12 = smov %s631_s13 }
 0x10c   : > { %p10_p12 = scmp.ge.s32.totalorder %s13_s16, 4   ;;  %s776_s13 = smov %s706_s22 }
 0x10d   : > { %s777_s14 = smov %s639_s15  ;;  %s778_s15 = smov %s780_s17 }
 0x10e   :  { %12 = sbr.rel (!%p10_p12) target bundleno = 3 (0x3), region = 134 }

// kernel: encoder_transformer_forward.3
= control target key start
LH: loop header
LB: loop body
LE: loop exit
PB: predicated region body
PF: predicated region fallthrough
CT: control target
= control target key end

     0   :  { %s6405_s0 = inlined_call_operand.vmem [shape: f32[2,16,32], index: 0, kind: input, shape index: {}]   ;;  %s6406_s1 = inlined_call_operand.vmem [shape: f32[2,16,32], index: 1, kind: input, shape index: {}]   ;;  %s6407_s2 = inlined_call_operand.vmem [shape: f32[2,16,16], index: 2, kind: input, shape index: {}]   ;;  %s6408_s3 = inlined_call_operand.vmem [shape: f32[2,1,16], index: 3, kind: input, shape index: {}]   ;;  %s6409_s4 = inlined_call_operand.vmem [shape: bf16[32,96], index: 4, kind: input, shape index: {}]   ;;  %s6410_s5 = inlined_call_operand.vmem [shape: f32[1,96], index: 5, kind: input, shape index: {}]   ;;  %s6411_s6 = inlined_call_operand.vmem [shape: bf16[32,32], index: 6, kind: input, shape index: {}]   ;;  %s6412_s7 = inlined_call_operand.vmem [shape: f32[1,32], index: 7, kind: input, shape index: {}]   ;;  %s6413_s8 = inlined_call_operand.vmem [shape: f32[1,32], index: 8, kind: input, shape index: {}]   ;;  %s6414_s9 = inlined_call_operand.vmem [shape: f32[1,32], index: 9, kind: input, shape index: {}]   ;;  %s6415_s10 = inlined_call_operand.vmem [shape: bf16[32,32], index: 10, kind: input, shape index: {}]   ;;  %s6416_s11 = inlined_call_operand.vmem [shape: f32[1,32], index: 11, kind: input, shape index: {}]   ;;  %s6417_s12 = inlined_call_operand.vmem [shape: bf16[32,64], index: 12, kind: input, shape index: {}]   ;;  %s6418_s13 = inlined_call_operand.vmem [shape: f32[1,64], index: 13, kind: input, shape index: {}]   ;;  %s6419_s14 = inlined_call_operand.vmem [shape: bf16[32,32], index: 14, kind: input, shape index: {}]   ;;  %s6420_s15 = inlined_call_operand.vmem [shape: f32[1,32], index: 15, kind: input, shape index: {}]   ;;  %s6421_s16 = inlined_call_operand.vmem [shape: f32[1,32], index: 16, kind: input, shape index: {}]   ;;  %s6422_s17 = inlined_call_operand.vmem [shape: f32[1,32], index: 17, kind: input, shape index: {}]   ;;  %s6423_s18 = inlined_call_operand.vmem [shape: bf16[32,2048], index: 18, kind: input, shape index: {}]   ;;  %s6424_s19 = inlined_call_operand.vmem [shape: f32[1,2048], index: 19, kind: input, shape index: {}]   ;;  %s6425_s20 = inlined_call_operand.vmem [shape: bf16[2048,32], index: 20, kind: input, shape index: {}]   ;;  %s6426_s21 = inlined_call_operand.vmem [shape: f32[1,32], index: 21, kind: input, shape index: {}]   ;;  %s6427_s22 = inlined_call_operand.vmem [shape: f32[1,32], index: 22, kind: input, shape index: {}]   ;;  %s6428_s23 = inlined_call_operand.vmem [shape: f32[1,32], index: 23, kind: input, shape index: {}]   ;;  %s6429_s24 = inlined_call_operand.vmem [shape: f32[2,16,32], index: 24, kind: output, shape index: {}]  }
   0x1   :  { %6441 = sst [smem:[#allocation2_spill]] %s6405_s0 }
   0x2   :  { %6442 = sst [smem:[#allocation3_spill]] %s6406_s1 }
   0x3   :  { %6443 = sst [smem:[#allocation4_spill]] %s6407_s2 }
   0x4   :  { %6444 = sst [smem:[#allocation5_spill]] %s6408_s3 }
   0x5   :  { %6445 = sst [smem:[#allocation6_spill]] %s6409_s4 }
   0x6   :  { %6446 = sst [smem:[#allocation7_spill]] %s6410_s5  ;;  %s5481_s5 = smov 0  }
   0x7   :  { %6447 = sst [smem:[#allocation8_spill]] %s6411_s6 }
   0x8   :  { %6448 = sst [smem:[#allocation9_spill]] %s6412_s7 }
   0x9   :  { %6449 = sst [smem:[#allocation10_spill]] %s6413_s8 }
   0xa LB: > { %s4470_s26 = sadd.s32 4294967295, %s5337_s5   ;;  %p4474_p0 = scmp.ge.s32.totalorder %s5337_s5, 1  ;;  %s5337_s5 = sphi %s5481_s5, %s34_s5  }
   0xb   : > { %p690_p1 = scmp.lt.s32.totalorder %s5337_s5, 3 }
   0xd   : > { %p691_p2 = pnand %p4474_p0, %p690_p1 }
   0xe   : > { %s6450_s6 = sld [smem:[#allocation6_spill]] (!%p691_p2)  ;;  %v5339_v1 = vmov (!%p691_p2), 0.0   ;;  %vm5340_vm0 = vmmov (!%p691_p2), 0   ;;  %p769_p3 = scmp.lt.s32.totalorder (!%p691_p2), %s4470_s26, 1  ;;  %vm824_vm1 = vcmask (!%p691_p2), 261120   ;;  %vm873_vm2 = vcmask (!%p691_p2), 64512  }
   0xf   : > { %694 = sbr.rel (%p691_p2) target bundleno = 4458 (0x116a), region = 116  ;;  %4924 = vmatprep.subr.bf16.mxu0 (!%p691_p2), %v5339_v1  ;;  %4932 = vmatprep.subr.bf16.mxu1 (!%p691_p2), %v5339_v1  ;;  %s6451_s3 = sld [smem:[#allocation2_spill]] (!%p691_p2)  ;;  %vm925_vm3 = vcmask (!%p691_p2), 130048   ;;  %vm1399_vm4 = vcmask (!%p691_p2), 195584  }
  0x10   : > { %4928 = vmatprep.mubr.msk.bf16.mxu0 (!%p691_p2), %vm5340_vm0, %v5339_v1  ;;  %4934 = vmatprep.mubr.msk.bf16.mxu1 (!%p691_p2), %vm5340_vm0, %v5339_v1  ;;  %s6452_s1 = sld [smem:[#allocation7_spill]] (!%p691_p2)  ;;  %s5341_s27 = smov (!%p691_p2), 120  }
  0x11   : > { %s6438_s28 = smov (!%p691_p2), 96   ;;  %s6434_s2 = smov (!%p691_p2), 80  }
  0x12   : > { %s6432_s29 = smov (!%p691_p2), 88   ;;  %s6433_s7 = smov (!%p691_p2), 72  }
  0x13   : > { %s5346_s30 = smov (!%p691_p2), 112   ;;  %s5349_s8 = smov (!%p691_p2), 64  }
  0x14   : > { %v5115_v0 = vld [vmem:[%s6450_s6] sm:$0xff] (!%p691_p2)   ;;  %v5116_v2 = vld [vmem:[%s6450_s6 + $0x8] sm:$0xff] (!%p691_p2)   ;;  %s5350_s4 = smov (!%p691_p2), 48  }
  0x15   : > { %4925 = vmatpush3.bf16.msra.mxu0 (!%p691_p2), %v5115_v0 }
  0x16   : > { %4926 = vmatprep.subr.bf16.mxu0 %v5339_v1  ;;  %s6468_s26 = smov (!%p769_p3, %s4470_s26), 1  ;;  %v4483_v6 = vld [vmem:[%s6452_s1] ss:$0 sm:$0xff]  ;;  %s6453_s1 = sld [smem:[#allocation4_spill]] }
  0x17   : > { %s5505_s0 = sshll.u32 %s6468_s26, 4 }
  0x18   : > { %s5511_s25 = scalar_lea.vmem %s6451_s3, %s5505_s0  ;;  %s6439_s3 = smov 104  }
  0x19   : > { %4927 = vmatpush3.bf16.msra.mxu0 %v5116_v2  ;;  %v793_v3 = vld [vmem:[%s5511_s25] sm:$0xff]  ;;  %v794_v4 = vld [vmem:[%s5511_s25 + $0x8] sm:$0xff] }
  0x1a   : > { %4938 = vmatprep.subr.bf16.mxu0 %v5339_v1  ;;  %v800_v5 = vpack.c.bf16 %v794_v4, %v793_v3 }
  0x1c   : > { %4929 = vmatmul.mubr.msk.bf16.vlgmr.msra.gmra.mrb[0].mxu0 %vm824_vm1, %v800_v5 }
  0x1d   : > { %4940 = vmatprep.mubr.msk.bf16.mxu0 %vm5340_vm0, %v5339_v1 }
  0xef   : > { %v862_v7 = vpop.f32.mrb[0].mxu0 }
  0xf0   : > { %v4930_v8 = vpop.f32.mrb[1].mxu0  ;;  %v863_v10 = vadd.f32 %v4483_v6, %v862_v7 }
  0xf1   : > { %v865_v9 = vpop.f32.mrb[2].mxu0 }
  0xf2   : > { %v866_v11 = vadd.f32 %v4483_v6, %v865_v9  ;;  %v4931_v12 = vpop.f32.mrb[3].mxu0 }
  0xf4   : > { %v5522_v13 = vpack.c.bf16 %v866_v11, %v863_v10 }
  0xf6   : > { %996 = vrot.lane.b32.xlu1 %v5522_v13, %s5341_s27  ;;  %871 = vrot.lane.b32.xlu0 %v5522_v13, %s6438_s28  ;;  %s6456_s28 = sld [smem:[#allocation3_spill]] }
  0xfa   : > { %1123 = vrot.lane.b32.xlu1 %v5522_v13, %s6434_s2  ;;  %998 = vrot.lane.b32.xlu0 %v5522_v13, %s6432_s29  ;;  %s783_s29 = scalar_lea.vmem %s6453_s1, %s5505_s0  ;;  %s5351_s1 = smov 40  }
  0xfb   : > { %v797_v26 = vld [vmem:[%s783_s29] sm:$0xff]  ;;  %v798_v30 = vld [vmem:[%s783_s29 + $0x8] sm:$0xff]  ;;  %s5348_s29 = smov 56   ;;  %s6463_s2 = smov 88  }
  0xfe   : > { %1248 = vrot.lane.b32.xlu1 %v5522_v13, %s6433_s7  ;;  %1121 = vrot.lane.b32.xlu0 %v5522_v13, %s5346_s30 }
 0x102   : > { %1246 = vrot.lane.b32.xlu0 %v5522_v13, %s6439_s3  ;;  %s778_s3 = scalar_lea.vmem %s6456_s28, %s5505_s0 }
 0x168   : > { %v872_v14 = vpop.permute.xlu0 %871  ;;  %v997_v17 = vpop.permute.xlu1 %996 }
 0x169   : > { %v878_v15 = vsel %vm873_vm2, %v872_v14, 0 }
 0x16a   : > { %4933 = vmatpush3.bf16.xpose.msra.mxu1 %v878_v15 }
 0x16b   : > { %4944 = vmatprep.subr.bf16.mxu1 %v5339_v1 }
 0x16c   : > { %v999_v16 = vpop.permute.xlu0 %998  ;;  %v1124_v19 = vpop.permute.xlu1 %1123 }
 0x16d   : > { %v1004_v18 = vsel %vm873_vm2, %v999_v16, 0  ;;  %v1129_v20 = vsel %vm873_vm2, %v1124_v19, 0 }
 0x170   : > { %v1249_v21 = vpop.permute.xlu1 %1248  ;;  %v1122_v22 = vpop.permute.xlu0 %1121 }
 0x171   : > { %4935 = vmatmul.mubr.msk.bf16.vlgmr.msra.gmra.mrb[0].mxu1 %vm873_vm2, %v5522_v13  ;;  %v1254_v23 = vsel %vm873_vm2, %v1249_v21, 0 }
 0x172   : > { %4945 = vmatpush3.bf16.xpose.msra.mxu1 %v1004_v18  ;;  %4946 = vmatprep.mubr.msk.bf16.mxu1 %vm5340_vm0, %v5339_v1 }
 0x173   : > { %4956 = vmatprep.subr.bf16.mxu1 %v5339_v1 }
 0x174   : > { %v1247_v24 = vpop.permute.xlu0 %1246 }
 0x179   : > { %4947 = vmatmul.mubr.msk.bf16.vlgmr.msra.gmra.mrb[4].mxu1 %vm873_vm2, %v997_v17 }
 0x17a   : > { %4957 = vmatpush3.bf16.xpose.msra.mxu1 %v1129_v20  ;;  %4958 = vmatprep.mubr.msk.bf16.mxu1 %vm5340_vm0, %v5339_v1 }
 0x17b   : > { %4968 = vmatprep.subr.bf16.mxu1 %v5339_v1 }
 0x181   : > { %4959 = vmatmul.mubr.msk.bf16.vlgmr.msra.gmra.mrb[8].mxu1 %vm873_vm2, %v1122_v22 }
 0x182   : > { %4969 = vmatpush3.bf16.xpose.msra.mxu1 %v1254_v23  ;;  %4970 = vmatprep.mubr.msk.bf16.mxu1 %vm5340_vm0, %v5339_v1 }
 0x183   : > { %4980 = vmatprep.subr.bf16.mxu1 %v5339_v1 }
 0x189   : > { %4971 = vmatmul.mubr.msk.bf16.vlgmr.msra.gmra.mrb[12].mxu1 %vm873_vm2, %v1247_v24 }
 0x18a   : > { %4984 = vmatprep.mubr.msk.bf16.mxu1 %vm5340_vm0, %v5339_v1 }
 0x244   : > { %v914_v25 = vpop.f32.mrb[0].mxu1 }
 0x245   : > { %v921_v27 = vmul.f32 0.35355338, %v914_v25  ;;  %v4936_v28 = vpop.f32.mrb[1].mxu1 }
 0x246   : > { %v917_v29 = vpop.f32.mrb[2].mxu1 }
 0x247   : > { %v922_v31 = vmul.f32 0.35355338, %v917_v29  ;;  %v4937_v32 = vpop.f32.mrb[3].mxu1  ;;  %v923_v33 = vadd.f32 %v921_v27, %v797_v26 }
 0x249   : > { %v926_v34 = vsel %vm925_vm3, %v923_v33, -inf  ;;  %v924_v35 = vadd.f32 %v922_v31, %v798_v30 }
 0x24a   : > { %927 = vmax.xlane.f32.xlu1 %v926_v34 }
 0x24b   : > { %v929_v36 = vsel %vm925_vm3, %v924_v35, -inf }
 0x24c   : > { %930 = vmax.xlane.f32.xlu0 %v929_v36  ;;  %v1040_v37 = vpop.f32.mrb[4].mxu1 }
 0x24d   : > { %v1047_v38 = vmul.f32 0.35355338, %v1040_v37  ;;  %v4948_v39 = vpop.f32.mrb[5].mxu1 }
 0x24e   : > { %v1043_v40 = vpop.f32.mrb[6].mxu1 }
 0x24f   : > { %v1048_v41 = vmul.f32 0.35355338, %v1043_v40  ;;  %v4949_v42 = vpop.f32.mrb[7].mxu1  ;;  %v1049_v43 = vadd.f32 %v1047_v38, %v797_v26 }
 0x251   : > { %v1051_v44 = vsel %vm925_vm3, %v1049_v43, -inf  ;;  %v1050_v45 = vadd.f32 %v1048_v41, %v798_v30 }
 0x252   : > { %1052 = vmax.xlane.f32.xlu0 %v1051_v44 }
 0x253   : > { %v1054_v46 = vsel %vm925_vm3, %v1050_v45, -inf }
 0x254   : > { %1055 = vmax.xlane.f32.xlu1 %v1054_v46  ;;  %v1165_v47 = vpop.f32.mrb[8].mxu1 }
 0x255   : > { %v1172_v48 = vmul.f32 0.35355338, %v1165_v47  ;;  %v4960_v49 = vpop.f32.mrb[9].mxu1 }
 0x256   : > { %v1168_v50 = vpop.f32.mrb[10].mxu1 }
 0x257   : > { %v1173_v51 = vmul.f32 0.35355338, %v1168_v50  ;;  %v4961_v52 = vpop.f32.mrb[11].mxu1  ;;  %v1174_v53 = vadd.f32 %v1172_v48, %v797_v26 }
 0x259   : > { %v1176_v54 = vsel %vm925_vm3, %v1174_v53, -inf  ;;  %v1175_v55 = vadd.f32 %v1173_v51, %v798_v30 }
 0x25a   : > { %1177 = vmax.xlane.f32.xlu0 %v1176_v54 }
 0x25b   : > { %v1179_v56 = vsel %vm925_vm3, %v1175_v55, -inf }
 0x25c   : > { %1180 = vmax.xlane.f32.xlu1 %v1179_v56  ;;  %v1290_v57 = vpop.f32.mrb[12].mxu1 }
 0x25d   : > { %v1297_v58 = vmul.f32 0.35355338, %v1290_v57  ;;  %v4972_v59 = vpop.f32.mrb[13].mxu1 }
 0x25e   : > { %v1293_v60 = vpop.f32.mrb[14].mxu1 }
 0x25f   : > { %v1298_v61 = vmul.f32 0.35355338, %v1293_v60  ;;  %v4973_v62 = vpop.f32.mrb[15].mxu1  ;;  %v1299_v63 = vadd.f32 %v1297_v58, %v797_v26 }
 0x261   : > { %v1301_v0 = vsel %vm925_vm3, %v1299_v63, -inf  ;;  %v1300_v2 = vadd.f32 %v1298_v61, %v798_v30 }
 0x262   : > { %1302 = vmax.xlane.f32.xlu0 %v1301_v0 }
 0x263   : > { %v1304_v3 = vsel %vm925_vm3, %v1300_v2, -inf }
 0x264   : > { %1305 = vmax.xlane.f32.xlu1 %v1304_v3 }
 0x2d7   : > { %v928_v4 = vpop.xlane.xlu1 %927 }
 0x2d8   : > { %v932_v5 = vsub.f32 %v923_v33, %v928_v4 }
 0x2d9   : > { %v931_v6 = vpop.xlane.xlu0 %930 }
 0x2da   : > { %v934_v7 = vmul.f32 1.442695, %v932_v5  ;;  %v933_v8 = vsub.f32 %v924_v35, %v931_v6 }
 0x2dc   : > { %5253 = vpow2.f32 %v934_v7  ;;  %v936_v9 = vmul.f32 1.442695, %v933_v8 }
 0x2de   : > { %5255 = vpow2.f32 %v936_v9 }
 0x2df   : > { %v1053_v10 = vpop.xlane.xlu0 %1052 }
 0x2e0   : > { %v1057_v11 = vsub.f32 %v1049_v43, %v1053_v10 }
 0x2e1   : > { %v1056_v20 = vpop.xlane.xlu1 %1055 }
 0x2e2   : > { %v1059_v12 = vmul.f32 1.442695, %v1057_v11  ;;  %v1058_v21 = vsub.f32 %v1050_v45, %v1056_v20 }
 0x2e4   : > { %5257 = vpow2.f32 %v1059_v12  ;;  %v1061_v24 = vmul.f32 1.442695, %v1058_v21 }
 0x2e6   : > { %v5254_v14 = vpop.eup %5253  ;;  %5259 = vpow2.f32 %v1061_v24 }
 0x2e7   : > { %v938_v15 = vsel %vm925_vm3, %v5254_v14, 0.0  ;;  %v1178_v23 = vpop.xlane.xlu0 %1177 }
 0x2e8   : > { %v5256_v16 = vpop.eup %5255  ;;  %939 = vadd.xlane.f32.xlu0 %v938_v15  ;;  %v1182_v27 = vsub.f32 %v1174_v53, %v1178_v23 }
 0x2e9   : > { %v941_v17 = vsel %vm925_vm3, %v5256_v16, 0.0  ;;  %v1181_v22 = vpop.xlane.xlu1 %1180 }
 0x2ea   : > { %942 = vadd.xlane.f32.xlu1 %v941_v17  ;;  %v1183_v25 = vsub.f32 %v1175_v55, %v1181_v22  ;;  %v1184_v31 = vmul.f32 1.442695, %v1182_v27 }
 0x2ec   : > { %v1186_v29 = vmul.f32 1.442695, %v1183_v25 }
 0x2ee   : > { %v5573_v18 = vpop.eup %5257  ;;  %5261 = vpow2.f32 %v1186_v29 }
 0x2ef   : > { %v1063_v19 = vsel %vm925_vm3, %v5573_v18, 0.0  ;;  %v1303_v28 = vpop.xlane.xlu0 %1302  ;;  %5263 = vpow2.f32 %v1184_v31 }
 0x2f0   : > { %1064 = vadd.xlane.f32.xlu0 %v1063_v19  ;;  %v1307_v32 = vsub.f32 %v1299_v63, %v1303_v28  ;;  %v5260_v35 = vpop.eup %5259 }
 0x2f1   : > { %v1306_v26 = vpop.xlane.xlu1 %1305  ;;  %v1066_v36 = vsel %vm925_vm3, %v5260_v35, 0.0 }
 0x2f2   : > { %v1308_v30 = vsub.f32 %v1300_v2, %v1306_v26  ;;  %v1309_v34 = vmul.f32 1.442695, %v1307_v32 }
 0x2f4   : > { %v1311_v33 = vmul.f32 1.442695, %v1308_v30 }
 0x2f6   : > { %5265 = vpow2.f32 %v1311_v33 }
 0x2f7   : > { %5267 = vpow2.f32 %v1309_v34 }
 0x2f8   : > { %v5262_v37 = vpop.eup %5261 }
 0x2f9   : > { %v5264_v38 = vpop.eup %5263  ;;  %v1191_v39 = vsel %vm925_vm3, %v5262_v37, 0.0 }
 0x2fa   : > { %v1188_v41 = vsel %vm925_vm3, %v5264_v38, 0.0 }
 0x2fb   : > { %1074 = vrot.lane.b32.xlu1 %v5522_v13, %s5348_s29  ;;  %s6436_s29 = smov 16  }
 0x300   : > { %v5581_v40 = vpop.eup %5265 }
 0x301   : > { %v5268_v42 = vpop.eup %5267  ;;  %v1316_v43 = vsel %vm925_vm3, %v5581_v40, 0.0 }
 0x302   : > { %v1313_v44 = vsel %vm925_vm3, %v5268_v42, 0.0 }
 0x306   : > { %949 = vrot.lane.b32.xlu0 %v5522_v13, %s5349_s8  ;;  %s6435_s8 = smov 24  }
 0x31f   : > { %1067 = vadd.xlane.f32.xlu1 %v1066_v36 }
 0x323   : > { %1192 = vadd.xlane.f32.xlu1 %v1191_v39 }
 0x325   : > { %1189 = vadd.xlane.f32.xlu0 %v1188_v41 }
 0x327   : > { %1317 = vadd.xlane.f32.xlu1 %v1316_v43 }
 0x329   : > { %1314 = vadd.xlane.f32.xlu0 %v1313_v44 }
 0x338   : > { %1199 = vrot.lane.b32.xlu1 %v5522_v13, %s5350_s4  ;;  %s6454_s4 = sld [smem:[#allocation8_spill]] }
 0x33e   : > { %v5117_v21 = vld [vmem:[%s6454_s4] sm:$0xff]   ;;  %v5118_v26 = vld [vmem:[%s6454_s4 + $0x8] sm:$0xff]  }
 0x33f   : > { %1324 = vrot.lane.b32.xlu0 %v5522_v13, %s5351_s1  ;;  %4981 = vmatpush3.bf16.msra.mxu1 %v5117_v21  ;;  %s6437_s1 = smov 8  }
 0x340   : > { %4982 = vmatprep.subr.bf16.mxu1 %v5339_v1 }
 0x343   : > { %4983 = vmatpush3.bf16.msra.mxu1 %v5118_v26 }
 0x344   : > { %4996 = vmatprep.subr.bf16.mxu1 %v5339_v1 }
 0x375   : > { %v940_v45 = vpop.xlane.xlu0 %939 }
 0x376   : > { %5269 = vrcp.f32 %v940_v45 }
 0x377   : > { %v943_v46 = vpop.xlane.xlu1 %942 }
 0x378   : > { %5271 = vrcp.f32 %v943_v46 }
 0x37b   : > { %v1075_v54 = vpop.permute.xlu1 %1074 }
 0x37d   : > { %v1065_v47 = vpop.xlane.xlu0 %1064 }
 0x37e   : > { %5273 = vrcp.f32 %v1065_v47 }
 0x380   : > { %v5270_v48 = vpop.eup %5269 }
 0x381   : > { %v950_v49 = vpop.permute.xlu0 %949  ;;  %v946_v51 = vmul.f32 %v5270_v48, %v5254_v14 }
 0x382   : > { %v5272_v50 = vpop.eup %5271  ;;  %4939 = vmatpush3.bf16.msra.mxu0 %v950_v49 }
 0x383   : > { %v947_v52 = vmul.f32 %v5272_v50, %v5256_v16  ;;  %4950 = vmatprep.subr.bf16.mxu0 %v5339_v1 }
 0x385   : > { %v948_v53 = vpack.c.bf16 %v947_v52, %v946_v51 }
 0x387   : > { %4941 = vmatmul.mubr.msk.bf16.vlgmr.msra.gmra.mrb[4].mxu0 %vm925_vm3, %v948_v53 }
 0x388   : > { %4951 = vmatpush3.bf16.msra.mxu0 %v1075_v54  ;;  %4952 = vmatprep.mubr.msk.bf16.mxu0 %vm5340_vm0, %v5339_v1  ;;  %v5274_v57 = vpop.eup %5273 }
 0x389   : > { %4962 = vmatprep.subr.bf16.mxu0 %v5339_v1  ;;  %v1071_v61 = vmul.f32 %v5274_v57, %v5573_v18  ;;  %v5329_v57 = vld [vmem:[%s5511_s25] sm:$0xff] }
 0x3ac   : > { %v1068_v13 = vpop.xlane.xlu1 %1067 }
 0x3ad   : > { %5275 = vrcp.f32 %v1068_v13 }
 0x3b0   : > { %v1193_v55 = vpop.xlane.xlu1 %1192 }
 0x3b1   : > { %5277 = vrcp.f32 %v1193_v55 }
 0x3b2   : > { %v1190_v56 = vpop.xlane.xlu0 %1189 }
 0x3b3   : > { %5279 = vrcp.f32 %v1190_v56 }
 0x3b4   : > { %v1318_v58 = vpop.xlane.xlu1 %1317 }
 0x3b6   : > { %v1315_v59 = vpop.xlane.xlu0 %1314 }
 0x3b7   : > { %v5276_v60 = vpop.eup %5275  ;;  %5281 = vrcp.f32 %v1315_v59 }
 0x3b8   : > { %v1072_v62 = vmul.f32 %v5276_v60, %v5260_v35  ;;  %5283 = vrcp.f32 %v1318_v58  ;;  %v1200_v2 = vpop.permute.xlu1 %1199  ;;  %v5330_v60 = vld [vmem:[%s5511_s25 + $0x8] sm:$0xff]  ;;  %s6461_s25 = smov 80  }
 0x3ba   : > { %v1073_v63 = vpack.c.bf16 %v1072_v62, %v1071_v61  ;;  %v1325_v8 = vpop.permute.xlu0 %1324 }
 0x3bb   : > { %v5278_v0 = vpop.eup %5277 }
 0x3bc   : > { %4953 = vmatmul.mubr.msk.bf16.vlgmr.msra.gmra.mrb[8].mxu0 %vm925_vm3, %v1073_v63  ;;  %v1197_v5 = vmul.f32 %v5278_v0, %v5262_v37 }
 0x3bd   : > { %v5280_v3 = vpop.eup %5279  ;;  %4963 = vmatpush3.bf16.msra.mxu0 %v1200_v2  ;;  %4964 = vmatprep.mubr.msk.bf16.mxu0 %vm5340_vm0, %v5339_v1 }
 0x3be   : > { %v1196_v4 = vmul.f32 %v5280_v3, %v5264_v38  ;;  %4974 = vmatprep.subr.bf16.mxu0 %v5339_v1 }
 0x3c0   : > { %v1198_v6 = vpack.c.bf16 %v1197_v5, %v1196_v4 }
 0x3c1   : > { %v5282_v7 = vpop.eup %5281 }
 0x3c2   : > { %v5284_v9 = vpop.eup %5283  ;;  %v1321_v10 = vmul.f32 %v5282_v7, %v5268_v42 }
 0x3c3   : > { %v1322_v11 = vmul.f32 %v5284_v9, %v5581_v40 }
 0x3c4   : > { %4965 = vmatmul.mubr.msk.bf16.vlgmr.msra.gmra.mrb[12].mxu0 %vm925_vm3, %v1198_v6 }
 0x3c5   : > { %4975 = vmatpush3.bf16.msra.mxu0 %v1325_v8  ;;  %4976 = vmatprep.mubr.msk.bf16.mxu0 %vm5340_vm0, %v5339_v1  ;;  %v1323_v12 = vpack.c.bf16 %v1322_v11, %v1321_v10  ;;  %v5119_v10 = vld [vmem:[%s6417_s12] sm:$0xff]   ;;  %v5120_v11 = vld [vmem:[%s6417_s12 + $0x8] sm:$0xff]  }
 0x3c6   : > { %4988 = vmatprep.subr.bf16.mxu0 %v5339_v1 }
 0x3cc   : > { %4977 = vmatmul.mubr.msk.bf16.vlgmr.msra.gmra.mrb[16].mxu0 %vm925_vm3, %v1323_v12  ;;  %v795_v12 = vld [vmem:[%s778_s3] sm:$0xff] }
 0x3cd   : > { %4992 = vmatprep.mubr.msk.bf16.mxu0 %vm5340_vm0, %v5339_v1 }
 0x45a   : > { %v989_v14 = vpop.f32.mrb[4].mxu0 }
 0x45b   : > { %v4942_v15 = vpop.f32.mrb[5].mxu0 }
 0x45c   : > { %v992_v16 = vpop.f32.mrb[6].mxu0 }
 0x45d   : > { %v4943_v17 = vpop.f32.mrb[7].mxu0 }
 0x45e   : > { %v5122_v17 = vld [vmem:[%s6415_s10 + $0x8] sm:$0xff]  }
 0x48f   : > { %v1114_v18 = vpop.f32.mrb[8].mxu0 }
 0x490   : > { %v4954_v19 = vpop.f32.mrb[9].mxu0 }
 0x491   : > { %v1117_v20 = vpop.f32.mrb[10].mxu0 }
 0x492   : > { %v5085_v22 = vpack.i.bf16 %v1117_v20, %v1114_v18  ;;  %v4955_v23 = vpop.f32.mrb[11].mxu0 }
 0x494   : > { %5086 = vrot.lane.b32.xlu1 %v5085_v22, %s6437_s1  ;;  %s6457_s1 = sld [smem:[#allocation10_spill]] }
 0x497   : > { %v1239_v24 = vpop.f32.mrb[12].mxu0 }
 0x498   : > { %v4966_v25 = vpop.f32.mrb[13].mxu0 }
 0x499   : > { %v1242_v27 = vpop.f32.mrb[14].mxu0 }
 0x49a   : > { %v5090_v28 = vpack.i.bf16 %v1242_v27, %v1239_v24  ;;  %v4967_v29 = vpop.f32.mrb[15].mxu0  ;;  %v4499_v26 = vld [vmem:[%s6457_s1] ss:$0 sm:$0xff]  ;;  %s6459_s1 = sld [smem:[#allocation5_spill]] }
 0x49c   : > { %5091 = vrot.lane.b32.xlu0 %v5090_v28, %s6436_s29 }
 0x49f   : > { %v1364_v30 = vpop.f32.mrb[16].mxu0 }
 0x4a0   : > { %v4978_v31 = vpop.f32.mrb[17].mxu0  ;;  %s786_s29 = scalar_lea.vmem %s6459_s1, %s6468_s26  ;;  %s6460_s26 = smov 96  }
 0x4a1   : > { %v1367_v32 = vpop.f32.mrb[18].mxu0  ;;  %s6465_s1 = smov 16  }
 0x4a2   : > { %v5095_v33 = vpack.i.bf16 %v1367_v32, %v1364_v30  ;;  %v4979_v34 = vpop.f32.mrb[19].mxu0  ;;  %v4500_v30 = vld [vmem:[%s6414_s9] ss:$0 sm:$0xff] }
 0x4a4   : > { %5096 = vrot.lane.b32.xlu1 %v5095_v33, %s6435_s8  ;;  %s6455_s8 = sld [smem:[#allocation9_spill]] }
 0x4aa   : > { %v4495_v51 = vld [vmem:[%s6455_s8] ss:$0 sm:$0xff]  ;;  %s6462_s8 = smov 72  }
 0x506   : > { %v5087_v35 = vpop.permute.xlu1 %5086 }
 0x507   : > { %v5089_v37 = vunpack.i.h.bf16 %v5087_v35  ;;  %v5088_v38 = vunpack.i.l.bf16 %v5087_v35  ;;  %v4505_v35 = vld [vmem:[%s6418_s13] ss:$0 sm:$0xff] }
 0x509   : > { %v1396_v42 = vsel %vm873_vm2, %v992_v16, %v5089_v37  ;;  %v1395_v43 = vsel %vm873_vm2, %v989_v14, %v5088_v38  ;;  %v796_v14 = vld [vmem:[%s778_s3 + $0x8] sm:$0xff]  ;;  %v5121_v16 = vld [vmem:[%s6415_s10] sm:$0xff]   ;;  %s6458_s3 = smov 104  }
 0x50a   : > { %v1586_v15 = vpack.c.bf16 %v796_v14, %v795_v12  ;;  %4989 = vmatpush3.bf16.msra.mxu0 %v5121_v16 }
 0x50b   : > { %4990 = vmatprep.subr.bf16.mxu0 %v5339_v1 }
 0x50e   : > { %v5092_v36 = vpop.permute.xlu0 %5091  ;;  %4991 = vmatpush3.bf16.msra.mxu0 %v5122_v17 }
 0x50f   : > { %v5094_v39 = vunpack.i.h.bf16 %v5092_v36  ;;  %v5093_v40 = vunpack.i.l.bf16 %v5092_v36  ;;  %5004 = vmatprep.subr.bf16.mxu0 %v5339_v1 }
 0x511   : > { %v1398_v46 = vsel %vm925_vm3, %v1396_v42, %v5094_v39  ;;  %v1397_v47 = vsel %vm925_vm3, %v1395_v43, %v5093_v40 }
 0x516   : > { %v5097_v41 = vpop.permute.xlu1 %5096 }
 0x517   : > { %v5099_v44 = vunpack.i.h.bf16 %v5097_v41  ;;  %v5098_v45 = vunpack.i.l.bf16 %v5097_v41 }
 0x519   : > { %v1401_v48 = vsel %vm1399_vm4, %v1398_v46, %v5099_v44  ;;  %v1400_v49 = vsel %vm1399_vm4, %v1397_v47, %v5098_v45  ;;  %v4501_v44 = vld [vmem:[%s6416_s11] ss:$0 sm:$0xff] }
 0x51a   : > { %v1402_v50 = vpack.c.bf16 %v1401_v48, %v1400_v49 }
 0x51c   : > { %4985 = vmatmul.mubr.msk.bf16.vlgmr.msra.gmra.mrb[16].mxu1 %vm824_vm1, %v1402_v50 }
 0x51d   : > { %5000 = vmatprep.mubr.msk.bf16.mxu1 %vm5340_vm0, %v5339_v1  ;;  %4997 = vmatpush3.bf16.msra.mxu1 %v5119_v10 }
 0x51e   : > { %4998 = vmatprep.subr.bf16.mxu1 %v5339_v1 }
 0x521   : > { %4999 = vmatpush3.bf16.msra.mxu1 %v5120_v11 }
 0x522   : > { %5010 = vmatprep.subr.bf16.mxu1 %v5339_v1 }
 0x524   : > { %5001 = vmatmul.mubr.msk.bf16.vlgmr.msra.gmra.mrb[20].mxu1 %vm824_vm1, %v1586_v15 }
 0x525   : > { %5012 = vmatprep.mubr.msk.bf16.mxu1 %vm5340_vm0, %v5339_v1 }
 0x5ef   : > { %v1463_v52 = vpop.f32.mrb[16].mxu1 }
 0x5f0   : > { %v1464_v53 = vadd.f32 %v4495_v51, %v1463_v52  ;;  %v4986_v54 = vpop.f32.mrb[17].mxu1 }
 0x5f1   : > { %v1466_v13 = vpop.f32.mrb[18].mxu1 }
 0x5f2   : > { %v1467_v55 = vadd.f32 %v4495_v51, %v1466_v13  ;;  %v4987_v56 = vpop.f32.mrb[19].mxu1  ;;  %v1470_v58 = vadd.f32 %v5329_v57, %v1464_v53 }
 0x5f4   : > { %v1474_v59 = vsel %vm824_vm1, %v1470_v58, 0.0  ;;  %v1471_v61 = vadd.f32 %v5330_v60, %v1467_v55  ;;  %v4510_v60 = vld [vmem:[%s786_s29] ss:$0 sm:$0xff]  ;;  %s6466_s29 = smov 24  }
 0x5f5   : > { %1475 = vadd.xlane.f32.xlu0 %v1474_v59 }
 0x5f6   : > { %v1477_v62 = vsel %vm824_vm1, %v1471_v61, 0.0 }
 0x5f7   : > { %1478 = vadd.xlane.f32.xlu1 %v1477_v62  ;;  %v1647_v36 = vpop.f32.mrb[20].mxu1 }
 0x5f8   : > { %v1648_v37 = vadd.f32 %v4505_v35, %v1647_v36  ;;  %v5002_v38 = vpop.f32.mrb[21].mxu1 }
 0x5f9   : > { %v1650_v39 = vpop.f32.mrb[22].mxu1 }
 0x5fa   : > { %v1651_v40 = vadd.f32 %v4505_v35, %v1650_v39  ;;  %v5003_v41 = vpop.f32.mrb[23].mxu1 }
 0x5fc   : > { %v5677_v42 = vpack.c.bf16 %v1651_v40, %v1648_v37 }
 0x5fe   : > { %v1659_v43 = vsel %vm873_vm2, %v5677_v42, 0 }
 0x608   : > { %1786 = vrot.lane.b32.xlu1 %v5677_v42, %s5341_s27 }
 0x60c   : > { %1911 = vrot.lane.b32.xlu1 %v5677_v42, %s5346_s30 }
 0x682   : > { %v1476_v63 = vpop.xlane.xlu0 %1475 }
 0x683   : > { %v1481_v0 = vmul.f32 0.03125, %v1476_v63 }
 0x684   : > { %v1479_v2 = vpop.xlane.xlu1 %1478 }
 0x685   : > { %v1483_v3 = vsub.f32 %v1470_v58, %v1481_v0  ;;  %v1482_v4 = vmul.f32 0.03125, %v1479_v2 }
 0x687   : > { %v1484_v5 = vsub.f32 %v1471_v61, %v1482_v4  ;;  %v1485_v6 = vmul.f32 %v1483_v3, %v1483_v3 }
 0x688   : > { %v1787_v52 = vpop.permute.xlu1 %1786 }
 0x689   : > { %v1487_v7 = vsel %vm824_vm1, %v1485_v6, 0.0  ;;  %v1486_v8 = vmul.f32 %v1484_v5, %v1484_v5  ;;  %v1792_v53 = vsel %vm873_vm2, %v1787_v52, 0 }
 0x68a   : > { %1488 = vadd.xlane.f32.xlu0 %v1487_v7 }
 0x68b   : > { %v1490_v9 = vsel %vm824_vm1, %v1486_v8, 0.0 }
 0x68c   : > { %v1912_v54 = vpop.permute.xlu1 %1911 }
 0x68d   : > { %v1917_v55 = vsel %vm873_vm2, %v1912_v54, 0 }
 0x68e   : > { %1491 = vadd.xlane.f32.xlu0 %v1490_v9 }
 0x717   : > { %v1489_v18 = vpop.xlane.xlu0 %1488 }
 0x718   : > { %v1493_v19 = vmul.f32 0.03125, %v1489_v18 }
 0x71a   : > { %v1495_v20 = vadd.f32 1e-05, %v1493_v19 }
 0x71b   : > { %v1492_v21 = vpop.xlane.xlu0 %1491 }
 0x71c   : > { %5285 = vrsqrt.f32 %v1495_v20  ;;  %v1494_v22 = vmul.f32 0.03125, %v1492_v21 }
 0x71e   : > { %v1496_v23 = vadd.f32 1e-05, %v1494_v22 }
 0x720   : > { %5287 = vrsqrt.f32 %v1496_v23 }
 0x726   : > { %v5286_v24 = vpop.eup %5285 }
 0x727   : > { %v1499_v25 = vmul.f32 %v5286_v24, %v1483_v3 }
 0x729   : > { %v1507_v28 = vmul.f32 %v4499_v26, %v1499_v25 }
 0x72a   : > { %v5288_v27 = vpop.eup %5287 }
 0x72b   : > { %v1500_v29 = vmul.f32 %v5288_v27, %v1484_v5  ;;  %v5665_v32 = vadd.f32 %v4500_v30, %v1507_v28 }
 0x72d   : > { %v1508_v31 = vmul.f32 %v4499_v26, %v1500_v29 }
 0x72f   : > { %v5667_v33 = vadd.f32 %v4500_v30, %v1508_v31 }
 0x731   : > { %v1517_v34 = vpack.c.bf16 %v5667_v33, %v5665_v32 }
 0x733   : > { %4993 = vmatmul.mubr.msk.bf16.vlgmr.msra.gmra.mrb[20].mxu0 %vm824_vm1, %v1517_v34 }
 0x734   : > { %5006 = vmatprep.mubr.msk.bf16.mxu0 %vm5340_vm0, %v5339_v1  ;;  %5005 = vmatpush3.bf16.xpose.msra.mxu0 %v1659_v43 }
 0x735   : > { %5016 = vmatprep.subr.bf16.mxu0 %v5339_v1 }
 0x806   : > { %v1578_v45 = vpop.f32.mrb[20].mxu0 }
 0x807   : > { %v4994_v46 = vpop.f32.mrb[21].mxu0  ;;  %v1579_v48 = vadd.f32 %v4501_v44, %v1578_v45 }
 0x808   : > { %v1581_v47 = vpop.f32.mrb[22].mxu0 }
 0x809   : > { %v1582_v49 = vadd.f32 %v4501_v44, %v1581_v47  ;;  %v4995_v50 = vpop.f32.mrb[23].mxu0 }
 0x80b   : > { %v1585_v51 = vpack.c.bf16 %v1582_v49, %v1579_v48 }
 0x80d   : > { %1909 = vrot.lane.b32.xlu1 %v1585_v51, %s5346_s30  ;;  %1784 = vrot.lane.b32.xlu0 %v1585_v51, %s5341_s27  ;;  %s791_s30 = scalar_lea.vmem %s6429_s24, %s5505_s0 }
 0x80e   : > { %5007 = vmatmul.mubr.msk.bf16.vlgmr.msra.gmra.mrb[24].mxu0 %vm873_vm2, %v1585_v51 }
 0x80f   : > { %5017 = vmatpush3.bf16.xpose.msra.mxu0 %v1792_v53  ;;  %5018 = vmatprep.mubr.msk.bf16.mxu0 %vm5340_vm0, %v5339_v1 }
 0x810   : > { %5028 = vmatprep.subr.bf16.mxu0 %v5339_v1 }
 0x811   : > { %2034 = vrot.lane.b32.xlu1 %v1585_v51, %s6458_s3  ;;  %2036 = vrot.lane.b32.xlu0 %v5677_v42, %s6458_s3  ;;  %s6464_s3 = smov 8  }
 0x87f   : > { %v1785_v13 = vpop.permute.xlu0 %1784  ;;  %v1910_v57 = vpop.permute.xlu1 %1909 }
 0x880   : > { %5019 = vmatmul.mubr.msk.bf16.vlgmr.msra.gmra.mrb[28].mxu0 %vm873_vm2, %v1785_v13 }
 0x881   : > { %5029 = vmatpush3.bf16.xpose.msra.mxu0 %v1917_v55  ;;  %5030 = vmatprep.mubr.msk.bf16.mxu0 %vm5340_vm0, %v5339_v1 }
 0x882   : > { %5040 = vmatprep.subr.bf16.mxu0 %v5339_v1 }
 0x883   : > { %v2037_v56 = vpop.permute.xlu0 %2036  ;;  %v2035_v59 = vpop.permute.xlu1 %2034 }
 0x884   : > { %v2042_v58 = vsel %vm873_vm2, %v2037_v56, 0 }
 0x888   : > { %5031 = vmatmul.mubr.msk.bf16.vlgmr.msra.gmra.mrb[32].mxu0 %vm873_vm2, %v1910_v57 }
 0x889   : > { %5041 = vmatpush3.bf16.xpose.msra.mxu0 %v2042_v58  ;;  %5042 = vmatprep.mubr.msk.bf16.mxu0 %vm5340_vm0, %v5339_v1 }
 0x88a   : > { %5052 = vmatprep.subr.bf16.mxu0 %v5339_v1 }
 0x890   : > { %5043 = vmatmul.mubr.msk.bf16.vlgmr.msra.gmra.mrb[36].mxu0 %vm873_vm2, %v2035_v59 }
 0x891   : > { %5056 = vmatprep.mubr.msk.bf16.mxu0 %vm5340_vm0, %v5339_v1 }
 0x8e1   : > { %v1695_v61 = vpop.f32.mrb[24].mxu0 }
 0x8e2   : > { %v1702_v62 = vmul.f32 0.35355338, %v1695_v61  ;;  %v5008_v63 = vpop.f32.mrb[25].mxu0 }
 0x8e3   : > { %v1698_v0 = vpop.f32.mrb[26].mxu0 }
 0x8e4   : > { %v1703_v2 = vmul.f32 0.35355338, %v1698_v0  ;;  %v5009_v3 = vpop.f32.mrb[27].mxu0  ;;  %v1710_v4 = vadd.f32 %v4510_v60, %v1702_v62 }
 0x8e6   : > { %v1712_v5 = vsel %vm925_vm3, %v1710_v4, -inf  ;;  %v1711_v6 = vadd.f32 %v4510_v60, %v1703_v2 }
 0x8e7   : > { %1713 = vmax.xlane.f32.xlu0 %v1712_v5 }
 0x8e8   : > { %v1715_v7 = vsel %vm925_vm3, %v1711_v6, -inf }
 0x8e9   : > { %1716 = vmax.xlane.f32.xlu1 %v1715_v7 }
 0x953   : > { %v1828_v8 = vpop.f32.mrb[28].mxu0 }
 0x954   : > { %v1835_v9 = vmul.f32 0.35355338, %v1828_v8  ;;  %v5020_v10 = vpop.f32.mrb[29].mxu0 }
 0x955   : > { %v1831_v11 = vpop.f32.mrb[30].mxu0 }
 0x956   : > { %v1836_v12 = vmul.f32 0.35355338, %v1831_v11  ;;  %v5021_v14 = vpop.f32.mrb[31].mxu0  ;;  %v1837_v15 = vadd.f32 %v4510_v60, %v1835_v9 }
 0x958   : > { %v1839_v16 = vsel %vm925_vm3, %v1837_v15, -inf  ;;  %v1838_v17 = vadd.f32 %v4510_v60, %v1836_v12 }
 0x959   : > { %1840 = vmax.xlane.f32.xlu0 %v1839_v16 }
 0x95a   : > { %v1842_v21 = vsel %vm925_vm3, %v1838_v17, -inf }
 0x95b   : > { %v1953_v18 = vpop.f32.mrb[32].mxu0 }
 0x95c   : > { %v1960_v19 = vmul.f32 0.35355338, %v1953_v18  ;;  %v5032_v20 = vpop.f32.mrb[33].mxu0 }
 0x95d   : > { %1843 = vmax.xlane.f32.xlu0 %v1842_v21  ;;  %v1956_v22 = vpop.f32.mrb[34].mxu0 }
 0x95e   : > { %v1961_v23 = vmul.f32 0.35355338, %v1956_v22  ;;  %v5033_v24 = vpop.f32.mrb[35].mxu0  ;;  %v1962_v25 = vadd.f32 %v4510_v60, %v1960_v19 }
 0x960   : > { %v1964_v26 = vsel %vm925_vm3, %v1962_v25, -inf  ;;  %v1963_v27 = vadd.f32 %v4510_v60, %v1961_v23 }
 0x961   : > { %1965 = vmax.xlane.f32.xlu1 %v1964_v26 }
 0x962   : > { %v1967_v28 = vsel %vm925_vm3, %v1963_v27, -inf }
 0x963   : > { %1968 = vmax.xlane.f32.xlu0 %v1967_v28  ;;  %v2078_v29 = vpop.f32.mrb[36].mxu0 }
 0x964   : > { %v2085_v30 = vmul.f32 0.35355338, %v2078_v29  ;;  %v5044_v31 = vpop.f32.mrb[37].mxu0 }
 0x965   : > { %v2081_v34 = vpop.f32.mrb[38].mxu0 }
 0x966   : > { %v2086_v35 = vmul.f32 0.35355338, %v2081_v34  ;;  %v5045_v36 = vpop.f32.mrb[39].mxu0  ;;  %v2087_v37 = vadd.f32 %v4510_v60, %v2085_v30 }
 0x968   : > { %v2089_v38 = vsel %vm925_vm3, %v2087_v37, -inf  ;;  %v2088_v39 = vadd.f32 %v4510_v60, %v2086_v35 }
 0x969   : > { %2090 = vmax.xlane.f32.xlu1 %v2089_v38 }
 0x96a   : > { %v2092_v40 = vsel %vm925_vm3, %v2088_v39, -inf }
 0x96b   : > { %2093 = vmax.xlane.f32.xlu0 %v2092_v40 }
 0x974   : > { %v1714_v46 = vpop.xlane.xlu0 %1713 }
 0x975   : > { %v1718_v48 = vsub.f32 %v1710_v4, %v1714_v46 }
 0x976   : > { %v1717_v41 = vpop.xlane.xlu1 %1716 }
 0x977   : > { %v1719_v43 = vsub.f32 %v1711_v6, %v1717_v41  ;;  %v1720_v49 = vmul.f32 1.442695, %v1718_v48 }
 0x979   : > { %v1722_v44 = vmul.f32 1.442695, %v1719_v43 }
 0x97a   : > { %1736 = vrot.lane.b32.xlu1 %v5677_v42, %s6460_s26 }
 0x97b   : > { %5289 = vpow2.f32 %v1722_v44 }
 0x97c   : > { %5291 = vpow2.f32 %v1720_v49 }
 0x985   : > { %v5726_v45 = vpop.eup %5289 }
 0x986   : > { %v1727_v47 = vsel %vm925_vm3, %v5726_v45, 0.0  ;;  %v5292_v50 = vpop.eup %5291 }
 0x987   : > { %1728 = vadd.xlane.f32.xlu0 %v1727_v47  ;;  %v1724_v51 = vsel %vm925_vm3, %v5292_v50, 0.0 }
 0x99e   : > { %1725 = vadd.xlane.f32.xlu1 %v1724_v51 }
 0x9e6   : > { %v1841_v52 = vpop.xlane.xlu0 %1840 }
 0x9e7   : > { %v1845_v53 = vsub.f32 %v1837_v15, %v1841_v52 }
 0x9e9   : > { %v1847_v54 = vmul.f32 1.442695, %v1845_v53 }
 0x9ea   : > { %v1844_v13 = vpop.xlane.xlu0 %1843 }
 0x9eb   : > { %5293 = vpow2.f32 %v1847_v54  ;;  %v1846_v55 = vsub.f32 %v1838_v17, %v1844_v13 }
 0x9ed   : > { %v1849_v56 = vmul.f32 1.442695, %v1846_v55 }
 0x9ee   : > { %v1966_v57 = vpop.xlane.xlu1 %1965 }
 0x9ef   : > { %5295 = vpow2.f32 %v1849_v56  ;;  %v1970_v58 = vsub.f32 %v1962_v25, %v1966_v57 }
 0x9f0   : > { %v1969_v59 = vpop.xlane.xlu0 %1968 }
 0x9f1   : > { %v1972_v60 = vmul.f32 1.442695, %v1970_v58  ;;  %v1971_v61 = vsub.f32 %v1963_v27, %v1969_v59  ;;  %v5123_v59 = vld [vmem:[%s6419_s14] sm:$0xff]  }
 0x9f2   : > { %5053 = vmatpush3.bf16.msra.mxu0 %v5123_v59 }
 0x9f3   : > { %5297 = vpow2.f32 %v1972_v60  ;;  %v1974_v62 = vmul.f32 1.442695, %v1971_v61  ;;  %5054 = vmatprep.subr.bf16.mxu0 %v5339_v1 }
 0x9f5   : > { %v5294_v63 = vpop.eup %5293  ;;  %5299 = vpow2.f32 %v1974_v62 }
 0x9f6   : > { %v2091_v0 = vpop.xlane.xlu1 %2090  ;;  %v1851_v2 = vsel %vm925_vm3, %v5294_v63, 0.0 }
 0x9f7   : > { %v2095_v3 = vsub.f32 %v2087_v37, %v2091_v0  ;;  %1852 = vadd.xlane.f32.xlu1 %v1851_v2  ;;  %v5124_v0 = vld [vmem:[%s6419_s14 + $0x8] sm:$0xff]  }
 0x9f8   : > { %v2094_v4 = vpop.xlane.xlu0 %2093  ;;  %5055 = vmatpush3.bf16.msra.mxu0 %v5124_v0  ;;  %v2307_v0 = vld [vmem:[%s6423_s18 + $0x18] sm:$0xff] }
 0x9f9   : > { %v5296_v5 = vpop.eup %5295  ;;  %v2097_v6 = vmul.f32 1.442695, %v2095_v3  ;;  %v2096_v7 = vsub.f32 %v2088_v39, %v2094_v4 }
 0x9fa   : > { %v1737_v8 = vpop.permute.xlu1 %1736  ;;  %v1854_v9 = vsel %vm925_vm3, %v5296_v5, 0.0 }
 0x9fb   : > { %5301 = vpow2.f32 %v2097_v6  ;;  %v2099_v10 = vmul.f32 1.442695, %v2096_v7  ;;  %5011 = vmatpush3.bf16.msra.mxu1 %v1737_v8  ;;  %1855 = vadd.xlane.f32.xlu0 %v1854_v9 }
 0x9fc   : > { %5022 = vmatprep.subr.bf16.mxu1 %v5339_v1 }
 0x9fd   : > { %v5298_v11 = vpop.eup %5297  ;;  %5303 = vpow2.f32 %v2099_v10 }
 0x9fe   : > { %v1976_v12 = vsel %vm925_vm3, %v5298_v11, 0.0 }
 0x9ff   : > { %v5300_v14 = vpop.eup %5299  ;;  %1977 = vadd.xlane.f32.xlu1 %v1976_v12 }
 0xa00   : > { %v1979_v15 = vsel %vm925_vm3, %v5300_v14, 0.0 }
 0xa01   : > { %1980 = vadd.xlane.f32.xlu0 %v1979_v15 }
 0xa05   : > { %v5302_v16 = vpop.eup %5301 }
 0xa06   : > { %v2101_v17 = vsel %vm925_vm3, %v5302_v16, 0.0 }
 0xa07   : > { %v5304_v18 = vpop.eup %5303  ;;  %2102 = vadd.xlane.f32.xlu1 %v2101_v17 }
 0xa08   : > { %v2104_v19 = vsel %vm925_vm3, %v5304_v18, 0.0 }
 0xa09   : > { %2105 = vadd.xlane.f32.xlu0 %v2104_v19 }
 0xa14   : > { %v1729_v20 = vpop.xlane.xlu0 %1728 }
 0xa15   : > { %5305 = vrcp.f32 %v1729_v20 }
 0xa18   : > { %1987 = vrot.lane.b32.xlu1 %v5677_v42, %s6461_s25 }
 0xa1c   : > { %2112 = vrot.lane.b32.xlu1 %v5677_v42, %s6462_s8 }
 0xa1f   : > { %1862 = vrot.lane.b32.xlu0 %v5677_v42, %s6463_s2  ;;  %v5306_v22 = vpop.eup %5305 }
 0xa20   : > { %v1733_v24 = vmul.f32 %v5306_v22, %v5726_v45 }
 0xa2b   : > { %v1726_v21 = vpop.xlane.xlu1 %1725 }
 0xa2c   : > { %5307 = vrcp.f32 %v1726_v21 }
 0xa36   : > { %v5308_v23 = vpop.eup %5307 }
 0xa37   : > { %v1732_v25 = vmul.f32 %v5308_v23, %v5292_v50 }
 0xa39   : > { %v1734_v26 = vpack.c.bf16 %v1733_v24, %v1732_v25 }
 0xa3b   : > { %5013 = vmatmul.mubr.msk.bf16.vlgmr.msra.gmra.mrb[24].mxu1 %vm925_vm3, %v1734_v26  ;;  %v4518_v26 = vld [vmem:[%s6420_s15] ss:$0 sm:$0xff] }
 0xa3c   : > { %5024 = vmatprep.mubr.msk.bf16.mxu1 %vm5340_vm0, %v5339_v1 }
 0xa84   : > { %v1853_v28 = vpop.xlane.xlu1 %1852 }
 0xa88   : > { %v1856_v27 = vpop.xlane.xlu0 %1855 }
 0xa89   : > { %5309 = vrcp.f32 %v1856_v27 }
 0xa8a   : > { %5311 = vrcp.f32 %v1853_v28 }
 0xa8c   : > { %v1978_v29 = vpop.xlane.xlu1 %1977 }
 0xa8e   : > { %v1981_v42 = vpop.xlane.xlu0 %1980 }
 0xa8f   : > { %5313 = vrcp.f32 %v1981_v42 }
 0xa90   : > { %5315 = vrcp.f32 %v1978_v29 }
 0xa93   : > { %v5310_v30 = vpop.eup %5309 }
 0xa94   : > { %v5312_v34 = vpop.eup %5311  ;;  %v1860_v35 = vmul.f32 %v5310_v30, %v5296_v5  ;;  %v2103_v36 = vpop.xlane.xlu1 %2102 }
 0xa95   : > { %v1859_v37 = vmul.f32 %v5312_v34, %v5294_v63 }
 0xa96   : > { %v2106_v31 = vpop.xlane.xlu0 %2105 }
 0xa97   : > { %5317 = vrcp.f32 %v2106_v31  ;;  %v1861_v39 = vpack.c.bf16 %v1860_v35, %v1859_v37 }
 0xa98   : > { %5319 = vrcp.f32 %v2103_v36  ;;  %v1988_v41 = vpop.permute.xlu1 %1987 }
 0xa99   : > { %v5314_v40 = vpop.eup %5313 }
 0xa9a   : > { %v1863_v38 = vpop.permute.xlu0 %1862  ;;  %v5316_v43 = vpop.eup %5315  ;;  %v1985_v44 = vmul.f32 %v5314_v40, %v5300_v14 }
 0xa9b   : > { %5023 = vmatpush3.bf16.msra.mxu1 %v1863_v38  ;;  %v1984_v45 = vmul.f32 %v5316_v43, %v5298_v11 }
 0xa9c   : > { %5034 = vmatprep.subr.bf16.mxu1 %v5339_v1  ;;  %v2113_v48 = vpop.permute.xlu1 %2112 }
 0xa9d   : > { %v1986_v46 = vpack.c.bf16 %v1985_v44, %v1984_v45 }
 0xa9e   : > { %5025 = vmatmul.mubr.msk.bf16.vlgmr.msra.gmra.mrb[28].mxu1 %vm925_vm3, %v1861_v39 }
 0xa9f   : > { %5035 = vmatpush3.bf16.msra.mxu1 %v1988_v41  ;;  %5036 = vmatprep.mubr.msk.bf16.mxu1 %vm5340_vm0, %v5339_v1 }
 0xaa0   : > { %5046 = vmatprep.subr.bf16.mxu1 %v5339_v1 }
 0xaa1   : > { %v5318_v47 = vpop.eup %5317 }
 0xaa2   : > { %v5320_v49 = vpop.eup %5319  ;;  %v2110_v50 = vmul.f32 %v5318_v47, %v5304_v18 }
 0xaa3   : > { %v2109_v51 = vmul.f32 %v5320_v49, %v5302_v16  ;;  %v2305_v49 = vld [vmem:[%s6423_s18 + $0x8] sm:$0xff] }
 0xaa5   : > { %v2111_v52 = vpack.c.bf16 %v2110_v50, %v2109_v51  ;;  %v2313_v51 = vld [vmem:[%s6423_s18 + $0x48] sm:$0xff] }
 0xaa6   : > { %5037 = vmatmul.mubr.msk.bf16.vlgmr.msra.gmra.mrb[32].mxu1 %vm925_vm3, %v1986_v46 }
 0xaa7   : > { %5047 = vmatpush3.bf16.msra.mxu1 %v2113_v48  ;;  %5048 = vmatprep.mubr.msk.bf16.mxu1 %vm5340_vm0, %v5339_v1  ;;  %v2312_v48 = vld [vmem:[%s6423_s18 + $0x40] sm:$0xff] }
 0xaae   : > { %5049 = vmatmul.mubr.msk.bf16.vlgmr.msra.gmra.mrb[36].mxu1 %vm925_vm3, %v2111_v52 }
 0xb0e   : > { %v1776_v53 = vpop.f32.mrb[24].mxu1 }
 0xb0f   : > { %v5014_v54 = vpop.f32.mrb[25].mxu1 }
 0xb10   : > { %v1779_v13 = vpop.f32.mrb[26].mxu1  ;;  %v4527_v54 = vcombine.high %v2305_v49, %v2313_v51 }
 0xb11   : > { %v5015_v55 = vpop.f32.mrb[27].mxu1 }
 0xb12   : > { %2626 = vmatprep.subr.bf16.mxu0 %v4527_v54  ;;  %v2328_v55 = vld [vmem:[%s6423_s18 + $0xc0] sm:$0xff] }
 0xb71   : > { %v1902_v56 = vpop.f32.mrb[28].mxu1 }
 0xb72   : > { %v5026_v57 = vpop.f32.mrb[29].mxu1 }
 0xb73   : > { %v1905_v58 = vpop.f32.mrb[30].mxu1 }
 0xb74   : > { %v5100_v60 = vpack.i.bf16 %v1905_v58, %v1902_v56  ;;  %v5027_v61 = vpop.f32.mrb[31].mxu1  ;;  %v2321_v56 = vld [vmem:[%s6423_s18 + $0x88] sm:$0xff] }
 0xb75   : > { %v2329_v58 = vld [vmem:[%s6423_s18 + $0xc8] sm:$0xff] }
 0xb76   : > { %5101 = vrot.lane.b32.xlu0 %v5100_v60, %s6464_s3  ;;  %v4542_v60 = vcombine.low %v2321_v56, %v2329_v58  ;;  %v4543_v61 = vcombine.high %v2321_v56, %v2329_v58  ;;  %v2327_v56 = vld [vmem:[%s6423_s18 + $0xb8] sm:$0xff] }
 0xb79   : > { %v2027_v62 = vpop.f32.mrb[32].mxu1 }
 0xb7a   : > { %v5038_v63 = vpop.f32.mrb[33].mxu1 }
 0xb7b   : > { %v2030_v2 = vpop.f32.mrb[34].mxu1  ;;  %v2314_v63 = vld [vmem:[%s6423_s18 + $0x50] sm:$0xff] }
 0xb7c   : > { %v5105_v3 = vpack.i.bf16 %v2030_v2, %v2027_v62  ;;  %v5039_v4 = vpop.f32.mrb[35].mxu1  ;;  %v2306_v62 = vld [vmem:[%s6423_s18 + $0x10] sm:$0xff]  ;;  %v5355_v2 = vmov 0  }
 0xb7d   : > { %2615 = vmatprep.mubr.bf16.mxu1 %v5355_v2  ;;  %v2315_v4 = vld [vmem:[%s6423_s18 + $0x58] sm:$0xff] }
 0xb7e   : > { %5106 = vrot.lane.b32.xlu1 %v5105_v3, %s6465_s1  ;;  %v4529_v3 = vcombine.high %v2306_v62, %v2314_v63 }
 0xb81   : > { %v2152_v5 = vpop.f32.mrb[36].mxu1 }
 0xb82   : > { %v5050_v6 = vpop.f32.mrb[37].mxu1 }
 0xb83   : > { %v2155_v7 = vpop.f32.mrb[38].mxu1  ;;  %v4530_v6 = vcombine.low %v2307_v0, %v2315_v4 }
 0xb84   : > { %v5110_v8 = vpack.i.bf16 %v2155_v7, %v2152_v5  ;;  %v5051_v9 = vpop.f32.mrb[39].mxu1  ;;  %v4528_v5 = vcombine.low %v2306_v62, %v2314_v63  ;;  %v4531_v7 = vcombine.high %v2307_v0, %v2315_v4  ;;  %v5125_v0 = vld [vmem:[%s6425_s20 + $0x40] sm:$0xff]  }
 0xb85   : > { %v5127_v4 = vld [vmem:[%s6425_s20] sm:$0xff]  }
 0xb86   : > { %5111 = vrot.lane.b32.xlu0 %v5110_v8, %s6466_s29 }
 0xbe8   : > { %v5102_v1 = vpop.permute.xlu0 %5101 }
 0xbe9   : > { %v5104_v11 = vunpack.i.h.bf16 %v5102_v1  ;;  %v5103_v12 = vunpack.i.l.bf16 %v5102_v1 }
 0xbeb   : > { %v2184_v17 = vsel %vm873_vm2, %v1779_v13, %v5104_v11  ;;  %v2183_v18 = vsel %vm873_vm2, %v1776_v53, %v5103_v12  ;;  %v4526_v53 = vcombine.low %v2305_v49, %v2313_v51  ;;  %v2320_v13 = vld [vmem:[%s6423_s18 + $0x80] sm:$0xff]  ;;  %v2311_v49 = vld [vmem:[%s6423_s18 + $0x38] sm:$0xff] }
 0xbec   : > { %v4541_v57 = vcombine.high %v2320_v13, %v2328_v55  ;;  %v4540_v59 = vcombine.low %v2320_v13, %v2328_v55  ;;  %v2326_v13 = vld [vmem:[%s6423_s18 + $0xb0] sm:$0xff] }
 0xbed   : > { %v2334_v55 = vld [vmem:[%s6423_s18 + $0xf0] sm:$0xff] }
 0xbee   : > { %v4552_v62 = vcombine.low %v2326_v13, %v2334_v55 }
 0xbf0   : > { %v5107_v10 = vpop.permute.xlu1 %5106 }
 0xbf1   : > { %v5109_v14 = vunpack.i.h.bf16 %v5107_v10  ;;  %v5108_v15 = vunpack.i.l.bf16 %v5107_v10 }
 0xbf3   : > { %v2186_v21 = vsel %vm925_vm3, %v2184_v17, %v5109_v14  ;;  %v2185_v22 = vsel %vm925_vm3, %v2183_v18, %v5108_v15  ;;  %v4522_v15 = vld [vmem:[%s6421_s16] ss:$0 sm:$0xff] }
 0xbf8   : > { %v5112_v16 = vpop.permute.xlu0 %5111 }
 0xbf9   : > { %v5114_v19 = vunpack.i.h.bf16 %v5112_v16  ;;  %v5113_v20 = vunpack.i.l.bf16 %v5112_v16 }
 0xbfb   : > { %v2188_v23 = vsel %vm1399_vm4, %v2186_v21, %v5114_v19  ;;  %v2187_v24 = vsel %vm1399_vm4, %v2185_v22, %v5113_v20  ;;  %v4523_v20 = vld [vmem:[%s6422_s17] ss:$0 sm:$0xff]  ;;  %v2322_v22 = vld [vmem:[%s6423_s18 + $0x90] sm:$0xff] }
 0xbfc   : > { %v2189_v25 = vpack.c.bf16 %v2188_v23, %v2187_v24  ;;  %v2330_v23 = vld [vmem:[%s6423_s18 + $0xd0] sm:$0xff]  ;;  %v2323_v24 = vld [vmem:[%s6423_s18 + $0x98] sm:$0xff] }
 0xbfe   : > { %5057 = vmatmul.mubr.msk.bf16.vlgmr.msra.gmra.mrb[40].mxu0 %vm824_vm1, %v2189_v25  ;;  %v2331_v25 = vld [vmem:[%s6423_s18 + $0xd8] sm:$0xff] }
 0xbff   : > { %2627 = vmatpush1.bf16.msra.mxu0 %v4526_v53  ;;  %2658 = vmatprep.mubr.bf16.mxu0 %v5355_v2 }
 0xc00   : > { %2628 = vmatprep.subr.bf16.mxu0 %v4543_v61 }
 0xc03   : > { %2629 = vmatpush1.bf16.msra.mxu0 %v4542_v60  ;;  %v4553_v60 = vcombine.high %v2326_v13, %v2334_v55 }
 0xc04   : > { %2712 = vmatprep.subr.bf16.mxu0 %v4531_v7  ;;  %v5131_v7 = vld [vmem:[%s6425_s20 + $0x8] sm:$0xff]  }
 0xcd1   : > { %v2250_v27 = vpop.f32.mrb[40].mxu0 }
 0xcd2   : > { %v2251_v28 = vadd.f32 %v4518_v26, %v2250_v27  ;;  %v5058_v42 = vpop.f32.mrb[41].mxu0 }
 0xcd3   : > { %v2253_v29 = vpop.f32.mrb[42].mxu0  ;;  %v4545_v42 = vcombine.high %v2322_v22, %v2330_v23 }
 0xcd4   : > { %v2254_v30 = vadd.f32 %v4518_v26, %v2253_v29  ;;  %v5059_v31 = vpop.f32.mrb[43].mxu0  ;;  %v2257_v34 = vadd.f32 %v2251_v28, %v5665_v32  ;;  %v4547_v29 = vcombine.high %v2323_v24, %v2331_v25 }
 0xcd5   : > { %v2316_v31 = vld [vmem:[%s6423_s18 + $0x60] sm:$0xff] }
 0xcd6   : > { %v2261_v35 = vsel %vm824_vm1, %v2257_v34, 0.0  ;;  %v2258_v36 = vadd.f32 %v2254_v30, %v5667_v33  ;;  %v2304_v33 = vld [vmem:[%s6423_s18] sm:$0xff] }
 0xcd7   : > { %2262 = vadd.xlane.f32.xlu1 %v2261_v35  ;;  %v4525_v50 = vcombine.high %v2304_v33, %v2312_v48  ;;  %v4524_v52 = vcombine.low %v2304_v33, %v2312_v48  ;;  %v2308_v30 = vld [vmem:[%s6423_s18 + $0x20] sm:$0xff]  ;;  %v2317_v35 = vld [vmem:[%s6423_s18 + $0x68] sm:$0xff]  ;;  %v2310_v33 = vld [vmem:[%s6423_s18 + $0x30] sm:$0xff] }
 0xcd8   : > { %v2264_v37 = vsel %vm824_vm1, %v2258_v36, 0.0  ;;  %v2318_v48 = vld [vmem:[%s6423_s18 + $0x70] sm:$0xff] }
 0xcd9   : > { %2265 = vadd.xlane.f32.xlu0 %v2264_v37  ;;  %2583 = vmatprep.subr.bf16.mxu1 %v4525_v50  ;;  %v4546_v37 = vcombine.low %v2323_v24, %v2331_v25  ;;  %v2319_v50 = vld [vmem:[%s6423_s18 + $0x78] sm:$0xff]  ;;  %v4537_v53 = vcombine.high %v2310_v33, %v2318_v48  ;;  %v4536_v58 = vcombine.low %v2310_v33, %v2318_v48  ;;  %v5148_v24 = vld [vmem:[%s6425_s20 + $0xa8] sm:$0xff]   ;;  %v5149_v25 = vld [vmem:[%s6425_s20 + $0x70] sm:$0xff]  }
 0xcda   : > { %2584 = vmatpush1.bf16.msra.mxu1 %v4524_v52  ;;  %v4539_v54 = vcombine.high %v2311_v49, %v2319_v50 }
 0xcdb   : > { %2585 = vmatprep.subr.bf16.mxu1 %v4541_v57  ;;  %v2335_v57 = vld [vmem:[%s6423_s18 + $0xf8] sm:$0xff] }
 0xcdc   : > { %v4555_v61 = vcombine.high %v2327_v56, %v2335_v57  ;;  %v4554_v63 = vcombine.low %v2327_v56, %v2335_v57 }
 0xcde   : > { %2586 = vmatpush1.bf16.msra.mxu1 %v4540_v59  ;;  %v4538_v59 = vcombine.low %v2311_v49, %v2319_v50 }
 0xcdf   : > { %2669 = vmatprep.subr.bf16.mxu1 %v4529_v3  ;;  %v5126_v3 = vld [vmem:[%s6425_s20 + $0xc0] sm:$0xff]  }
 0xd64   : > { %v2263_v38 = vpop.xlane.xlu1 %2262 }
 0xd65   : > { %v2267_v39 = vmul.f32 0.03125, %v2263_v38  ;;  %v4533_v38 = vcombine.high %v2308_v30, %v2316_v31 }
 0xd66   : > { %v2266_v40 = vpop.xlane.xlu0 %2265 }
 0xd67   : > { %v2269_v41 = vsub.f32 %v2257_v34, %v2267_v39  ;;  %v2268_v43 = vmul.f32 0.03125, %v2266_v40  ;;  %v2309_v34 = vld [vmem:[%s6423_s18 + $0x28] sm:$0xff]  ;;  %v2324_v40 = vld [vmem:[%s6423_s18 + $0xa0] sm:$0xff] }
 0xd68   : > { %v4535_v39 = vcombine.high %v2309_v34, %v2317_v35 }
 0xd69   : > { %v2270_v44 = vsub.f32 %v2258_v36, %v2268_v43  ;;  %v2271_v45 = vmul.f32 %v2269_v41, %v2269_v41  ;;  %v4544_v36 = vcombine.low %v2322_v22, %v2330_v23  ;;  %v2325_v43 = vld [vmem:[%s6423_s18 + $0xa8] sm:$0xff] }
 0xd6a   : > { %v5146_v22 = vld [vmem:[%s6425_s20 + $0xe8] sm:$0xff]  }
 0xd6b   : > { %v2273_v46 = vsel %vm824_vm1, %v2271_v45, 0.0  ;;  %v2272_v47 = vmul.f32 %v2270_v44, %v2270_v44  ;;  %v4532_v45 = vcombine.low %v2308_v30, %v2316_v31  ;;  %v5147_v23 = vld [vmem:[%s6425_s20 + $0x28] sm:$0xff]   ;;  %v5153_v30 = vld [vmem:[%s6425_s20 + $0x78] sm:$0xff]  }
 0xd6c   : > { %2274 = vadd.xlane.f32.xlu0 %v2273_v46  ;;  %v4534_v46 = vcombine.low %v2309_v34, %v2317_v35  ;;  %v5154_v31 = vld [vmem:[%s6425_s20 + $0xf8] sm:$0xff]  }
 0xd6d   : > { %v2276_v32 = vsel %vm824_vm1, %v2272_v47, 0.0  ;;  %v5155_v34 = vld [vmem:[%s6425_s20 + $0x38] sm:$0xff]  }
 0xd6e   : > { %2277 = vadd.xlane.f32.xlu1 %v2276_v32  ;;  %v5156_v35 = vld [vmem:[%s6425_s20 + $0xb8] sm:$0xff]  }
 0xdf9   : > { %v2275_v8 = vpop.xlane.xlu0 %2274 }
 0xdfa   : > { %v2279_v9 = vmul.f32 0.03125, %v2275_v8  ;;  %v5132_v8 = vld [vmem:[%s6425_s20 + $0x88] sm:$0xff]  }
 0xdfb   : > { %v2278_v1 = vpop.xlane.xlu1 %2277 }
 0xdfc   : > { %v2281_v10 = vadd.f32 1e-05, %v2279_v9  ;;  %v2280_v11 = vmul.f32 0.03125, %v2278_v1  ;;  %v5133_v9 = vld [vmem:[%s6425_s20 + $0x50] sm:$0xff]  }
 0xdfd   : > { %v5134_v1 = vld [vmem:[%s6425_s20 + $0xd0] sm:$0xff]  }
 0xdfe   : > { %5321 = vrsqrt.f32 %v2281_v10  ;;  %v2282_v12 = vadd.f32 1e-05, %v2280_v11  ;;  %v5135_v10 = vld [vmem:[%s6425_s20 + $0x10] sm:$0xff]  }
 0xdff   : > { %v5136_v11 = vld [vmem:[%s6425_s20 + $0x90] sm:$0xff]  }
 0xe00   : > { %5323 = vrsqrt.f32 %v2282_v12  ;;  %v5137_v12 = vld [vmem:[%s6425_s20 + $0x58] sm:$0xff]  }
 0xe08   : > { %v5322_v14 = vpop.eup %5321 }
 0xe09   : > { %v2285_v16 = vmul.f32 %v5322_v14, %v2269_v41  ;;  %v2332_v41 = vld [vmem:[%s6423_s18 + $0xe0] sm:$0xff]  ;;  %v5138_v14 = vld [vmem:[%s6425_s20 + $0xd8] sm:$0xff]  }
 0xe0a   : > { %v5324_v17 = vpop.eup %5323  ;;  %v4549_v47 = vcombine.high %v2324_v40, %v2332_v41  ;;  %v4548_v51 = vcombine.low %v2324_v40, %v2332_v41  ;;  %v6025_v41 = vld [vmem:[%s6424_s19 + $0x8] sm:$0xff] }
 0xe0b   : > { %v2293_v18 = vmul.f32 %v4522_v15, %v2285_v16  ;;  %v2286_v19 = vmul.f32 %v5324_v17, %v2270_v44  ;;  %v2333_v44 = vld [vmem:[%s6423_s18 + $0xe8] sm:$0xff]  ;;  %v5140_v16 = vld [vmem:[%s6425_s20 + $0x98] sm:$0xff]   ;;  %v5141_v17 = vld [vmem:[%s6425_s20 + $0x60] sm:$0xff]  }
 0xe0c   : > { %v4551_v32 = vcombine.high %v2325_v43, %v2333_v44  ;;  %v4550_v52 = vcombine.low %v2325_v43, %v2333_v44 }
 0xe0d   : > { %v2294_v21 = vmul.f32 %v4522_v15, %v2286_v19  ;;  %v5839_v26 = vadd.f32 %v4523_v20, %v2293_v18  ;;  %v5139_v15 = vld [vmem:[%s6425_s20 + $0x18] sm:$0xff]   ;;  %v5142_v18 = vld [vmem:[%s6425_s20 + $0xe0] sm:$0xff]  }
 0xe0e   : > { %v5143_v19 = vld [vmem:[%s6425_s20 + $0x20] sm:$0xff]  }
 0xe0f   : > { %v5841_v27 = vadd.f32 %v4523_v20, %v2294_v21  ;;  %v5144_v20 = vld [vmem:[%s6425_s20 + $0xa0] sm:$0xff]   ;;  %v5145_v21 = vld [vmem:[%s6425_s20 + $0x68] sm:$0xff]  }
 0xe11   : > { %v5845_v28 = vpack.c.bf16 %v5841_v27, %v5839_v26 }
 0xe13   : > { %4556 = vmatmul.mubr.msk.bf16.vlgmr.msra.gmra.mrb[40].mxu1 %vm824_vm1, %v5845_v28  ;;  %4557 = vmatmul.mubr.msk.bf16.vlgmr.msra.gmra.mrb[44].mxu0 %vm824_vm1, %v5845_v28 }
 0xe14   : > { %2670 = vmatpush1.bf16.msra.mxu1 %v4528_v5  ;;  %2713 = vmatpush1.bf16.msra.mxu0 %v4530_v6  ;;  %v5128_v5 = vld [vmem:[%s6425_s20 + $0x80] sm:$0xff]   ;;  %v5129_v6 = vld [vmem:[%s6425_s20 + $0x48] sm:$0xff]  }
 0xe15   : > { %2671 = vmatprep.subr.bf16.mxu1 %v4545_v42  ;;  %2714 = vmatprep.subr.bf16.mxu0 %v4547_v29  ;;  %v5151_v42 = vld [vmem:[%s6425_s20 + $0x30] sm:$0xff]  }
 0xe16   : > { %2701 = vmatprep.mubr.bf16.mxu1 %v5355_v2  ;;  %2744 = vmatprep.mubr.bf16.mxu0 %v5355_v2  ;;  %v5152_v29 = vld [vmem:[%s6425_s20 + $0xb0] sm:$0xff]  }
 0xe18   : > { %2672 = vmatpush1.bf16.msra.mxu1 %v4544_v36  ;;  %2715 = vmatpush1.bf16.msra.mxu0 %v4546_v37  ;;  %v5157_v36 = vld [vmem:[%s6425_s20 + $0x140] sm:$0xff]  }
 0xe19   : > { %2755 = vmatprep.subr.bf16.mxu1 %v4533_v38  ;;  %2798 = vmatprep.subr.bf16.mxu0 %v4535_v39  ;;  %v5158_v37 = vld [vmem:[%s6425_s20 + $0x1c0] sm:$0xff]   ;;  %v2340_v38 = vlaneseq }
 0xe1b   : > { %4558 = vmatmul.mubr.msk.bf16.vlgmr.msra.gmra.mrb[44].mxu1 %vm824_vm1, %v5845_v28  ;;  %4559 = vmatmul.mubr.msk.bf16.vlgmr.msra.gmra.mrb[48].mxu0 %vm824_vm1, %v5845_v28  ;;  %v6019_v39 = vshrl.u32 %v2340_v38, 7 }
 0xe1c   : > { %2756 = vmatpush1.bf16.msra.mxu1 %v4532_v45  ;;  %2799 = vmatpush1.bf16.msra.mxu0 %v4534_v46  ;;  %v2336_v46 = vld [vmem:[%s6424_s19] sm:$0xff] }
 0xe1d   : > { %2757 = vmatprep.subr.bf16.mxu1 %v4549_v47  ;;  %2800 = vmatprep.subr.bf16.mxu0 %v4551_v32  ;;  %v2366_v40 = vsub.s32 6, %v6019_v39  ;;  %v2342_v44 = vsub.s32 0, %v6019_v39  ;;  %v2350_v45 = vsub.s32 2, %v6019_v39  ;;  %v2346_v47 = vsub.s32 1, %v6019_v39 }
 0xe1e   : > { %2787 = vmatprep.mubr.bf16.mxu1 %v5355_v2  ;;  %2830 = vmatprep.mubr.bf16.mxu0 %v5355_v2  ;;  %v2354_v32 = vsub.s32 3, %v6019_v39  ;;  %v2370_v13 = vsub.s32 7, %v6019_v39 }
 0xe1f   : > { %v6028_v43 = vrot.slane %v6025_v41, %v2366_v40  ;;  %v2343_v33 = vrot.slane %v2336_v46, %v2342_v44  ;;  %v2351_v48 = vrot.slane %v2336_v46, %v2350_v45  ;;  %v2347_v49 = vrot.slane %v2336_v46, %v2346_v47 }
 0xe20   : > { %2758 = vmatpush1.bf16.msra.mxu1 %v4548_v51  ;;  %2801 = vmatpush1.bf16.msra.mxu0 %v4550_v52  ;;  %v2355_v50 = vrot.slane %v2336_v46, %v2354_v32  ;;  %v2358_v51 = vsub.s32 4, %v6019_v39 }
 0xe21   : > { %2841 = vmatprep.subr.bf16.mxu1 %v4537_v53  ;;  %2884 = vmatprep.subr.bf16.mxu0 %v4539_v54  ;;  %v2362_v54 = vsub.s32 5, %v6019_v39 }
 0xe23   : > { %4560 = vmatmul.mubr.msk.bf16.vlgmr.msra.gmra.mrb[48].mxu1 %vm824_vm1, %v5845_v28  ;;  %4561 = vmatmul.mubr.msk.bf16.vlgmr.msra.gmra.mrb[52].mxu0 %vm824_vm1, %v5845_v28 }
 0xe24   : > { %2842 = vmatpush1.bf16.msra.mxu1 %v4536_v58  ;;  %2885 = vmatpush1.bf16.msra.mxu0 %v4538_v59 }
 0xe25   : > { %2843 = vmatprep.subr.bf16.mxu1 %v4553_v60  ;;  %2886 = vmatprep.subr.bf16.mxu0 %v4555_v61 }
 0xe26   : > { %2873 = vmatprep.mubr.bf16.mxu1 %v5355_v2  ;;  %2916 = vmatprep.mubr.bf16.mxu0 %v5355_v2  ;;  %v5130_v2 = vld [vmem:[%s6425_s20 + $0xc8] sm:$0xff]  }
 0xe28   : > { %2844 = vmatpush1.bf16.msra.mxu1 %v4552_v62  ;;  %2887 = vmatpush1.bf16.msra.mxu0 %v4554_v63 }
 0xe29   : > { %4748 = vmatprep.subr.bf16.mxu1 %v5125_v0  ;;  %4770 = vmatprep.subr.bf16.mxu0 %v5126_v3 }
 0xe2b   : > { %4562 = vmatmul.mubr.msk.bf16.vlgmr.msra.gmra.mrb[52].mxu1 %vm824_vm1, %v5845_v28  ;;  %4563 = vmatmul.mubr.msk.bf16.vlgmr.msra.gmra.mrb[56].mxu0 %vm824_vm1, %v5845_v28  ;;  %v5150_v28 = vld [vmem:[%s6425_s20 + $0xf0] sm:$0xff]  }
 0xe2c   : > { %4749 = vmatpush3.bf16.msra.mxu1 %v5127_v4  ;;  %4771 = vmatpush3.bf16.msra.mxu0 %v5128_v5  ;;  %v2359_v5 = vrot.slane %v2336_v46, %v2358_v51 }
 0xe2d   : > { %4750 = vmatprep.subr.bf16.mxu1 %v5129_v6  ;;  %4772 = vmatprep.subr.bf16.mxu0 %v5130_v2  ;;  %v2367_v6 = vrot.slane %v2336_v46, %v2366_v40 }
 0xe30   : > { %4751 = vmatpush3.bf16.msra.mxu1 %v5131_v7  ;;  %4773 = vmatpush3.bf16.msra.mxu0 %v5132_v8  ;;  %v2363_v8 = vrot.slane %v2336_v46, %v2362_v54 }
 0xe31   : > { %4752 = vmatprep.subr.bf16.mxu1 %v5133_v9  ;;  %4774 = vmatprep.subr.bf16.mxu0 %v5134_v1  ;;  %v2371_v9 = vrot.slane %v2336_v46, %v2370_v13  ;;  %v2383_v46 = vrot.slane %v6025_v41, %v2350_v45  ;;  %v5164_v45 = vld [vmem:[%s6425_s20 + $0x188] sm:$0xff]  }
 0xe34   : > { %4753 = vmatpush3.bf16.msra.mxu1 %v5135_v10  ;;  %4775 = vmatpush3.bf16.msra.mxu0 %v5136_v11 }
 0xe35   : > { %4754 = vmatprep.subr.bf16.mxu1 %v5137_v12  ;;  %4776 = vmatprep.subr.bf16.mxu0 %v5138_v14 }
 0xe38   : > { %4755 = vmatpush3.bf16.msra.mxu1 %v5139_v15  ;;  %4777 = vmatpush3.bf16.msra.mxu0 %v5140_v16 }
 0xe39   : > { %4756 = vmatprep.subr.bf16.mxu1 %v5141_v17  ;;  %4778 = vmatprep.subr.bf16.mxu0 %v5142_v18 }
 0xe3c   : > { %4757 = vmatpush3.bf16.msra.mxu1 %v5143_v19  ;;  %4779 = vmatpush3.bf16.msra.mxu0 %v5144_v20 }
 0xe3d   : > { %4758 = vmatprep.subr.bf16.mxu1 %v5145_v21  ;;  %4780 = vmatprep.subr.bf16.mxu0 %v5146_v22 }
 0xe40   : > { %4759 = vmatpush3.bf16.msra.mxu1 %v5147_v23  ;;  %4781 = vmatpush3.bf16.msra.mxu0 %v5148_v24  ;;  %v5159_v24 = vld [vmem:[%s6425_s20 + $0x100] sm:$0xff]  }
 0xe41   : > { %4760 = vmatprep.subr.bf16.mxu1 %v5149_v25  ;;  %4782 = vmatprep.subr.bf16.mxu0 %v5150_v28  ;;  %v5160_v25 = vld [vmem:[%s6425_s20 + $0x180] sm:$0xff]  }
 0xe44   : > { %4761 = vmatpush3.bf16.msra.mxu1 %v5151_v42  ;;  %4783 = vmatpush3.bf16.msra.mxu0 %v5152_v29 }
 0xe45   : > { %4762 = vmatprep.subr.bf16.mxu1 %v5153_v30  ;;  %4784 = vmatprep.subr.bf16.mxu0 %v5154_v31  ;;  %v5161_v31 = vld [vmem:[%s6425_s20 + $0x148] sm:$0xff]  }
 0xe48   : > { %4763 = vmatpush3.bf16.msra.mxu1 %v5155_v34  ;;  %4785 = vmatpush3.bf16.msra.mxu0 %v5156_v35  ;;  %v5162_v34 = vld [vmem:[%s6425_s20 + $0x1c8] sm:$0xff]   ;;  %v2375_v35 = vrot.slane %v6025_v41, %v2342_v44 }
 0xe49   : > { %4792 = vmatprep.subr.bf16.mxu1 %v5157_v36  ;;  %4814 = vmatprep.subr.bf16.mxu0 %v5158_v37 }
 0xee6   : > { %v2617_v52 = vpop.f32.mrb[40].mxu1  ;;  %v2660_v53 = vpop.f32.mrb[44].mxu0 }
 0xee7   : > { %v2618_v55 = vadd.f32 %v2617_v52, %v2343_v33  ;;  %v2661_v56 = vadd.f32 %v2660_v53, %v2351_v48  ;;  %v2619_v57 = vpop.f32.mrb[41].mxu1  ;;  %v2662_v58 = vpop.f32.mrb[45].mxu0  ;;  %v2379_v52 = vrot.slane %v6025_v41, %v2346_v47 }
 0xee8   : > { %v2620_v59 = vadd.f32 %v2619_v57, %v2347_v49  ;;  %v2663_v60 = vadd.f32 %v2662_v58, %v2355_v50  ;;  %v2621_v61 = vpop.f32.mrb[42].mxu1  ;;  %v2664_v62 = vpop.f32.mrb[46].mxu0 }
 0xee9   : > { %v2622_v63 = vadd.f32 %v2621_v61, %v2343_v33  ;;  %v2665_v0 = vadd.f32 %v2664_v62, %v2351_v48  ;;  %v2623_v3 = vpop.f32.mrb[43].mxu1  ;;  %v2666_v4 = vpop.f32.mrb[47].mxu0  ;;  %v2927_v1 = vmax.f32 %v2618_v55, 0.0  ;;  %v2929_v10 = vmax.f32 %v2661_v56, 0.0  ;;  %v5163_v55 = vld [vmem:[%s6425_s20 + $0x108] sm:$0xff]   ;;  %v5166_v61 = vld [vmem:[%s6425_s20 + $0x1d0] sm:$0xff]  }
 0xeea   : > { %v2624_v2 = vadd.f32 %v2623_v3, %v2347_v49  ;;  %v2667_v7 = vadd.f32 %v2666_v4, %v2355_v50  ;;  %v2928_v14 = vmax.f32 %v2620_v59, 0.0  ;;  %v2930_v15 = vmax.f32 %v2663_v60, 0.0  ;;  %v5165_v60 = vld [vmem:[%s6425_s20 + $0x150] sm:$0xff]  }
 0xeeb   : > { %v2943_v11 = vmax.f32 %v2622_v63, 0.0  ;;  %v2945_v12 = vmax.f32 %v2665_v0, 0.0  ;;  %v2387_v56 = vrot.slane %v6025_v41, %v2354_v32 }
 0xeec   : > { %v2944_v16 = vmax.f32 %v2624_v2, 0.0  ;;  %v2946_v17 = vmax.f32 %v2667_v7, 0.0 }
 0xeed   : > { %v2959_v18 = vpack.c.bf16 %v2943_v11, %v2927_v1  ;;  %v2961_v19 = vpack.c.bf16 %v2945_v12, %v2929_v10 }
 0xeee   : > { %v2960_v20 = vpack.c.bf16 %v2944_v16, %v2928_v14  ;;  %v2962_v21 = vpack.c.bf16 %v2946_v17, %v2930_v15  ;;  %v2703_v22 = vpop.f32.mrb[44].mxu1  ;;  %v2746_v23 = vpop.f32.mrb[48].mxu0  ;;  %v5169_v14 = vld [vmem:[%s6425_s20 + $0x158] sm:$0xff]  }
 0xeef   : > { %v2704_v28 = vadd.f32 %v2703_v22, %v2359_v5  ;;  %v2747_v42 = vadd.f32 %v2746_v23, %v2367_v6  ;;  %v2705_v29 = vpop.f32.mrb[45].mxu1  ;;  %v2748_v30 = vpop.f32.mrb[49].mxu0  ;;  %v5170_v15 = vld [vmem:[%s6425_s20 + $0x1d8] sm:$0xff]  }
 0xef0   : > { %v2706_v36 = vadd.f32 %v2705_v29, %v2363_v8  ;;  %v2749_v37 = vadd.f32 %v2748_v30, %v2371_v9  ;;  %v2707_v38 = vpop.f32.mrb[46].mxu1  ;;  %v2750_v40 = vpop.f32.mrb[50].mxu0  ;;  %4038 = vmatprep.mubr.bf16.mxu1 %v2960_v20  ;;  %4079 = vmatprep.mubr.bf16.mxu0 %v2962_v21  ;;  %v5171_v29 = vld [vmem:[%s6425_s20 + $0x118] sm:$0xff]  }
 0xef1   : > { %v2708_v33 = vadd.f32 %v2707_v38, %v2359_v5  ;;  %v2751_v48 = vadd.f32 %v2750_v40, %v2367_v6  ;;  %v2709_v49 = vpop.f32.mrb[47].mxu1  ;;  %v2752_v50 = vpop.f32.mrb[51].mxu0  ;;  %4039 = vmatmul.mubr.bf16.vlgmr.msra.gmra.mrb[56].mxu1 %v2959_v18  ;;  %4080 = vmatmul.mubr.bf16.vlgmr.msra.gmra.mrb[60].mxu0 %v2961_v19  ;;  %v2931_v57 = vmax.f32 %v2704_v28, 0.0  ;;  %v2933_v58 = vmax.f32 %v2747_v42, 0.0  ;;  %v5172_v30 = vld [vmem:[%s6425_s20 + $0x198] sm:$0xff]  }
 0xef2   : > { %v2710_v53 = vadd.f32 %v2709_v49, %v2363_v8  ;;  %v2753_v44 = vadd.f32 %v2752_v50, %v2371_v9  ;;  %4793 = vmatpush3.bf16.msra.mxu1 %v5159_v24  ;;  %4815 = vmatpush3.bf16.msra.mxu0 %v5160_v25  ;;  %v2932_v62 = vmax.f32 %v2706_v36, 0.0  ;;  %v2934_v63 = vmax.f32 %v2749_v37, 0.0  ;;  %v5167_v8 = vld [vmem:[%s6425_s20 + $0x110] sm:$0xff]   ;;  %v5173_v36 = vld [vmem:[%s6425_s20 + $0x160] sm:$0xff]  }
 0xef3   : > { %v2947_v59 = vmax.f32 %v2708_v33, 0.0  ;;  %v2949_v47 = vmax.f32 %v2751_v48, 0.0  ;;  %4794 = vmatprep.subr.bf16.mxu1 %v5161_v31  ;;  %4816 = vmatprep.subr.bf16.mxu0 %v5162_v34  ;;  %v5168_v9 = vld [vmem:[%s6425_s20 + $0x190] sm:$0xff]   ;;  %v2391_v24 = vrot.slane %v6025_v41, %v2358_v51  ;;  %v2395_v25 = vrot.slane %v6025_v41, %v2362_v54  ;;  %v5174_v37 = vld [vmem:[%s6425_s20 + $0x1e0] sm:$0xff]  }
 0xef4   : > { %v2948_v0 = vmax.f32 %v2710_v53, 0.0  ;;  %v2950_v3 = vmax.f32 %v2753_v44, 0.0  ;;  %v2403_v51 = vrot.slane %v6025_v41, %v2370_v13  ;;  %v5176_v53 = vld [vmem:[%s6425_s20 + $0x1a0] sm:$0xff]  }
 0xef5   : > { %v6082_v4 = vpack.c.bf16 %v2947_v59, %v2931_v57  ;;  %v6084_v32 = vpack.c.bf16 %v2949_v47, %v2933_v58  ;;  %v5177_v57 = vld [vmem:[%s6425_s20 + $0x168] sm:$0xff]  }
 0xef6   : > { %v2964_v5 = vpack.c.bf16 %v2948_v0, %v2932_v62  ;;  %v2966_v6 = vpack.c.bf16 %v2950_v3, %v2934_v63  ;;  %4795 = vmatpush3.bf16.msra.mxu1 %v5163_v55  ;;  %4817 = vmatpush3.bf16.msra.mxu0 %v5164_v45  ;;  %v2789_v2 = vpop.f32.mrb[48].mxu1  ;;  %v2832_v7 = vpop.f32.mrb[52].mxu0  ;;  %v5178_v58 = vld [vmem:[%s6425_s20 + $0x1e8] sm:$0xff]  }
 0xef7   : > { %v2790_v1 = vadd.f32 %v2789_v2, %v2375_v35  ;;  %v2833_v10 = vadd.f32 %v2832_v7, %v2383_v46  ;;  %v2791_v11 = vpop.f32.mrb[49].mxu1  ;;  %v2834_v12 = vpop.f32.mrb[53].mxu0  ;;  %4796 = vmatprep.subr.bf16.mxu1 %v5165_v60  ;;  %4818 = vmatprep.subr.bf16.mxu0 %v5166_v61  ;;  %v5179_v2 = vld [vmem:[%s6425_s20 + $0x128] sm:$0xff]  }
 0xef8   : > { %v2792_v16 = vadd.f32 %v2791_v11, %v2379_v52  ;;  %v2835_v17 = vadd.f32 %v2834_v12, %v2387_v56  ;;  %v2793_v18 = vpop.f32.mrb[50].mxu1  ;;  %v2836_v19 = vpop.f32.mrb[54].mxu0  ;;  %4120 = vmatprep.mubr.bf16.mxu1 %v2964_v5  ;;  %4161 = vmatprep.mubr.bf16.mxu0 %v2966_v6  ;;  %v5180_v7 = vld [vmem:[%s6425_s20 + $0x1a8] sm:$0xff]   ;;  %v5182_v11 = vld [vmem:[%s6425_s20 + $0x1f0] sm:$0xff]  }
 0xef9   : > { %v2794_v20 = vadd.f32 %v2793_v18, %v2375_v35  ;;  %v2837_v21 = vadd.f32 %v2836_v19, %v2383_v46  ;;  %v2795_v22 = vpop.f32.mrb[51].mxu1  ;;  %v2838_v23 = vpop.f32.mrb[55].mxu0  ;;  %v2935_v31 = vmax.f32 %v2790_v1, 0.0  ;;  %v2937_v34 = vmax.f32 %v2833_v10, 0.0 }
 0xefa   : > { %v2796_v28 = vadd.f32 %v2795_v22, %v2379_v52  ;;  %v2839_v42 = vadd.f32 %v2838_v23, %v2387_v56  ;;  %4797 = vmatpush3.bf16.msra.mxu1 %v5167_v8  ;;  %4819 = vmatpush3.bf16.msra.mxu0 %v5168_v9  ;;  %v2936_v38 = vmax.f32 %v2792_v16, 0.0  ;;  %v2938_v40 = vmax.f32 %v2835_v17, 0.0  ;;  %v5175_v52 = vld [vmem:[%s6425_s20 + $0x120] sm:$0xff]   ;;  %v5184_v22 = vld [vmem:[%s6425_s20 + $0x1b0] sm:$0xff]   ;;  %v5185_v23 = vld [vmem:[%s6425_s20 + $0x178] sm:$0xff]  }
 0xefb   : > { %v2951_v35 = vmax.f32 %v2794_v20, 0.0  ;;  %v2953_v54 = vmax.f32 %v2837_v21, 0.0  ;;  %4798 = vmatprep.subr.bf16.mxu1 %v5169_v14  ;;  %4820 = vmatprep.subr.bf16.mxu0 %v5170_v15  ;;  %v5183_v21 = vld [vmem:[%s6425_s20 + $0x130] sm:$0xff]  }
 0xefc   : > { %v2952_v46 = vmax.f32 %v2796_v28, 0.0  ;;  %v2954_v39 = vmax.f32 %v2839_v42, 0.0  ;;  %v5188_v28 = vld [vmem:[%s6425_s20 + $0x1b8] sm:$0xff]   ;;  %v5189_v42 = vld [vmem:[%s6425_s20 + $0x240] sm:$0xff]  }
 0xefd   : > { %v6119_v33 = vpack.c.bf16 %v2951_v35, %v2935_v31  ;;  %v6121_v41 = vpack.c.bf16 %v2953_v54, %v2937_v34  ;;  %v5193_v31 = vld [vmem:[%s6425_s20 + $0x248] sm:$0xff]  }
 0xefe   : > { %v6123_v13 = vpack.c.bf16 %v2952_v46, %v2936_v38  ;;  %v6125_v48 = vpack.c.bf16 %v2954_v39, %v2938_v40  ;;  %4799 = vmatpush3.bf16.msra.mxu1 %v5171_v29  ;;  %4821 = vmatpush3.bf16.msra.mxu0 %v5172_v30  ;;  %v2875_v49 = vpop.f32.mrb[52].mxu1  ;;  %v2918_v50 = vpop.f32.mrb[56].mxu0  ;;  %v5190_v29 = vld [vmem:[%s6425_s20 + $0x2c0] sm:$0xff]   ;;  %v5194_v34 = vld [vmem:[%s6425_s20 + $0x2c8] sm:$0xff]   ;;  %v5201_v38 = vld [vmem:[%s6425_s20 + $0x258] sm:$0xff]  }
 0xeff   : > { %v2876_v44 = vadd.f32 %v2875_v49, %v2391_v24  ;;  %v2919_v55 = vadd.f32 %v2918_v50, %v6028_v43  ;;  %v2877_v45 = vpop.f32.mrb[53].mxu1  ;;  %v2920_v56 = vpop.f32.mrb[57].mxu0  ;;  %4800 = vmatprep.subr.bf16.mxu1 %v5173_v36  ;;  %4822 = vmatprep.subr.bf16.mxu0 %v5174_v37  ;;  %v5191_v30 = vld [vmem:[%s6425_s20 + $0x200] sm:$0xff]   ;;  %v5195_v35 = vld [vmem:[%s6425_s20 + $0x208] sm:$0xff]   ;;  %v5199_v36 = vld [vmem:[%s6425_s20 + $0x210] sm:$0xff]  }
 0xf00   : > { %v2878_v59 = vadd.f32 %v2877_v45, %v2395_v25  ;;  %v2921_v47 = vadd.f32 %v2920_v56, %v2403_v51  ;;  %v2879_v60 = vpop.f32.mrb[54].mxu1  ;;  %v2922_v61 = vpop.f32.mrb[58].mxu0  ;;  %v5196_v54 = vld [vmem:[%s6425_s20 + $0x288] sm:$0xff]   ;;  %v5200_v37 = vld [vmem:[%s6425_s20 + $0x290] sm:$0xff]   ;;  %v5202_v40 = vld [vmem:[%s6425_s20 + $0x2d8] sm:$0xff]  }
 0xf01   : > { %v2880_v62 = vadd.f32 %v2879_v60, %v2391_v24  ;;  %v2923_v63 = vadd.f32 %v2922_v61, %v6028_v43  ;;  %v2881_v0 = vpop.f32.mrb[55].mxu1  ;;  %v2924_v3 = vpop.f32.mrb[59].mxu0  ;;  %v2939_v8 = vmax.f32 %v2876_v44, 0.0  ;;  %v2941_v9 = vmax.f32 %v2919_v55, 0.0  ;;  %v5181_v43 = vld [vmem:[%s6425_s20 + $0x170] sm:$0xff]   ;;  %v5186_v24 = vld [vmem:[%s6425_s20 + $0x1f8] sm:$0xff]  }
 0xf02   : > { %v2882_v5 = vadd.f32 %v2881_v0, %v2395_v25  ;;  %v2925_v6 = vadd.f32 %v2924_v3, %v2403_v51  ;;  %4801 = vmatpush3.bf16.msra.mxu1 %v5175_v52  ;;  %4823 = vmatpush3.bf16.msra.mxu0 %v5176_v53  ;;  %v2940_v12 = vmax.f32 %v2878_v59, 0.0  ;;  %v2942_v14 = vmax.f32 %v2921_v47, 0.0  ;;  %v5187_v25 = vld [vmem:[%s6425_s20 + $0x138] sm:$0xff]   ;;  %v5192_v51 = vld [vmem:[%s6425_s20 + $0x280] sm:$0xff]   ;;  %v5209_v52 = vld [vmem:[%s6425_s20 + $0x268] sm:$0xff]  }
 0xf03   : > { %v2955_v1 = vmax.f32 %v2880_v62, 0.0  ;;  %v2957_v10 = vmax.f32 %v2923_v63, 0.0  ;;  %4802 = vmatprep.subr.bf16.mxu1 %v5177_v57  ;;  %4824 = vmatprep.subr.bf16.mxu0 %v5178_v58  ;;  %v5203_v46 = vld [vmem:[%s6425_s20 + $0x218] sm:$0xff]   ;;  %v5207_v49 = vld [vmem:[%s6425_s20 + $0x220] sm:$0xff]   ;;  %v5210_v53 = vld [vmem:[%s6425_s20 + $0x2e8] sm:$0xff]  }
 0xf04   : > { %v2956_v15 = vmax.f32 %v2882_v5, 0.0  ;;  %v2958_v16 = vmax.f32 %v2925_v6, 0.0  ;;  %v5204_v39 = vld [vmem:[%s6425_s20 + $0x298] sm:$0xff]   ;;  %v5208_v50 = vld [vmem:[%s6425_s20 + $0x2a0] sm:$0xff]   ;;  %v5211_v44 = vld [vmem:[%s6425_s20 + $0x228] sm:$0xff]  }
 0xf05   : > { %v6153_v17 = vpack.c.bf16 %v2955_v1, %v2939_v8  ;;  %v6155_v18 = vpack.c.bf16 %v2957_v10, %v2941_v9  ;;  %v5212_v55 = vld [vmem:[%s6425_s20 + $0x2a8] sm:$0xff]   ;;  %v5213_v45 = vld [vmem:[%s6425_s20 + $0x270] sm:$0xff]   ;;  %v5217_v59 = vld [vmem:[%s6425_s20 + $0x278] sm:$0xff]  }
 0xf06   : > { %v6157_v19 = vpack.c.bf16 %v2956_v15, %v2940_v12  ;;  %v6159_v20 = vpack.c.bf16 %v2958_v16, %v2942_v14  ;;  %4803 = vmatpush3.bf16.msra.mxu1 %v5179_v2  ;;  %4825 = vmatpush3.bf16.msra.mxu0 %v5180_v7  ;;  %v5214_v56 = vld [vmem:[%s6425_s20 + $0x2f0] sm:$0xff]   ;;  %v5218_v47 = vld [vmem:[%s6425_s20 + $0x2f8] sm:$0xff]   ;;  %v5221_v62 = vld [vmem:[%s6425_s20 + $0x340] sm:$0xff]  }
 0xf07   : > { %4804 = vmatprep.subr.bf16.mxu1 %v5181_v43  ;;  %4826 = vmatprep.subr.bf16.mxu0 %v5182_v11  ;;  %v5215_v57 = vld [vmem:[%s6425_s20 + $0x230] sm:$0xff]   ;;  %v5219_v60 = vld [vmem:[%s6425_s20 + $0x238] sm:$0xff]   ;;  %v5222_v63 = vld [vmem:[%s6425_s20 + $0x3c0] sm:$0xff]  }
 0xf08   : > { %v5216_v58 = vld [vmem:[%s6425_s20 + $0x2b0] sm:$0xff]   ;;  %v5220_v61 = vld [vmem:[%s6425_s20 + $0x2b8] sm:$0xff]   ;;  %v5223_v0 = vld [vmem:[%s6425_s20 + $0x300] sm:$0xff]  }
 0xf09   : > { %v5224_v3 = vld [vmem:[%s6425_s20 + $0x380] sm:$0xff]   ;;  %v5225_v5 = vld [vmem:[%s6425_s20 + $0x348] sm:$0xff]   ;;  %v5231_v8 = vld [vmem:[%s6425_s20 + $0x310] sm:$0xff]  }
 0xf0a   : > { %4805 = vmatpush3.bf16.msra.mxu1 %v5183_v21  ;;  %4827 = vmatpush3.bf16.msra.mxu0 %v5184_v22  ;;  %v5226_v6 = vld [vmem:[%s6425_s20 + $0x3c8] sm:$0xff]   ;;  %v5232_v9 = vld [vmem:[%s6425_s20 + $0x390] sm:$0xff]   ;;  %v5233_v1 = vld [vmem:[%s6425_s20 + $0x358] sm:$0xff]  }
 0xf0b   : > { %4806 = vmatprep.subr.bf16.mxu1 %v5185_v23  ;;  %4828 = vmatprep.subr.bf16.mxu0 %v5186_v24  ;;  %v5227_v2 = vld [vmem:[%s6425_s20 + $0x308] sm:$0xff]   ;;  %v5234_v10 = vld [vmem:[%s6425_s20 + $0x3d8] sm:$0xff]   ;;  %v5237_v12 = vld [vmem:[%s6425_s20 + $0x360] sm:$0xff]  }
 0xf0c   : > { %v5228_v7 = vld [vmem:[%s6425_s20 + $0x388] sm:$0xff]   ;;  %v5235_v43 = vld [vmem:[%s6425_s20 + $0x318] sm:$0xff]   ;;  %v5238_v14 = vld [vmem:[%s6425_s20 + $0x3e0] sm:$0xff]  }
 0xf0d   : > { %v5236_v11 = vld [vmem:[%s6425_s20 + $0x398] sm:$0xff]   ;;  %v5239_v15 = vld [vmem:[%s6425_s20 + $0x320] sm:$0xff]   ;;  %v5243_v21 = vld [vmem:[%s6425_s20 + $0x328] sm:$0xff]  }
 0xf0e   : > { %4807 = vmatpush3.bf16.msra.mxu1 %v5187_v25  ;;  %4829 = vmatpush3.bf16.msra.mxu0 %v5188_v28  ;;  %v5240_v16 = vld [vmem:[%s6425_s20 + $0x3a0] sm:$0xff]   ;;  %v5244_v22 = vld [vmem:[%s6425_s20 + $0x3a8] sm:$0xff]   ;;  %v5245_v23 = vld [vmem:[%s6425_s20 + $0x370] sm:$0xff]  }
 0xf0f   : > { %4836 = vmatprep.subr.bf16.mxu1 %v5189_v42  ;;  %4858 = vmatprep.subr.bf16.mxu0 %v5190_v29  ;;  %v5246_v24 = vld [vmem:[%s6425_s20 + $0x3f0] sm:$0xff]   ;;  %v5249_v42 = vld [vmem:[%s6425_s20 + $0x378] sm:$0xff]  }
 0xf10   : > { %v5247_v25 = vld [vmem:[%s6425_s20 + $0x330] sm:$0xff]   ;;  %v5250_v29 = vld [vmem:[%s6425_s20 + $0x3f8] sm:$0xff]  }
 0xf11   : > { %4121 = vmatmul.mubr.bf16.vlgmr.msra.gmra.mrb[60].mxu1 %v6082_v4  ;;  %4162 = vmatmul.mubr.bf16.vlgmr.msra.gmra.mrb[64].mxu0 %v6084_v32  ;;  %v5197_v4 = vld [vmem:[%s6425_s20 + $0x250] sm:$0xff]  }
 0xf12   : > { %4837 = vmatpush3.bf16.msra.mxu1 %v5191_v30  ;;  %4202 = vmatprep.mubr.bf16.mxu1 %v6123_v13  ;;  %v5198_v32 = vld [vmem:[%s6425_s20 + $0x2d0] sm:$0xff]   ;;  %v5205_v13 = vld [vmem:[%s6425_s20 + $0x260] sm:$0xff]   ;;  %v5251_v30 = vld [vmem:[%s6425_s20 + $0x338] sm:$0xff]  }
 0xf13   : > { %4859 = vmatpush3.bf16.msra.mxu0 %v5192_v51  ;;  %4243 = vmatprep.mubr.bf16.mxu0 %v6125_v48  ;;  %v5206_v48 = vld [vmem:[%s6425_s20 + $0x2e0] sm:$0xff]   ;;  %v5248_v28 = vld [vmem:[%s6425_s20 + $0x3b0] sm:$0xff]   ;;  %v5252_v51 = vld [vmem:[%s6425_s20 + $0x3b8] sm:$0xff]  }
 0xf14   : > { %4838 = vmatprep.subr.bf16.mxu1 %v5193_v31  ;;  %4860 = vmatprep.subr.bf16.mxu0 %v5194_v34 }
 0xf16   : > { %4839 = vmatpush3.bf16.msra.mxu1 %v5195_v35  ;;  %v4564_v35 = vld [vmem:[%s6426_s21] ss:$0 sm:$0xff] }
 0xf17   : > { %4861 = vmatpush3.bf16.msra.mxu0 %v5196_v54  ;;  %4840 = vmatprep.subr.bf16.mxu1 %v5197_v4 }
 0xf18   : > { %4862 = vmatprep.subr.bf16.mxu0 %v5198_v32 }
 0xf1a   : > { %4841 = vmatpush3.bf16.msra.mxu1 %v5199_v36 }
 0xf1b   : > { %4863 = vmatpush3.bf16.msra.mxu0 %v5200_v37  ;;  %4842 = vmatprep.subr.bf16.mxu1 %v5201_v38 }
 0xf1c   : > { %4864 = vmatprep.subr.bf16.mxu0 %v5202_v40 }
 0xf1e   : > { %4843 = vmatpush3.bf16.msra.mxu1 %v5203_v46 }
 0xf1f   : > { %4865 = vmatpush3.bf16.msra.mxu0 %v5204_v39  ;;  %4844 = vmatprep.subr.bf16.mxu1 %v5205_v13 }
 0xf20   : > { %4866 = vmatprep.subr.bf16.mxu0 %v5206_v48 }
 0xf22   : > { %4845 = vmatpush3.bf16.msra.mxu1 %v5207_v49 }
 0xf23   : > { %4867 = vmatpush3.bf16.msra.mxu0 %v5208_v50  ;;  %4846 = vmatprep.subr.bf16.mxu1 %v5209_v52 }
 0xf24   : > { %4868 = vmatprep.subr.bf16.mxu0 %v5210_v53 }
 0xf26   : > { %4847 = vmatpush3.bf16.msra.mxu1 %v5211_v44 }
 0xf27   : > { %4869 = vmatpush3.bf16.msra.mxu0 %v5212_v55  ;;  %4848 = vmatprep.subr.bf16.mxu1 %v5213_v45 }
 0xf28   : > { %4870 = vmatprep.subr.bf16.mxu0 %v5214_v56 }
 0xf2a   : > { %4849 = vmatpush3.bf16.msra.mxu1 %v5215_v57 }
 0xf2b   : > { %4871 = vmatpush3.bf16.msra.mxu0 %v5216_v58  ;;  %4850 = vmatprep.subr.bf16.mxu1 %v5217_v59 }
 0xf2c   : > { %4872 = vmatprep.subr.bf16.mxu0 %v5218_v47 }
 0xf2e   : > { %4851 = vmatpush3.bf16.msra.mxu1 %v5219_v60 }
 0xf2f   : > { %4873 = vmatpush3.bf16.msra.mxu0 %v5220_v61  ;;  %4880 = vmatprep.subr.bf16.mxu1 %v5221_v62 }
 0xf30   : > { %4902 = vmatprep.subr.bf16.mxu0 %v5222_v63 }
 0xf31   : > { %4203 = vmatmul.mubr.bf16.vlgmr.msra.gmra.mrb[64].mxu1 %v6119_v33  ;;  %v5229_v33 = vld [vmem:[%s6425_s20 + $0x350] sm:$0xff]  }
 0xf32   : > { %4244 = vmatmul.mubr.bf16.vlgmr.msra.gmra.mrb[68].mxu0 %v6121_v41  ;;  %4881 = vmatpush3.bf16.msra.mxu1 %v5223_v0  ;;  %v5230_v41 = vld [vmem:[%s6425_s20 + $0x3d0] sm:$0xff]  }
 0xf33   : > { %4284 = vmatprep.mubr.bf16.mxu1 %v6157_v19  ;;  %4903 = vmatpush3.bf16.msra.mxu0 %v5224_v3  ;;  %v5241_v19 = vld [vmem:[%s6425_s20 + $0x368] sm:$0xff]  }
 0xf34   : > { %4325 = vmatprep.mubr.bf16.mxu0 %v6159_v20  ;;  %4882 = vmatprep.subr.bf16.mxu1 %v5225_v5  ;;  %v5242_v20 = vld [vmem:[%s6425_s20 + $0x3e8] sm:$0xff]  }
 0xf35   : > { %4904 = vmatprep.subr.bf16.mxu0 %v5226_v6 }
 0xf36   : > { %4883 = vmatpush3.bf16.msra.mxu1 %v5227_v2 }
 0xf37   : > { %4905 = vmatpush3.bf16.msra.mxu0 %v5228_v7  ;;  %4884 = vmatprep.subr.bf16.mxu1 %v5229_v33 }
 0xf38   : > { %4906 = vmatprep.subr.bf16.mxu0 %v5230_v41 }
 0xf3a   : > { %4885 = vmatpush3.bf16.msra.mxu1 %v5231_v8 }
 0xf3b   : > { %4907 = vmatpush3.bf16.msra.mxu0 %v5232_v9  ;;  %4886 = vmatprep.subr.bf16.mxu1 %v5233_v1 }
 0xf3c   : > { %4908 = vmatprep.subr.bf16.mxu0 %v5234_v10 }
 0xf3e   : > { %4887 = vmatpush3.bf16.msra.mxu1 %v5235_v43 }
 0xf3f   : > { %4909 = vmatpush3.bf16.msra.mxu0 %v5236_v11  ;;  %4888 = vmatprep.subr.bf16.mxu1 %v5237_v12 }
 0xf40   : > { %4910 = vmatprep.subr.bf16.mxu0 %v5238_v14 }
 0xf42   : > { %4889 = vmatpush3.bf16.msra.mxu1 %v5239_v15 }
 0xf43   : > { %4911 = vmatpush3.bf16.msra.mxu0 %v5240_v16  ;;  %4890 = vmatprep.subr.bf16.mxu1 %v5241_v19 }
 0xf44   : > { %4912 = vmatprep.subr.bf16.mxu0 %v5242_v20 }
 0xf46   : > { %4891 = vmatpush3.bf16.msra.mxu1 %v5243_v21 }
 0xf47   : > { %4913 = vmatpush3.bf16.msra.mxu0 %v5244_v22  ;;  %4892 = vmatprep.subr.bf16.mxu1 %v5245_v23 }
 0xf48   : > { %4914 = vmatprep.subr.bf16.mxu0 %v5246_v24 }
 0xf4a   : > { %4893 = vmatpush3.bf16.msra.mxu1 %v5247_v25 }
 0xf4b   : > { %4915 = vmatpush3.bf16.msra.mxu0 %v5248_v28  ;;  %4894 = vmatprep.subr.bf16.mxu1 %v5249_v42 }
 0xf4c   : > { %4916 = vmatprep.subr.bf16.mxu0 %v5250_v29 }
 0xf4e   : > { %4895 = vmatpush3.bf16.msra.mxu1 %v5251_v30 }
 0xf4f   : > { %4917 = vmatpush3.bf16.msra.mxu0 %v5252_v51 }
 0xf51   : > { %4285 = vmatmul.mubr.bf16.vlgmr.msra.gmra.mrb[68].mxu1 %v6153_v17 }
 0xf52   : > { %4326 = vmatmul.mubr.bf16.vlgmr.msra.gmra.mrb[72].mxu0 %v6155_v18 }
 0xfc4   : > { %v4764_v31 = vpop.f32.mrb[56].mxu1  ;;  %v4786_v34 = vpop.f32.mrb[60].mxu0 }
 0xfc5   : > { %v4765_v54 = vpop.f32.mrb[57].mxu1  ;;  %v4787_v4 = vpop.f32.mrb[61].mxu0 }
 0xfc6   : > { %v4766_v32 = vadd.f32 %v4765_v54, %v4764_v31  ;;  %v4788_v36 = vadd.f32 %v4787_v4, %v4786_v34  ;;  %v4767_v37 = vpop.f32.mrb[58].mxu1  ;;  %v4789_v38 = vpop.f32.mrb[62].mxu0 }
 0xfc7   : > { %v4768_v40 = vpop.f32.mrb[59].mxu1  ;;  %v4790_v46 = vpop.f32.mrb[63].mxu0 }
 0xfc8   : > { %v4041_v39 = vadd.f32 %v4766_v32, %v4564_v35  ;;  %v4769_v13 = vadd.f32 %v4768_v40, %v4767_v37  ;;  %v4791_v48 = vadd.f32 %v4790_v46, %v4789_v38 }
 0xfca   : > { %v4082_v17 = vadd.f32 %v4788_v36, %v4041_v39  ;;  %v4044_v49 = vadd.f32 %v4769_v13, %v4564_v35 }
 0xfcc   : > { %v4085_v18 = vadd.f32 %v4791_v48, %v4044_v49 }
 0xfe4   : > { %v4808_v50 = vpop.f32.mrb[60].mxu1  ;;  %v4830_v52 = vpop.f32.mrb[64].mxu0 }
 0xfe5   : > { %v4809_v53 = vpop.f32.mrb[61].mxu1  ;;  %v4831_v44 = vpop.f32.mrb[65].mxu0 }
 0xfe6   : > { %v4810_v55 = vadd.f32 %v4809_v53, %v4808_v50  ;;  %v4832_v45 = vadd.f32 %v4831_v44, %v4830_v52  ;;  %v4811_v56 = vpop.f32.mrb[62].mxu1  ;;  %v4833_v57 = vpop.f32.mrb[66].mxu0 }
 0xfe7   : > { %v4812_v58 = vpop.f32.mrb[63].mxu1  ;;  %v4834_v59 = vpop.f32.mrb[67].mxu0 }
 0xfe8   : > { %v4123_v47 = vadd.f32 %v4810_v55, %v4082_v17  ;;  %v4813_v60 = vadd.f32 %v4812_v58, %v4811_v56  ;;  %v4835_v61 = vadd.f32 %v4834_v59, %v4833_v57  ;;  %v4694_v58 = vld [vmem:[%s6428_s23] ss:$0 sm:$0xff] }
 0xfea   : > { %v4164_v62 = vadd.f32 %v4832_v45, %v4123_v47  ;;  %v4126_v63 = vadd.f32 %v4813_v60, %v4085_v18  ;;  %v4693_v45 = vld [vmem:[%s6427_s22] ss:$0 sm:$0xff] }
 0xfec   : > { %v4167_v0 = vadd.f32 %v4835_v61, %v4126_v63 }
0x1004   : > { %v4852_v3 = vpop.f32.mrb[64].mxu1 }
0x1005   : > { %v4874_v5 = vpop.f32.mrb[68].mxu0  ;;  %v4853_v6 = vpop.f32.mrb[65].mxu1 }
0x1006   : > { %v4854_v2 = vadd.f32 %v4853_v6, %v4852_v3  ;;  %v4875_v7 = vpop.f32.mrb[69].mxu0  ;;  %v4855_v33 = vpop.f32.mrb[66].mxu1 }
0x1007   : > { %v4876_v41 = vadd.f32 %v4875_v7, %v4874_v5  ;;  %v4877_v8 = vpop.f32.mrb[70].mxu0  ;;  %v4856_v9 = vpop.f32.mrb[67].mxu1 }
0x1008   : > { %v4205_v1 = vadd.f32 %v4854_v2, %v4164_v62  ;;  %v4857_v10 = vadd.f32 %v4856_v9, %v4855_v33  ;;  %v4878_v43 = vpop.f32.mrb[71].mxu0 }
0x1009   : > { %v4879_v11 = vadd.f32 %v4878_v43, %v4877_v8 }
0x100a   : > { %v4246_v12 = vadd.f32 %v4876_v41, %v4205_v1  ;;  %v4208_v14 = vadd.f32 %v4857_v10, %v4167_v0 }
0x100c   : > { %v4249_v15 = vadd.f32 %v4879_v11, %v4208_v14 }
0x1024   : > { %v4896_v16 = vpop.f32.mrb[68].mxu1 }
0x1025   : > { %v4918_v19 = vpop.f32.mrb[72].mxu0  ;;  %v4897_v20 = vpop.f32.mrb[69].mxu1 }
0x1026   : > { %v4898_v21 = vadd.f32 %v4897_v20, %v4896_v16  ;;  %v4919_v22 = vpop.f32.mrb[73].mxu0  ;;  %v4899_v23 = vpop.f32.mrb[70].mxu1 }
0x1027   : > { %v4920_v24 = vadd.f32 %v4919_v22, %v4918_v19  ;;  %v4921_v25 = vpop.f32.mrb[74].mxu0  ;;  %v4900_v28 = vpop.f32.mrb[71].mxu1 }
0x1028   : > { %v4287_v42 = vadd.f32 %v4898_v21, %v4246_v12  ;;  %v4901_v29 = vadd.f32 %v4900_v28, %v4899_v23  ;;  %v4922_v30 = vpop.f32.mrb[75].mxu0 }
0x1029   : > { %v4923_v51 = vadd.f32 %v4922_v30, %v4921_v25 }
0x102a   : > { %v4328_v31 = vadd.f32 %v4920_v24, %v4287_v42  ;;  %v4290_v34 = vadd.f32 %v4901_v29, %v4249_v15 }
0x102c   : > { %v4331_v35 = vadd.f32 %v4923_v51, %v4290_v34  ;;  %v4334_v54 = vadd.f32 %v4328_v31, %v5839_v26 }
0x102e   : > { %v4338_v4 = vsel %vm824_vm1, %v4334_v54, 0.0  ;;  %v4335_v32 = vadd.f32 %v4331_v35, %v5841_v27 }
0x102f   : > { %4339 = vadd.xlane.f32.xlu0 %v4338_v4 }
0x1030   : > { %v4341_v36 = vsel %vm824_vm1, %v4335_v32, 0.0 }
0x1031   : > { %4342 = vadd.xlane.f32.xlu1 %v4341_v36 }
0x10bc   : > { %v4340_v37 = vpop.xlane.xlu0 %4339 }
0x10bd   : > { %v4344_v38 = vmul.f32 0.03125, %v4340_v37 }
0x10be   : > { %v4343_v40 = vpop.xlane.xlu1 %4342 }
0x10bf   : > { %v4346_v46 = vsub.f32 %v4334_v54, %v4344_v38  ;;  %v4345_v39 = vmul.f32 0.03125, %v4343_v40 }
0x10c1   : > { %v4347_v13 = vsub.f32 %v4335_v32, %v4345_v39  ;;  %v4348_v48 = vmul.f32 %v4346_v46, %v4346_v46 }
0x10c3   : > { %v4350_v17 = vsel %vm824_vm1, %v4348_v48, 0.0  ;;  %v4349_v49 = vmul.f32 %v4347_v13, %v4347_v13 }
0x10c4   : > { %4351 = vadd.xlane.f32.xlu0 %v4350_v17 }
0x10c5   : > { %v4353_v26 = vsel %vm824_vm1, %v4349_v49, 0.0 }
0x10c6   : > { %4354 = vadd.xlane.f32.xlu1 %v4353_v26 }
0x1151   : > { %v4352_v27 = vpop.xlane.xlu0 %4351 }
0x1152   : > { %v4356_v18 = vmul.f32 0.03125, %v4352_v27 }
0x1153   : > { %v4355_v50 = vpop.xlane.xlu1 %4354 }
0x1154   : > { %v4358_v52 = vadd.f32 1e-05, %v4356_v18  ;;  %v4357_v53 = vmul.f32 0.03125, %v4355_v50 }
0x1156   : > { %5325 = vrsqrt.f32 %v4358_v52  ;;  %v4359_v44 = vadd.f32 1e-05, %v4357_v53 }
0x1158   : > { %5327 = vrsqrt.f32 %v4359_v44 }
0x1160   : > { %v5326_v55 = vpop.eup %5325 }
0x1161   : > { %v4362_v56 = vmul.f32 %v5326_v55, %v4346_v46 }
0x1162   : > { %v5328_v57 = vpop.eup %5327 }
0x1163   : > { %v4370_v59 = vmul.f32 %v4693_v45, %v4362_v56  ;;  %v4363_v47 = vmul.f32 %v5328_v57, %v4347_v13 }
0x1165   : > { %v4378_v60 = vadd.f32 %v4694_v58, %v4370_v59  ;;  %v4371_v61 = vmul.f32 %v4693_v45, %v4363_v47 }
0x1167   : > { %4380 = vst.msk [vmem:[%s791_s30] sm:$0xff] %vm824_vm1, %v4378_v60  ;;  %v4379_v62 = vadd.f32 %v4694_v58, %v4371_v61 }
0x1169   : > { %4381 = vst.msk [vmem:[%s791_s30 + $0x8] sm:$0xff] %vm824_vm1, %v4379_v62 }
0x116a PF: > { %s34_s5 = sadd.s32 1, %s5337_s5  }
0x116b   : > { %p31_p4 = scmp.ge.s32.totalorder %s34_s5, 4  }
0x116d   :  { %33 = sbr.rel (!%p31_p4) target bundleno = 10 (0xa), region = 155 }

</bundles_post_ra>
